<compile_context>
chip_gen: v6e
topology: v6e:2x2x1
jax: 0.10.0
libtpu: 0.0.40
codegen_flags: <defaults>
</compile_context>

<pallas_src>
import jax
import jax.numpy as jnp
from jax.experimental import pallas as pl
from jax.experimental.pallas import tpu as pltpu


def _round_up(x, m):
    return (x + m - 1) // m * m


# ----------------------------------------------------------------------------
# Pallas kernels
# ----------------------------------------------------------------------------

def _conv_bn_relu_pool_kernel(p0_ref, p1_ref, p2_ref, p3_ref, w_ref, b_ref,
                              o_ref):
    # p{0..3}_ref: (TM, Kp) bf16 im2col patches, one per 2x2 pool-window elem.
    # w_ref: (Kp, OCp) bf16 BN-folded conv weight.  b_ref: (1, OCp) f32 bias.
    # o_ref: (TM, OCp) bf16 pooled activations (rows = pooled positions).
    w = w_ref[...]
    y0 = jnp.dot(p0_ref[...], w, preferred_element_type=jnp.float32)
    y1 = jnp.dot(p1_ref[...], w, preferred_element_type=jnp.float32)
    y2 = jnp.dot(p2_ref[...], w, preferred_element_type=jnp.float32)
    y3 = jnp.dot(p3_ref[...], w, preferred_element_type=jnp.float32)
    # Bias is shared by all 4 window elements and ReLU is monotone, so
    # max-pool commutes with both:  pool(relu(conv+b)) == relu(max_j(y_j)+b).
    y = jnp.maximum(jnp.maximum(y0, y1), jnp.maximum(y2, y3))
    o_ref[...] = jnp.maximum(y + b_ref[...], 0.0).astype(o_ref.dtype)


def _mlp_kernel(x_ref, w1_ref, b1_ref, w2_ref, b2_ref, w3_ref, b3_ref, o_ref):
    # Fused fc1(+relu) -> fc2(+relu) -> fc3.  Dropout is identity at inference.
    h = jnp.dot(x_ref[...], w1_ref[...], preferred_element_type=jnp.float32)
    h = jnp.maximum(h + b1_ref[...], 0.0).astype(jnp.bfloat16)
    h = jnp.dot(h, w2_ref[...], preferred_element_type=jnp.float32)
    h = jnp.maximum(h + b2_ref[...], 0.0).astype(jnp.bfloat16)
    o_ref[...] = (jnp.dot(h, w3_ref[...], preferred_element_type=jnp.float32)
                  + b3_ref[...])


# ----------------------------------------------------------------------------
# Wrappers
# ----------------------------------------------------------------------------

def conv_bn_relu_pool(x_nhwc, w, b, gamma, beta, mean, var, *,
                      k_pad=None, oc_pad=128, tile_m=256, eps=1e-5):
    """x_nhwc: (N,H,W,C).  w: (OC,C,K,K) PyTorch layout.
    Returns ((N*HO*WO, oc_pad) bf16 rows ordered (n,ho,wo), geometry)."""
    N, H, W, C = x_nhwc.shape
    OC, _, K, _ = w.shape
    OH, OW = H - K + 1, W - K + 1
    HO, WO = OH // 2, OW // 2
    M = N * HO * WO
    Kdim = K * K * C
    Kp = k_pad if k_pad is not None else _round_up(Kdim, 128)
    OCp = oc_pad

    # Fold BatchNorm (running stats) into the conv weight & bias.
    scale = gamma * jax.lax.rsqrt(var + eps)                       # (OC,)
    w2d = w.transpose(2, 3, 1, 0).reshape(Kdim, OC)                # (kh,kw,c) rows
    w2d = w2d * scale[None, :]
    bias = (b - mean) * scale + beta
    w2d = jnp.pad(w2d, ((0, Kp - Kdim), (0, OCp - OC))).astype(jnp.bfloat16)
    bias = jnp.pad(bias, (0, OCp - OC)).reshape(1, OCp).astype(jnp.float32)

    tm = tile_m if M >= tile_m else _round_up(M, 8)
    Mp = _round_up(M, tm)

    # Strided im2col: one patch matrix per 2x2 pool-window element (dh, dw),
    # rows ordered (n, ho, wo), columns ordered (kh, kw, c) to match w2d.
    xb = x_nhwc.astype(jnp.bfloat16)
    patches = []
    for dh in range(2):
        for dw in range(2):
            cols = []
            for kh in range(K):
                for kw in range(K):
                    sl = jax.lax.slice(
                        xb,
                        (0, dh + kh, dw + kw, 0),
                        (N, dh + kh + 2 * HO - 1, dw + kw + 2 * WO - 1, C),
                        (1, 2, 2, 1))                              # (N,HO,WO,C)
                    cols.append(sl)
            pj = jnp.stack(cols, axis=3).reshape(M, Kdim)
            patches.append(jnp.pad(pj, ((0, Mp - M), (0, Kp - Kdim))))

    patch_spec = pl.BlockSpec((tm, Kp), lambda i: (i, 0))
    out = pl.pallas_call(
        _conv_bn_relu_pool_kernel,
        out_shape=jax.ShapeDtypeStruct((Mp, OCp), jnp.bfloat16),
        grid=(Mp // tm,),
        in_specs=[patch_spec, patch_spec, patch_spec, patch_spec,
                  pl.BlockSpec((Kp, OCp), lambda i: (0, 0)),
                  pl.BlockSpec((1, OCp), lambda i: (0, 0))],
        out_specs=pl.BlockSpec((tm, OCp), lambda i: (i, 0)),
        compiler_params=pltpu.CompilerParams(
            dimension_semantics=("parallel",)),
    )(*patches, w2d, bias)
    return out[:M], (N, HO, WO, OC, OCp)


def mlp_head(x, w1p, b1p, w2p, b2p, w3p, b3p, *, tile_n=256):
    # x: (N, Kin); all weight matrices are small and stay resident in VMEM.
    N, Kin = x.shape
    OUTp = w3p.shape[1]
    tn = tile_n if N >= tile_n else _round_up(N, 8)
    Np = _round_up(N, tn)
    xp = jnp.pad(x.astype(jnp.bfloat16), ((0, Np - N), (0, 0)))
    out = pl.pallas_call(
        _mlp_kernel,
        out_shape=jax.ShapeDtypeStruct((Np, OUTp), jnp.float32),
        grid=(Np // tn,),
        in_specs=[pl.BlockSpec((tn, Kin), lambda i: (i, 0)),
                  pl.BlockSpec(w1p.shape, lambda i: (0, 0)),
                  pl.BlockSpec(b1p.shape, lambda i: (0, 0)),
                  pl.BlockSpec(w2p.shape, lambda i: (0, 0)),
                  pl.BlockSpec(b2p.shape, lambda i: (0, 0)),
                  pl.BlockSpec(w3p.shape, lambda i: (0, 0)),
                  pl.BlockSpec(b3p.shape, lambda i: (0, 0))],
        out_specs=pl.BlockSpec((tn, OUTp), lambda i: (i, 0)),
        compiler_params=pltpu.CompilerParams(
            dimension_semantics=("parallel",)),
    )(xp, w1p, b1p, w2p, b2p, w3p, b3p)
    return out[:N]


def _prep_fc_params(p, *, C2, Hs, Ws, Cp=128, Fp=128, out_p=128):
    f1 = p["fc1_w"].shape[1]
    f2 = p["fc2_w"].shape[1]
    ncls = p["fc3_w"].shape[1]
    # fc1_w rows follow PyTorch's flatten(NCHW) order: c*Hs*Ws + h*Ws + w.
    # Kernel activations are (n,ho,wo) rows x padded-channel lanes, so their
    # flatten order is h*Ws*Cp + w*Cp + c: permute + zero-pad the weight rows
    # ONCE instead of transposing/slicing activations.
    w1 = p["fc1_w"].reshape(C2, Hs, Ws, f1).transpose(1, 2, 0, 3)  # (Hs,Ws,C2,f1)
    w1 = jnp.pad(w1, ((0, 0), (0, 0), (0, Cp - C2), (0, 0)))
    w1 = w1.reshape(Hs * Ws * Cp, f1)
    w1p = jnp.pad(w1, ((0, 0), (0, Fp - f1))).astype(jnp.bfloat16)
    b1p = jnp.pad(p["fc1_b"], (0, Fp - f1)).reshape(1, Fp).astype(jnp.float32)
    w2p = jnp.pad(p["fc2_w"], ((0, Fp - f1), (0, Fp - f2))).astype(jnp.bfloat16)
    b2p = jnp.pad(p["fc2_b"], (0, Fp - f2)).reshape(1, Fp).astype(jnp.float32)
    w3p = jnp.pad(p["fc3_w"], ((0, Fp - f2), (0, out_p - ncls))).astype(jnp.bfloat16)
    b3p = jnp.pad(p["fc3_b"], (0, out_p - ncls)).reshape(1, out_p).astype(jnp.float32)
    return (w1p, b1p, w2p, b2p, w3p, b3p), ncls


# ----------------------------------------------------------------------------
# Parameters (deterministic, synthetic, PyTorch layouts) & forward
# ----------------------------------------------------------------------------

def make_params(key, n1=32, n2=64, fc1=64, fc2=64):
    ks = jax.random.split(key, 16)
    f32 = jnp.float32
    p = {}
    p["conv1_w"] = 0.05 * jax.random.normal(ks[0], (n1, 3, 5, 5), f32)
    p["conv1_b"] = 0.05 * jax.random.normal(ks[1], (n1,), f32)
    p["bn1_g"] = 1.0 + 0.1 * jax.random.normal(ks[2], (n1,), f32)
    p["bn1_b"] = 0.1 * jax.random.normal(ks[3], (n1,), f32)
    p["bn1_mean"] = 0.1 * jax.random.normal(ks[4], (n1,), f32)
    p["bn1_var"] = 0.5 + jnp.abs(jax.random.normal(ks[5], (n1,), f32))
    p["conv2_w"] = 0.05 * jax.random.normal(ks[6], (n2, n1, 5, 5), f32)
    p["conv2_b"] = 0.05 * jax.random.normal(ks[7], (n2,), f32)
    p["bn2_g"] = 1.0 + 0.1 * jax.random.normal(ks[8], (n2,), f32)
    p["bn2_b"] = 0.1 * jax.random.normal(ks[9], (n2,), f32)
    p["bn2_mean"] = 0.1 * jax.random.normal(ks[10], (n2,), f32)
    p["bn2_var"] = 0.5 + jnp.abs(jax.random.normal(ks[11], (n2,), f32))
    # fc1_w rows are in PyTorch flatten(NCHW) order: c*25 + h*5 + w.
    p["fc1_w"] = 0.02 * jax.random.normal(ks[12], (n2 * 5 * 5, fc1), f32)
    p["fc1_b"] = 0.02 * jax.random.normal(ks[13], (fc1,), f32)
    p["fc2_w"] = 0.02 * jax.random.normal(ks[14], (fc1, fc2), f32)
    p["fc2_b"] = jnp.zeros((fc2,), f32)
    p["fc3_w"] = 0.02 * jax.random.normal(ks[15], (fc2, 10), f32)
    p["fc3_b"] = jnp.zeros((10,), f32)
    return p


@jax.jit
def cnn_forward(x_nchw, p):
    # NCHW -> NHWC once at the boundary; everything downstream stays rows x lanes.
    x = x_nchw.transpose(0, 2, 3, 1)

    h1, (N, HO1, WO1, OC1, _) = conv_bn_relu_pool(
        x, p["conv1_w"], p["conv1_b"],
        p["bn1_g"], p["bn1_b"], p["bn1_mean"], p["bn1_var"],
        k_pad=128)                                   # Kdim 75 -> 128
    h1 = h1[:, :OC1].reshape(N, HO1, WO1, OC1)       # (N,14,14,32) NHWC

    h2, (N, HO2, WO2, OC2, OCp2) = conv_bn_relu_pool(
        h1, p["conv2_w"], p["conv2_b"],
        p["bn2_g"], p["bn2_b"], p["bn2_mean"], p["bn2_var"],
        k_pad=1024)                                  # Kdim 800 -> 1024

    # Flatten with padded channels kept on the lane axis; fc1 weights were
    # permuted/zero-padded to match, so no activation transpose/slice needed.
    feat = h2.reshape(N, HO2 * WO2 * OCp2)           # (N, 5*5*128)

    (w1p, b1p, w2p, b2p, w3p, b3p), ncls = _prep_fc_params(
        p, C2=OC2, Hs=HO2, Ws=WO2, Cp=OCp2)
    logits = mlp_head(feat, w1p, b1p, w2p, b2p, w3p, b3p)
    return logits[:, :ncls]                          # (N, 10)


if __name__ == "__main__":
    key = jax.random.PRNGKey(0)
    kx, kp = jax.random.split(key)
    # Input 3x32x32 is implied by fc1 = Linear(64*5*5, ...): 32->28->14->10->5.
    x = jax.random.normal(kx, (2, 3, 32, 32), jnp.float32)
    params = make_params(kp)

    out = cnn_forward(x, params)
    out = jax.block_until_ready(out)
    assert out.shape == (2, 10), out.shape
    assert bool(jnp.all(jnp.isfinite(out)))
    print("KERNEL_OK")
</pallas_src>

<mosaic_0001>
module attributes {stable_mosaic.version = 11 : i64} {
  func.func @_conv_bn_relu_pool_kernel(%arg0: i32, %arg1: memref<256x128xbf16, #tpu.memory_space<vmem>>, %arg2: memref<256x128xbf16, #tpu.memory_space<vmem>>, %arg3: memref<256x128xbf16, #tpu.memory_space<vmem>>, %arg4: memref<256x128xbf16, #tpu.memory_space<vmem>>, %arg5: memref<128x128xbf16, #tpu.memory_space<vmem>>, %arg6: memref<1x128xf32, #tpu.memory_space<vmem>>, %arg7: memref<256x128xbf16, #tpu.memory_space<vmem>>) attributes {dimension_semantics = [#tpu.dimension_semantics<parallel>], iteration_bounds = array<i64: 2>, scalar_prefetch = 0 : i64, scratch_operands = 0 : i64, tpu.core_type = #tpu.core_type<tc>, window_params = [{transform_indices = @transform_0, window_bounds = array<i64: 256, 128>}, {transform_indices = @transform_1, window_bounds = array<i64: 256, 128>}, {transform_indices = @transform_2, window_bounds = array<i64: 256, 128>}, {transform_indices = @transform_3, window_bounds = array<i64: 256, 128>}, {pipeline_mode = #tpu.pipeline_mode<synchronous>, transform_indices = @transform_4, window_bounds = array<i64: 128, 128>}, {pipeline_mode = #tpu.pipeline_mode<synchronous>, transform_indices = @transform_5, window_bounds = array<i64: 1, 128>}, {transform_indices = @transform_6, window_bounds = array<i64: 256, 128>}]} {
    %c0 = arith.constant 0 : index
    %c0_0 = arith.constant 0 : index
    %0 = vector.load %arg5[%c0, %c0_0] : memref<128x128xbf16, #tpu.memory_space<vmem>>, vector<128x128xbf16>
    %c0_1 = arith.constant 0 : index
    %c0_2 = arith.constant 0 : index
    %1 = vector.load %arg1[%c0_1, %c0_2] : memref<256x128xbf16, #tpu.memory_space<vmem>>, vector<256x128xbf16>
    %cst = arith.constant dense<0.000000e+00> : vector<256x128xf32>
    %2 = tpu.matmul %1, %0, %cst {dimension_numbers = #tpu.dot_dimension_numbers<[1], [0], [0], [1], [0, 0, 1, 1], [], []>} : vector<256x128xbf16>, vector<128x128xbf16>, vector<256x128xf32> -> vector<256x128xf32>
    %c0_3 = arith.constant 0 : index
    %c0_4 = arith.constant 0 : index
    %3 = vector.load %arg2[%c0_3, %c0_4] : memref<256x128xbf16, #tpu.memory_space<vmem>>, vector<256x128xbf16>
    %cst_5 = arith.constant dense<0.000000e+00> : vector<256x128xf32>
    %4 = tpu.matmul %3, %0, %cst_5 {dimension_numbers = #tpu.dot_dimension_numbers<[1], [0], [0], [1], [0, 0, 1, 1], [], []>} : vector<256x128xbf16>, vector<128x128xbf16>, vector<256x128xf32> -> vector<256x128xf32>
    %c0_6 = arith.constant 0 : index
    %c0_7 = arith.constant 0 : index
    %5 = vector.load %arg3[%c0_6, %c0_7] : memref<256x128xbf16, #tpu.memory_space<vmem>>, vector<256x128xbf16>
    %cst_8 = arith.constant dense<0.000000e+00> : vector<256x128xf32>
    %6 = tpu.matmul %5, %0, %cst_8 {dimension_numbers = #tpu.dot_dimension_numbers<[1], [0], [0], [1], [0, 0, 1, 1], [], []>} : vector<256x128xbf16>, vector<128x128xbf16>, vector<256x128xf32> -> vector<256x128xf32>
    %c0_9 = arith.constant 0 : index
    %c0_10 = arith.constant 0 : index
    %7 = vector.load %arg4[%c0_9, %c0_10] : memref<256x128xbf16, #tpu.memory_space<vmem>>, vector<256x128xbf16>
    %cst_11 = arith.constant dense<0.000000e+00> : vector<256x128xf32>
    %8 = tpu.matmul %7, %0, %cst_11 {dimension_numbers = #tpu.dot_dimension_numbers<[1], [0], [0], [1], [0, 0, 1, 1], [], []>} : vector<256x128xbf16>, vector<128x128xbf16>, vector<256x128xf32> -> vector<256x128xf32>
    %9 = arith.maximumf %2, %4 : vector<256x128xf32>
    %10 = arith.maximumf %6, %8 : vector<256x128xf32>
    %11 = arith.maximumf %9, %10 : vector<256x128xf32>
    %c0_12 = arith.constant 0 : index
    %c0_13 = arith.constant 0 : index
    %12 = vector.load %arg6[%c0_12, %c0_13] : memref<1x128xf32, #tpu.memory_space<vmem>>, vector<1x128xf32>
    %13 = vector.broadcast %12 : vector<1x128xf32> to vector<256x128xf32>
    %14 = arith.addf %11, %13 : vector<256x128xf32>
    %cst_14 = arith.constant 0.000000e+00 : f32
    %15 = vector.broadcast %cst_14 : f32 to vector<256x128xf32>
    %16 = arith.maximumf %14, %15 : vector<256x128xf32>
    %17 = arith.truncf %16 : vector<256x128xf32> to vector<256x128xbf16>
    %c0_15 = arith.constant 0 : index
    %c0_16 = arith.constant 0 : index
    %18 = vector.load %arg7[%c0_15, %c0_16] : memref<256x128xbf16, #tpu.memory_space<vmem>>, vector<256x128xbf16>
    tpu.vector_store %arg7[%c0_15, %c0_16], %17 {strides = array<i32>} : memref<256x128xbf16, #tpu.memory_space<vmem>>, vector<256x128xbf16>,
    return
  }
  func.func @transform_0(%arg0: i32) -> (i32, i32) {
    %c0_i32 = arith.constant 0 : i32
    %c0_i32_0 = arith.constant 0 : i32
    return %arg0, %c0_i32 : i32, i32
  }
  func.func @transform_1(%arg0: i32) -> (i32, i32) {
    %c0_i32 = arith.constant 0 : i32
    %c0_i32_0 = arith.constant 0 : i32
    return %arg0, %c0_i32 : i32, i32
  }
  func.func @transform_2(%arg0: i32) -> (i32, i32) {
    %c0_i32 = arith.constant 0 : i32
    %c0_i32_0 = arith.constant 0 : i32
    return %arg0, %c0_i32 : i32, i32
  }
  func.func @transform_3(%arg0: i32) -> (i32, i32) {
    %c0_i32 = arith.constant 0 : i32
    %c0_i32_0 = arith.constant 0 : i32
    return %arg0, %c0_i32 : i32, i32
  }
  func.func @transform_4(%arg0: i32) -> (i32, i32) {
    %c0_i32 = arith.constant 0 : i32
    %c0_i32_0 = arith.constant 0 : i32
    %c0_i32_1 = arith.constant 0 : i32
    return %c0_i32, %c0_i32_0 : i32, i32
  }
  func.func @transform_5(%arg0: i32) -> (i32, i32) {
    %c0_i32 = arith.constant 0 : i32
    %c0_i32_0 = arith.constant 0 : i32
    %c0_i32_1 = arith.constant 0 : i32
    return %c0_i32, %c0_i32_0 : i32, i32
  }
  func.func @transform_6(%arg0: i32) -> (i32, i32) {
    %c0_i32 = arith.constant 0 : i32
    %c0_i32_0 = arith.constant 0 : i32
    return %arg0, %c0_i32 : i32, i32
  }
}

module attributes {stable_mosaic.version = 11 : i64} {
  func.func @_conv_bn_relu_pool_kernel(%arg0: i32, %arg1: memref<56x1024xbf16, #tpu.memory_space<vmem>>, %arg2: memref<56x1024xbf16, #tpu.memory_space<vmem>>, %arg3: memref<56x1024xbf16, #tpu.memory_space<vmem>>, %arg4: memref<56x1024xbf16, #tpu.memory_space<vmem>>, %arg5: memref<1024x128xbf16, #tpu.memory_space<vmem>>, %arg6: memref<1x128xf32, #tpu.memory_space<vmem>>, %arg7: memref<56x128xbf16, #tpu.memory_space<vmem>>) attributes {dimension_semantics = [#tpu.dimension_semantics<parallel>], iteration_bounds = array<i64: 1>, scalar_prefetch = 0 : i64, scratch_operands = 0 : i64, tpu.core_type = #tpu.core_type<tc>, window_params = [{transform_indices = @transform_0, window_bounds = array<i64: 56, 1024>}, {transform_indices = @transform_1, window_bounds = array<i64: 56, 1024>}, {transform_indices = @transform_2, window_bounds = array<i64: 56, 1024>}, {transform_indices = @transform_3, window_bounds = array<i64: 56, 1024>}, {pipeline_mode = #tpu.pipeline_mode<synchronous>, transform_indices = @transform_4, window_bounds = array<i64: 1024, 128>}, {pipeline_mode = #tpu.pipeline_mode<synchronous>, transform_indices = @transform_5, window_bounds = array<i64: 1, 128>}, {transform_indices = @transform_6, window_bounds = array<i64: 56, 128>}]} {
    %c0 = arith.constant 0 : index
    %c0_0 = arith.constant 0 : index
    %0 = vector.load %arg5[%c0, %c0_0] : memref<1024x128xbf16, #tpu.memory_space<vmem>>, vector<1024x128xbf16>
    %c0_1 = arith.constant 0 : index
    %c0_2 = arith.constant 0 : index
    %1 = vector.load %arg1[%c0_1, %c0_2] : memref<56x1024xbf16, #tpu.memory_space<vmem>>, vector<56x1024xbf16>
    %cst = arith.constant dense<0.000000e+00> : vector<56x128xf32>
    %2 = tpu.matmul %1, %0, %cst {dimension_numbers = #tpu.dot_dimension_numbers<[1], [0], [0], [1], [0, 0, 1, 1], [], []>} : vector<56x1024xbf16>, vector<1024x128xbf16>, vector<56x128xf32> -> vector<56x128xf32>
    %c0_3 = arith.constant 0 : index
    %c0_4 = arith.constant 0 : index
    %3 = vector.load %arg2[%c0_3, %c0_4] : memref<56x1024xbf16, #tpu.memory_space<vmem>>, vector<56x1024xbf16>
    %cst_5 = arith.constant dense<0.000000e+00> : vector<56x128xf32>
    %4 = tpu.matmul %3, %0, %cst_5 {dimension_numbers = #tpu.dot_dimension_numbers<[1], [0], [0], [1], [0, 0, 1, 1], [], []>} : vector<56x1024xbf16>, vector<1024x128xbf16>, vector<56x128xf32> -> vector<56x128xf32>
    %c0_6 = arith.constant 0 : index
    %c0_7 = arith.constant 0 : index
    %5 = vector.load %arg3[%c0_6, %c0_7] : memref<56x1024xbf16, #tpu.memory_space<vmem>>, vector<56x1024xbf16>
    %cst_8 = arith.constant dense<0.000000e+00> : vector<56x128xf32>
    %6 = tpu.matmul %5, %0, %cst_8 {dimension_numbers = #tpu.dot_dimension_numbers<[1], [0], [0], [1], [0, 0, 1, 1], [], []>} : vector<56x1024xbf16>, vector<1024x128xbf16>, vector<56x128xf32> -> vector<56x128xf32>
    %c0_9 = arith.constant 0 : index
    %c0_10 = arith.constant 0 : index
    %7 = vector.load %arg4[%c0_9, %c0_10] : memref<56x1024xbf16, #tpu.memory_space<vmem>>, vector<56x1024xbf16>
    %cst_11 = arith.constant dense<0.000000e+00> : vector<56x128xf32>
    %8 = tpu.matmul %7, %0, %cst_11 {dimension_numbers = #tpu.dot_dimension_numbers<[1], [0], [0], [1], [0, 0, 1, 1], [], []>} : vector<56x1024xbf16>, vector<1024x128xbf16>, vector<56x128xf32> -> vector<56x128xf32>
    %9 = arith.maximumf %2, %4 : vector<56x128xf32>
    %10 = arith.maximumf %6, %8 : vector<56x128xf32>
    %11 = arith.maximumf %9, %10 : vector<56x128xf32>
    %c0_12 = arith.constant 0 : index
    %c0_13 = arith.constant 0 : index
    %12 = vector.load %arg6[%c0_12, %c0_13] : memref<1x128xf32, #tpu.memory_space<vmem>>, vector<1x128xf32>
    %13 = vector.broadcast %12 : vector<1x128xf32> to vector<56x128xf32>
    %14 = arith.addf %11, %13 : vector<56x128xf32>
    %cst_14 = arith.constant 0.000000e+00 : f32
    %15 = vector.broadcast %cst_14 : f32 to vector<56x128xf32>
    %16 = arith.maximumf %14, %15 : vector<56x128xf32>
    %17 = arith.truncf %16 : vector<56x128xf32> to vector<56x128xbf16>
    %c0_15 = arith.constant 0 : index
    %c0_16 = arith.constant 0 : index
    %18 = vector.load %arg7[%c0_15, %c0_16] : memref<56x128xbf16, #tpu.memory_space<vmem>>, vector<56x128xbf16>
    tpu.vector_store %arg7[%c0_15, %c0_16], %17 {strides = array<i32>} : memref<56x128xbf16, #tpu.memory_space<vmem>>, vector<56x128xbf16>,
    return
  }
  func.func @transform_0(%arg0: i32) -> (i32, i32) {
    %c0_i32 = arith.constant 0 : i32
    %c0_i32_0 = arith.constant 0 : i32
    return %arg0, %c0_i32 : i32, i32
  }
  func.func @transform_1(%arg0: i32) -> (i32, i32) {
    %c0_i32 = arith.constant 0 : i32
    %c0_i32_0 = arith.constant 0 : i32
    return %arg0, %c0_i32 : i32, i32
  }
  func.func @transform_2(%arg0: i32) -> (i32, i32) {
    %c0_i32 = arith.constant 0 : i32
    %c0_i32_0 = arith.constant 0 : i32
    return %arg0, %c0_i32 : i32, i32
  }
  func.func @transform_3(%arg0: i32) -> (i32, i32) {
    %c0_i32 = arith.constant 0 : i32
    %c0_i32_0 = arith.constant 0 : i32
    return %arg0, %c0_i32 : i32, i32
  }
  func.func @transform_4(%arg0: i32) -> (i32, i32) {
    %c0_i32 = arith.constant 0 : i32
    %c0_i32_0 = arith.constant 0 : i32
    %c0_i32_1 = arith.constant 0 : i32
    return %c0_i32, %c0_i32_0 : i32, i32
  }
  func.func @transform_5(%arg0: i32) -> (i32, i32) {
    %c0_i32 = arith.constant 0 : i32
    %c0_i32_0 = arith.constant 0 : i32
    %c0_i32_1 = arith.constant 0 : i32
    return %c0_i32, %c0_i32_0 : i32, i32
  }
  func.func @transform_6(%arg0: i32) -> (i32, i32) {
    %c0_i32 = arith.constant 0 : i32
    %c0_i32_0 = arith.constant 0 : i32
    return %arg0, %c0_i32 : i32, i32
  }
}

module attributes {stable_mosaic.version = 11 : i64} {
  func.func @_mlp_kernel(%arg0: i32, %arg1: memref<8x3200xbf16, #tpu.memory_space<vmem>>, %arg2: memref<3200x128xbf16, #tpu.memory_space<vmem>>, %arg3: memref<1x128xf32, #tpu.memory_space<vmem>>, %arg4: memref<128x128xbf16, #tpu.memory_space<vmem>>, %arg5: memref<1x128xf32, #tpu.memory_space<vmem>>, %arg6: memref<128x128xbf16, #tpu.memory_space<vmem>>, %arg7: memref<1x128xf32, #tpu.memory_space<vmem>>, %arg8: memref<8x128xf32, #tpu.memory_space<vmem>>) attributes {dimension_semantics = [#tpu.dimension_semantics<parallel>], iteration_bounds = array<i64: 1>, scalar_prefetch = 0 : i64, scratch_operands = 0 : i64, tpu.core_type = #tpu.core_type<tc>, window_params = [{transform_indices = @transform_0, window_bounds = array<i64: 8, 3200>}, {pipeline_mode = #tpu.pipeline_mode<synchronous>, transform_indices = @transform_1, window_bounds = array<i64: 3200, 128>}, {pipeline_mode = #tpu.pipeline_mode<synchronous>, transform_indices = @transform_2, window_bounds = array<i64: 1, 128>}, {pipeline_mode = #tpu.pipeline_mode<synchronous>, transform_indices = @transform_3, window_bounds = array<i64: 128, 128>}, {pipeline_mode = #tpu.pipeline_mode<synchronous>, transform_indices = @transform_4, window_bounds = array<i64: 1, 128>}, {pipeline_mode = #tpu.pipeline_mode<synchronous>, transform_indices = @transform_5, window_bounds = array<i64: 128, 128>}, {pipeline_mode = #tpu.pipeline_mode<synchronous>, transform_indices = @transform_6, window_bounds = array<i64: 1, 128>}, {transform_indices = @transform_7, window_bounds = array<i64: 8, 128>}]} {
    %c0 = arith.constant 0 : index
    %c0_0 = arith.constant 0 : index
    %0 = vector.load %arg1[%c0, %c0_0] : memref<8x3200xbf16, #tpu.memory_space<vmem>>, vector<8x3200xbf16>
    %c0_1 = arith.constant 0 : index
    %c0_2 = arith.constant 0 : index
    %1 = vector.load %arg2[%c0_1, %c0_2] : memref<3200x128xbf16, #tpu.memory_space<vmem>>, vector<3200x128xbf16>
    %cst = arith.constant dense<0.000000e+00> : vector<8x128xf32>
    %2 = tpu.matmul %0, %1, %cst {dimension_numbers = #tpu.dot_dimension_numbers<[1], [0], [0], [1], [0, 0, 1, 1], [], []>} : vector<8x3200xbf16>, vector<3200x128xbf16>, vector<8x128xf32> -> vector<8x128xf32>
    %c0_3 = arith.constant 0 : index
    %c0_4 = arith.constant 0 : index
    %3 = vector.load %arg3[%c0_3, %c0_4] : memref<1x128xf32, #tpu.memory_space<vmem>>, vector<1x128xf32>
    %4 = vector.broadcast %3 : vector<1x128xf32> to vector<8x128xf32>
    %5 = arith.addf %2, %4 : vector<8x128xf32>
    %cst_5 = arith.constant 0.000000e+00 : f32
    %6 = vector.broadcast %cst_5 : f32 to vector<8x128xf32>
    %7 = arith.maximumf %5, %6 : vector<8x128xf32>
    %8 = arith.truncf %7 : vector<8x128xf32> to vector<8x128xbf16>
    %c0_6 = arith.constant 0 : index
    %c0_7 = arith.constant 0 : index
    %9 = vector.load %arg4[%c0_6, %c0_7] : memref<128x128xbf16, #tpu.memory_space<vmem>>, vector<128x128xbf16>
    %cst_8 = arith.constant dense<0.000000e+00> : vector<8x128xf32>
    %10 = tpu.matmul %8, %9, %cst_8 {dimension_numbers = #tpu.dot_dimension_numbers<[1], [0], [0], [1], [0, 0, 1, 1], [], []>} : vector<8x128xbf16>, vector<128x128xbf16>, vector<8x128xf32> -> vector<8x128xf32>
    %c0_9 = arith.constant 0 : index
    %c0_10 = arith.constant 0 : index
    %11 = vector.load %arg5[%c0_9, %c0_10] : memref<1x128xf32, #tpu.memory_space<vmem>>, vector<1x128xf32>
    %12 = vector.broadcast %11 : vector<1x128xf32> to vector<8x128xf32>
    %13 = arith.addf %10, %12 : vector<8x128xf32>
    %cst_11 = arith.constant 0.000000e+00 : f32
    %14 = vector.broadcast %cst_11 : f32 to vector<8x128xf32>
    %15 = arith.maximumf %13, %14 : vector<8x128xf32>
    %16 = arith.truncf %15 : vector<8x128xf32> to vector<8x128xbf16>
    %c0_12 = arith.constant 0 : index
    %c0_13 = arith.constant 0 : index
    %17 = vector.load %arg6[%c0_12, %c0_13] : memref<128x128xbf16, #tpu.memory_space<vmem>>, vector<128x128xbf16>
    %cst_14 = arith.constant dense<0.000000e+00> : vector<8x128xf32>
    %18 = tpu.matmul %16, %17, %cst_14 {dimension_numbers = #tpu.dot_dimension_numbers<[1], [0], [0], [1], [0, 0, 1, 1], [], []>} : vector<8x128xbf16>, vector<128x128xbf16>, vector<8x128xf32> -> vector<8x128xf32>
    %c0_15 = arith.constant 0 : index
    %c0_16 = arith.constant 0 : index
    %19 = vector.load %arg7[%c0_15, %c0_16] : memref<1x128xf32, #tpu.memory_space<vmem>>, vector<1x128xf32>
    %20 = vector.broadcast %19 : vector<1x128xf32> to vector<8x128xf32>
    %21 = arith.addf %18, %20 : vector<8x128xf32>
    %c0_17 = arith.constant 0 : index
    %c0_18 = arith.constant 0 : index
    %22 = vector.load %arg8[%c0_17, %c0_18] : memref<8x128xf32, #tpu.memory_space<vmem>>, vector<8x128xf32>
    tpu.vector_store %arg8[%c0_17, %c0_18], %21 {strides = array<i32>} : memref<8x128xf32, #tpu.memory_space<vmem>>, vector<8x128xf32>,
    return
  }
  func.func @transform_0(%arg0: i32) -> (i32, i32) {
    %c0_i32 = arith.constant 0 : i32
    %c0_i32_0 = arith.constant 0 : i32
    return %arg0, %c0_i32 : i32, i32
  }
  func.func @transform_1(%arg0: i32) -> (i32, i32) {
    %c0_i32 = arith.constant 0 : i32
    %c0_i32_0 = arith.constant 0 : i32
    %c0_i32_1 = arith.constant 0 : i32
    return %c0_i32, %c0_i32_0 : i32, i32
  }
  func.func @transform_2(%arg0: i32) -> (i32, i32) {
    %c0_i32 = arith.constant 0 : i32
    %c0_i32_0 = arith.constant 0 : i32
    %c0_i32_1 = arith.constant 0 : i32
    return %c0_i32, %c0_i32_0 : i32, i32
  }
  func.func @transform_3(%arg0: i32) -> (i32, i32) {
    %c0_i32 = arith.constant 0 : i32
    %c0_i32_0 = arith.constant 0 : i32
    %c0_i32_1 = arith.constant 0 : i32
    return %c0_i32, %c0_i32_0 : i32, i32
  }
  func.func @transform_4(%arg0: i32) -> (i32, i32) {
    %c0_i32 = arith.constant 0 : i32
    %c0_i32_0 = arith.constant 0 : i32
    %c0_i32_1 = arith.constant 0 : i32
    return %c0_i32, %c0_i32_0 : i32, i32
  }
  func.func @transform_5(%arg0: i32) -> (i32, i32) {
    %c0_i32 = arith.constant 0 : i32
    %c0_i32_0 = arith.constant 0 : i32
    %c0_i32_1 = arith.constant 0 : i32
    return %c0_i32, %c0_i32_0 : i32, i32
  }
  func.func @transform_6(%arg0: i32) -> (i32, i32) {
    %c0_i32 = arith.constant 0 : i32
    %c0_i32_0 = arith.constant 0 : i32
    %c0_i32_1 = arith.constant 0 : i32
    return %c0_i32, %c0_i32_0 : i32, i32
  }
  func.func @transform_7(%arg0: i32) -> (i32, i32) {
    %c0_i32 = arith.constant 0 : i32
    %c0_i32_0 = arith.constant 0 : i32
    return %arg0, %c0_i32 : i32, i32
  }
}

</mosaic_0001>

<bundles_post_ra>
// kernel: cnn_forward.3
= control target key start
LH: loop header
LB: loop body
LE: loop exit
PB: predicated region body
PF: predicated region fallthrough
CT: control target
= control target key end

     0   :  { %s2621_s21 = smov 0   ;;  %s3163_s0 = inlined_call_operand.vmem [shape: bf16[512,128], index: 0, kind: input, shape index: {}]   ;;  %s3164_s1 = inlined_call_operand.vmem [shape: bf16[512,128], index: 1, kind: input, shape index: {}]   ;;  %s3165_s2 = inlined_call_operand.vmem [shape: bf16[512,128], index: 2, kind: input, shape index: {}]   ;;  %s3166_s3 = inlined_call_operand.vmem [shape: bf16[512,128], index: 3, kind: input, shape index: {}]   ;;  %s3167_s4 = inlined_call_operand.vmem [shape: bf16[128,128], index: 4, kind: input, shape index: {}]   ;;  %s3168_s5 = inlined_call_operand.vmem [shape: f32[1,128], index: 5, kind: input, shape index: {}]   ;;  %s3169_s6 = inlined_call_operand.vmem [shape: bf16[512,128], index: 6, kind: output, shape index: {}]  }
   0x1 LB: > { %s1961_s22 = sadd.s32 4294967295, %s2584_s21   ;;  %p1965_p0 = scmp.ge.s32.totalorder %s2584_s21, 1  ;;  %s2584_s21 = sphi %s2621_s21, %s16_s21  }
   0x2   : > { %p246_p1 = scmp.lt.s32.totalorder %s2584_s21, 3 }
   0x4   : > { %p247_p2 = pnand %p1965_p0, %p246_p1 }
   0x6   : > { %250 = sbr.rel (%p247_p2) target bundleno = 374 (0x176), region = 44 }
   0xb   : > { %v2506_v0 = vld [vmem:[%s3167_s4 + $0x38] sm:$0xff]   ;;  %s1966_s25 = sshll.u32 %s1961_s22, 5  ;;  %v2635_v1 = vld [vmem:[%s3167_s4 + $0x30] sm:$0xff]   ;;  %v2642_v2 = vld [vmem:[%s3167_s4 + $0x28] sm:$0xff]  }
   0xc   : > { %p292_p3 = scmp.lt.s32.totalorder %s1966_s25, 63  ;;  %2306 = vmatprep.subr.bf16.mxu0 %v2506_v0  ;;  %2354 = vmatprep.subr.bf16.mxu1 %v2506_v0  ;;  %v2663_v3 = vld [vmem:[%s3167_s4 + $0x20] sm:$0xff]   ;;  %v2676_v6 = vld [vmem:[%s3167_s4 + $0x18] sm:$0xff]   ;;  %v2685_v7 = vld [vmem:[%s3167_s4 + $0x10] sm:$0xff]  }
   0xd   : > { %2307 = vmatpush3.bf16.msra.mxu0 %v2506_v0  ;;  %2355 = vmatpush3.bf16.msra.mxu1 %v2506_v0  ;;  %v2694_v8 = vld [vmem:[%s3167_s4 + $0x8] sm:$0xff]   ;;  %v2703_v9 = vld [vmem:[%s3167_s4] sm:$0xff]  }
   0xe   : > { %s3254_s25 = smov (!%p292_p3, %s1966_s25), 63  ;;  %2308 = vmatprep.subr.bf16.mxu0 %v2635_v1  ;;  %2356 = vmatprep.subr.bf16.mxu1 %v2635_v1 }
   0xf   : > { %s2644_s30 = sshll.u32 %s3254_s25, 2 }
  0x10   : > { %s2650_s9 = scalar_lea.vmem %s3163_s0, %s2644_s30  ;;  %s2656_s12 = scalar_lea.vmem %s3164_s1, %s2644_s30 }
  0x11   : > { %2309 = vmatpush3.bf16.msra.mxu0 %v2635_v1  ;;  %2357 = vmatpush3.bf16.msra.mxu1 %v2635_v1  ;;  %v2514_v4 = vld [vmem:[%s2650_s9] sm:$0xff]   ;;  %v2516_v10 = vld [vmem:[%s2650_s9 + $0x8] sm:$0xff]   ;;  %v2518_v12 = vld [vmem:[%s2650_s9 + $0x10] sm:$0xff]   ;;  %s2727_s26 = scalar_lea.vmem %s3165_s2, %s2644_s30  ;;  %s2735_s29 = scalar_lea.vmem %s3166_s3, %s2644_s30 }
  0x12   : > { %2310 = vmatprep.subr.bf16.mxu0 %v2642_v2  ;;  %2358 = vmatprep.subr.bf16.mxu1 %v2642_v2  ;;  %v2515_v5 = vld [vmem:[%s2656_s12] sm:$0xff]   ;;  %v2517_v11 = vld [vmem:[%s2656_s12 + $0x8] sm:$0xff]   ;;  %v2519_v13 = vld [vmem:[%s2656_s12 + $0x10] sm:$0xff]   ;;  %s3030_s11 = scalar_lea.vmem %s3169_s6, %s2644_s30 }
  0x13   : > { %2322 = vmatprep.mubr.bf16.mxu0 %v2514_v4  ;;  %2370 = vmatprep.mubr.bf16.mxu1 %v2515_v5  ;;  %v2520_v14 = vld [vmem:[%s2650_s9 + $0x18] sm:$0xff]   ;;  %v2522_v16 = vld [vmem:[%s2650_s9 + $0x20] sm:$0xff]   ;;  %v2524_v18 = vld [vmem:[%s2650_s9 + $0x28] sm:$0xff]  }
  0x14   : > { %v2521_v15 = vld [vmem:[%s2656_s12 + $0x18] sm:$0xff]   ;;  %v2523_v17 = vld [vmem:[%s2656_s12 + $0x20] sm:$0xff]   ;;  %v2525_v19 = vld [vmem:[%s2656_s12 + $0x28] sm:$0xff]  }
  0x15   : > { %2311 = vmatpush3.bf16.msra.mxu0 %v2642_v2  ;;  %2359 = vmatpush3.bf16.msra.mxu1 %v2642_v2  ;;  %v2526_v20 = vld [vmem:[%s2650_s9 + $0x30] sm:$0xff]   ;;  %v2528_v22 = vld [vmem:[%s2650_s9 + $0x38] sm:$0xff]   ;;  %v2530_v24 = vld [vmem:[%s2650_s9 + $0x40] sm:$0xff]  }
  0x16   : > { %2312 = vmatprep.subr.bf16.mxu0 %v2663_v3  ;;  %2360 = vmatprep.subr.bf16.mxu1 %v2663_v3  ;;  %v2527_v21 = vld [vmem:[%s2656_s12 + $0x30] sm:$0xff]   ;;  %v2529_v23 = vld [vmem:[%s2656_s12 + $0x38] sm:$0xff]   ;;  %v2531_v25 = vld [vmem:[%s2656_s12 + $0x40] sm:$0xff]  }
  0x17   : > { %v2532_v26 = vld [vmem:[%s2650_s9 + $0x48] sm:$0xff]   ;;  %v2534_v28 = vld [vmem:[%s2650_s9 + $0x50] sm:$0xff]   ;;  %v2536_v30 = vld [vmem:[%s2650_s9 + $0x58] sm:$0xff]  }
  0x18   : > { %v2533_v27 = vld [vmem:[%s2656_s12 + $0x48] sm:$0xff]   ;;  %v2535_v29 = vld [vmem:[%s2656_s12 + $0x50] sm:$0xff]   ;;  %v2537_v31 = vld [vmem:[%s2656_s12 + $0x58] sm:$0xff]  }
  0x19   : > { %2313 = vmatpush3.bf16.msra.mxu0 %v2663_v3  ;;  %2361 = vmatpush3.bf16.msra.mxu1 %v2663_v3  ;;  %v2538_v32 = vld [vmem:[%s2650_s9 + $0x60] sm:$0xff]   ;;  %v2540_v34 = vld [vmem:[%s2650_s9 + $0x68] sm:$0xff]   ;;  %v2542_v36 = vld [vmem:[%s2650_s9 + $0x70] sm:$0xff]  }
  0x1a   : > { %2314 = vmatprep.subr.bf16.mxu0 %v2676_v6  ;;  %2362 = vmatprep.subr.bf16.mxu1 %v2676_v6  ;;  %v2539_v33 = vld [vmem:[%s2656_s12 + $0x60] sm:$0xff]   ;;  %v2541_v35 = vld [vmem:[%s2656_s12 + $0x68] sm:$0xff]   ;;  %v2543_v37 = vld [vmem:[%s2656_s12 + $0x70] sm:$0xff]  }
  0x1b   : > { %v2544_v38 = vld [vmem:[%s2650_s9 + $0x78] sm:$0xff]   ;;  %v2546_v40 = vld [vmem:[%s2727_s26] sm:$0xff]   ;;  %v2548_v42 = vld [vmem:[%s2727_s26 + $0x8] sm:$0xff]  }
  0x1c   : > { %v2545_v39 = vld [vmem:[%s2656_s12 + $0x78] sm:$0xff]   ;;  %v2547_v41 = vld [vmem:[%s2735_s29] sm:$0xff]   ;;  %v2549_v43 = vld [vmem:[%s2735_s29 + $0x8] sm:$0xff]  }
  0x1d   : > { %2315 = vmatpush3.bf16.msra.mxu0 %v2676_v6  ;;  %2363 = vmatpush3.bf16.msra.mxu1 %v2676_v6  ;;  %v2550_v44 = vld [vmem:[%s2727_s26 + $0x10] sm:$0xff]   ;;  %v2552_v46 = vld [vmem:[%s2727_s26 + $0x18] sm:$0xff]   ;;  %v2554_v48 = vld [vmem:[%s2727_s26 + $0x20] sm:$0xff]  }
  0x1e   : > { %2316 = vmatprep.subr.bf16.mxu0 %v2685_v7  ;;  %2364 = vmatprep.subr.bf16.mxu1 %v2685_v7  ;;  %v2551_v45 = vld [vmem:[%s2735_s29 + $0x10] sm:$0xff]   ;;  %v2553_v47 = vld [vmem:[%s2735_s29 + $0x18] sm:$0xff]   ;;  %v2555_v49 = vld [vmem:[%s2735_s29 + $0x20] sm:$0xff]  }
  0x1f   : > { %v2556_v50 = vld [vmem:[%s2727_s26 + $0x28] sm:$0xff]   ;;  %v2558_v52 = vld [vmem:[%s2727_s26 + $0x30] sm:$0xff]   ;;  %v2560_v54 = vld [vmem:[%s2727_s26 + $0x38] sm:$0xff]  }
  0x20   : > { %v2557_v51 = vld [vmem:[%s2735_s29 + $0x28] sm:$0xff]   ;;  %v2559_v53 = vld [vmem:[%s2735_s29 + $0x30] sm:$0xff]   ;;  %v2561_v55 = vld [vmem:[%s2735_s29 + $0x38] sm:$0xff]  }
  0x21   : > { %2317 = vmatpush3.bf16.msra.mxu0 %v2685_v7  ;;  %2365 = vmatpush3.bf16.msra.mxu1 %v2685_v7  ;;  %v2562_v56 = vld [vmem:[%s2727_s26 + $0x40] sm:$0xff]   ;;  %v2564_v58 = vld [vmem:[%s2727_s26 + $0x48] sm:$0xff]   ;;  %v2566_v60 = vld [vmem:[%s2727_s26 + $0x50] sm:$0xff]  }
  0x22   : > { %2318 = vmatprep.subr.bf16.mxu0 %v2694_v8  ;;  %2366 = vmatprep.subr.bf16.mxu1 %v2694_v8  ;;  %v2563_v57 = vld [vmem:[%s2735_s29 + $0x40] sm:$0xff]   ;;  %v2565_v59 = vld [vmem:[%s2735_s29 + $0x48] sm:$0xff]   ;;  %v2567_v61 = vld [vmem:[%s2735_s29 + $0x50] sm:$0xff]  }
  0x23   : > { %v2568_v62 = vld [vmem:[%s2727_s26 + $0x58] sm:$0xff]   ;;  %v2574_v4 = vld [vmem:[%s2727_s26 + $0x70] sm:$0xff]  }
  0x24   : > { %v2569_v63 = vld [vmem:[%s2735_s29 + $0x58] sm:$0xff]   ;;  %v2575_v5 = vld [vmem:[%s2735_s29 + $0x70] sm:$0xff]  }
  0x25   : > { %2319 = vmatpush3.bf16.msra.mxu0 %v2694_v8  ;;  %2367 = vmatpush3.bf16.msra.mxu1 %v2694_v8 }
  0x26   : > { %2320 = vmatprep.subr.bf16.mxu0 %v2703_v9  ;;  %2368 = vmatprep.subr.bf16.mxu1 %v2703_v9 }
  0x29   : > { %2321 = vmatpush3.bf16.msra.mxu0 %v2703_v9  ;;  %2369 = vmatpush3.bf16.msra.mxu1 %v2703_v9 }
  0x2a   : > { %2402 = vmatprep.subr.bf16.mxu0 %v2506_v0  ;;  %2450 = vmatprep.subr.bf16.mxu1 %v2506_v0 }
  0x2c   : > { %2323 = vmatmul.mubr.bf16.vlgmr.msra.gmra.mxu0 %v2516_v10  ;;  %2371 = vmatmul.mubr.bf16.vlgmr.msra.gmra.mxu1 %v2517_v11 }
  0x2d   : > { %2403 = vmatpush3.bf16.msra.mxu0 %v2506_v0  ;;  %2451 = vmatpush3.bf16.msra.mxu1 %v2506_v0  ;;  %v2570_v0 = vld [vmem:[%s2727_s26 + $0x60] sm:$0xff]  }
  0x2e   : > { %2326 = vmatprep.mubr.bf16.mxu0 %v2518_v12  ;;  %2374 = vmatprep.mubr.bf16.mxu1 %v2519_v13 }
  0x2f   : > { %2404 = vmatprep.subr.bf16.mxu0 %v2635_v1  ;;  %2452 = vmatprep.subr.bf16.mxu1 %v2635_v1 }
  0x31   : > { %2405 = vmatpush3.bf16.msra.mxu0 %v2635_v1  ;;  %2453 = vmatpush3.bf16.msra.mxu1 %v2635_v1  ;;  %v2571_v1 = vld [vmem:[%s2735_s29 + $0x60] sm:$0xff]  }
  0x32   : > { %2406 = vmatprep.subr.bf16.mxu0 %v2642_v2  ;;  %2454 = vmatprep.subr.bf16.mxu1 %v2642_v2 }
  0x34   : > { %2327 = vmatmul.mubr.bf16.gmra.mxu0 %v2520_v14  ;;  %2375 = vmatmul.mubr.bf16.gmra.mxu1 %v2521_v15 }
  0x35   : > { %2330 = vmatprep.mubr.bf16.mxu0 %v2522_v16  ;;  %2378 = vmatprep.mubr.bf16.mxu1 %v2523_v17 }
  0x36   : > { %2407 = vmatpush3.bf16.msra.mxu0 %v2642_v2  ;;  %2455 = vmatpush3.bf16.msra.mxu1 %v2642_v2  ;;  %v2572_v2 = vld [vmem:[%s2727_s26 + $0x68] sm:$0xff]  }
  0x37   : > { %2408 = vmatprep.subr.bf16.mxu0 %v2663_v3  ;;  %2456 = vmatprep.subr.bf16.mxu1 %v2663_v3 }
  0x3a   : > { %2409 = vmatpush3.bf16.msra.mxu0 %v2663_v3  ;;  %2457 = vmatpush3.bf16.msra.mxu1 %v2663_v3  ;;  %v2573_v3 = vld [vmem:[%s2735_s29 + $0x68] sm:$0xff]  }
  0x3b   : > { %2410 = vmatprep.subr.bf16.mxu0 %v2676_v6  ;;  %2458 = vmatprep.subr.bf16.mxu1 %v2676_v6 }
  0x3c   : > { %2331 = vmatmul.mubr.bf16.gmra.mxu0 %v2524_v18  ;;  %2379 = vmatmul.mubr.bf16.gmra.mxu1 %v2525_v19 }
  0x3d   : > { %2334 = vmatprep.mubr.bf16.mxu0 %v2526_v20  ;;  %2382 = vmatprep.mubr.bf16.mxu1 %v2527_v21 }
  0x3e   : > { %2411 = vmatpush3.bf16.msra.mxu0 %v2676_v6  ;;  %2459 = vmatpush3.bf16.msra.mxu1 %v2676_v6  ;;  %v2576_v6 = vld [vmem:[%s2727_s26 + $0x78] sm:$0xff]  }
  0x3f   : > { %2412 = vmatprep.subr.bf16.mxu0 %v2685_v7  ;;  %2460 = vmatprep.subr.bf16.mxu1 %v2685_v7 }
  0x42   : > { %2413 = vmatpush3.bf16.msra.mxu0 %v2685_v7  ;;  %2461 = vmatpush3.bf16.msra.mxu1 %v2685_v7  ;;  %v2577_v7 = vld [vmem:[%s2735_s29 + $0x78] sm:$0xff]  }
  0x43   : > { %2414 = vmatprep.subr.bf16.mxu0 %v2694_v8  ;;  %2462 = vmatprep.subr.bf16.mxu1 %v2694_v8 }
  0x44   : > { %2335 = vmatmul.mubr.bf16.gmra.mxu0 %v2528_v22  ;;  %2383 = vmatmul.mubr.bf16.gmra.mxu1 %v2529_v23 }
  0x45   : > { %2338 = vmatprep.mubr.bf16.mxu0 %v2530_v24  ;;  %2386 = vmatprep.mubr.bf16.mxu1 %v2531_v25 }
  0x46   : > { %2415 = vmatpush3.bf16.msra.mxu0 %v2694_v8  ;;  %2463 = vmatpush3.bf16.msra.mxu1 %v2694_v8 }
  0x47   : > { %2416 = vmatprep.subr.bf16.mxu0 %v2703_v9  ;;  %2464 = vmatprep.subr.bf16.mxu1 %v2703_v9 }
  0x4a   : > { %2417 = vmatpush3.bf16.msra.mxu0 %v2703_v9  ;;  %2465 = vmatpush3.bf16.msra.mxu1 %v2703_v9 }
  0x4c   : > { %2339 = vmatmul.mubr.bf16.gmra.mxu0 %v2532_v26  ;;  %2387 = vmatmul.mubr.bf16.gmra.mxu1 %v2533_v27 }
  0x4d   : > { %2342 = vmatprep.mubr.bf16.mxu0 %v2534_v28  ;;  %2390 = vmatprep.mubr.bf16.mxu1 %v2535_v29 }
  0x54   : > { %2343 = vmatmul.mubr.bf16.gmra.mxu0 %v2536_v30  ;;  %2391 = vmatmul.mubr.bf16.gmra.mxu1 %v2537_v31 }
  0x55   : > { %2346 = vmatprep.mubr.bf16.mxu0 %v2538_v32  ;;  %2394 = vmatprep.mubr.bf16.mxu1 %v2539_v33 }
  0x5c   : > { %2347 = vmatmul.mubr.bf16.gmra.mxu0 %v2540_v34  ;;  %2395 = vmatmul.mubr.bf16.gmra.mxu1 %v2541_v35 }
  0x5d   : > { %2350 = vmatprep.mubr.bf16.mxu0 %v2542_v36  ;;  %2398 = vmatprep.mubr.bf16.mxu1 %v2543_v37 }
  0x64   : > { %2351 = vmatmul.mubr.bf16.gmra.mxu0 %v2544_v38  ;;  %2399 = vmatmul.mubr.bf16.gmra.mxu1 %v2545_v39 }
  0x65   : > { %2418 = vmatprep.mubr.bf16.mxu0 %v2546_v40  ;;  %2466 = vmatprep.mubr.bf16.mxu1 %v2547_v41 }
  0x6c   : > { %2419 = vmatmul.mubr.bf16.vlgmr.msra.gmra.mxu0 %v2548_v42  ;;  %2467 = vmatmul.mubr.bf16.vlgmr.msra.gmra.mxu1 %v2549_v43 }
  0x6d   : > { %2422 = vmatprep.mubr.bf16.mxu0 %v2550_v44  ;;  %2470 = vmatprep.mubr.bf16.mxu1 %v2551_v45 }
  0x74   : > { %2423 = vmatmul.mubr.bf16.gmra.mxu0 %v2552_v46  ;;  %2471 = vmatmul.mubr.bf16.gmra.mxu1 %v2553_v47 }
  0x75   : > { %2426 = vmatprep.mubr.bf16.mxu0 %v2554_v48  ;;  %2474 = vmatprep.mubr.bf16.mxu1 %v2555_v49 }
  0x7c   : > { %2427 = vmatmul.mubr.bf16.gmra.mxu0 %v2556_v50  ;;  %2475 = vmatmul.mubr.bf16.gmra.mxu1 %v2557_v51 }
  0x7d   : > { %2430 = vmatprep.mubr.bf16.mxu0 %v2558_v52  ;;  %2478 = vmatprep.mubr.bf16.mxu1 %v2559_v53 }
  0x84   : > { %2431 = vmatmul.mubr.bf16.gmra.mxu0 %v2560_v54  ;;  %2479 = vmatmul.mubr.bf16.gmra.mxu1 %v2561_v55 }
  0x85   : > { %2434 = vmatprep.mubr.bf16.mxu0 %v2562_v56  ;;  %2482 = vmatprep.mubr.bf16.mxu1 %v2563_v57 }
  0x8c   : > { %2435 = vmatmul.mubr.bf16.gmra.mxu0 %v2564_v58  ;;  %2483 = vmatmul.mubr.bf16.gmra.mxu1 %v2565_v59 }
  0x8d   : > { %2438 = vmatprep.mubr.bf16.mxu0 %v2566_v60  ;;  %2486 = vmatprep.mubr.bf16.mxu1 %v2567_v61 }
  0x94   : > { %2439 = vmatmul.mubr.bf16.gmra.mxu0 %v2568_v62  ;;  %2487 = vmatmul.mubr.bf16.gmra.mxu1 %v2569_v63 }
  0x95   : > { %2442 = vmatprep.mubr.bf16.mxu0 %v2570_v0  ;;  %2490 = vmatprep.mubr.bf16.mxu1 %v2571_v1  ;;  %v3011_v0 = vld [vmem:[%s3168_s5] ss:$0 sm:$0xff] }
  0x9c   : > { %2443 = vmatmul.mubr.bf16.gmra.mxu0 %v2572_v2  ;;  %2491 = vmatmul.mubr.bf16.gmra.mxu1 %v2573_v3 }
  0x9d   : > { %2446 = vmatprep.mubr.bf16.mxu0 %v2574_v4  ;;  %2494 = vmatprep.mubr.bf16.mxu1 %v2575_v5 }
  0xa4   : > { %2447 = vmatmul.mubr.bf16.gmra.mxu0 %v2576_v6  ;;  %2495 = vmatmul.mubr.bf16.gmra.mxu1 %v2577_v7 }
  0xec   : > { %v2813_v8 = vpop.f32.mrf.mxu0  ;;  %v2815_v9 = vpop.f32.mrf.mxu1 }
  0xed   : > { %v3204_v6 = vmax.f32 %v2813_v8, %v2815_v9 }
  0xee   : > { %v2819_v11 = vpop.f32.mrf.mxu0  ;;  %v2821_v12 = vpop.f32.mrf.mxu1 }
  0xef   : > { %v3205_v3 = vmax.f32 %v2819_v11, %v2821_v12 }
  0xf0   : > { %v2825_v14 = vpop.f32.mrf.mxu0  ;;  %v2827_v15 = vpop.f32.mrf.mxu1 }
  0xf1   : > { %v3206_v8 = vmax.f32 %v2825_v14, %v2827_v15 }
  0xf2   : > { %v2831_v17 = vpop.f32.mrf.mxu0  ;;  %v2833_v18 = vpop.f32.mrf.mxu1 }
  0xf3   : > { %v3207_v11 = vmax.f32 %v2831_v17, %v2833_v18 }
  0xf4   : > { %v2837_v20 = vpop.f32.mrf.mxu0  ;;  %v2839_v21 = vpop.f32.mrf.mxu1 }
  0xf5   : > { %v3208_v15 = vmax.f32 %v2837_v20, %v2839_v21 }
  0xf6   : > { %v2843_v23 = vpop.f32.mrf.mxu0  ;;  %v2845_v24 = vpop.f32.mrf.mxu1 }
  0xf8   : > { %v2849_v26 = vpop.f32.mrf.mxu0  ;;  %v2851_v27 = vpop.f32.mrf.mxu1 }
  0xf9   : > { %v3210_v21 = vmax.f32 %v2849_v26, %v2851_v27 }
  0xfa   : > { %v2855_v29 = vpop.f32.mrf.mxu0  ;;  %v2857_v30 = vpop.f32.mrf.mxu1 }
  0xfc   : > { %v2861_v32 = vpop.f32.mrf.mxu0  ;;  %v2863_v33 = vpop.f32.mrf.mxu1 }
  0xfd   : > { %v3212_v26 = vmax.f32 %v2861_v32, %v2863_v33 }
  0xfe   : > { %v2867_v35 = vpop.f32.mrf.mxu0  ;;  %v2869_v36 = vpop.f32.mrf.mxu1 }
 0x100   : > { %v2873_v38 = vpop.f32.mrf.mxu0  ;;  %v2875_v39 = vpop.f32.mrf.mxu1 }
 0x101   : > { %v3214_v33 = vmax.f32 %v2873_v38, %v2875_v39 }
 0x102   : > { %v2879_v41 = vpop.f32.mrf.mxu0  ;;  %v2881_v42 = vpop.f32.mrf.mxu1 }
 0x104   : > { %v2885_v44 = vpop.f32.mrf.mxu0  ;;  %v2887_v45 = vpop.f32.mrf.mxu1 }
 0x105   : > { %v3216_v39 = vmax.f32 %v2885_v44, %v2887_v45 }
 0x106   : > { %v2891_v47 = vpop.f32.mrf.mxu0  ;;  %v2893_v48 = vpop.f32.mrf.mxu1 }
 0x108   : > { %v2897_v50 = vpop.f32.mrf.mxu0  ;;  %v2899_v51 = vpop.f32.mrf.mxu1 }
 0x109   : > { %v3218_v45 = vmax.f32 %v2897_v50, %v2899_v51 }
 0x10a   : > { %v2903_v53 = vpop.f32.mrf.mxu0  ;;  %v2905_v54 = vpop.f32.mrf.mxu1 }
 0x10c   : > { %v2909_v56 = vpop.f32.mrf.mxu0  ;;  %v2911_v57 = vpop.f32.mrf.mxu1 }
 0x10e   : > { %v2915_v59 = vpop.f32.mrf.mxu0  ;;  %v2917_v60 = vpop.f32.mrf.mxu1 }
 0x110   : > { %v2921_v62 = vpop.f32.mrf.mxu0  ;;  %v2923_v63 = vpop.f32.mrf.mxu1 }
 0x112   : > { %v2927_v1 = vpop.f32.mrf.mxu0  ;;  %v2929_v2 = vpop.f32.mrf.mxu1 }
 0x114   : > { %v2933_v4 = vpop.f32.mrf.mxu0  ;;  %v2935_v5 = vpop.f32.mrf.mxu1 }
 0x116   : > { %v2939_v7 = vpop.f32.mrf.mxu0  ;;  %v2941_v61 = vpop.f32.mrf.mxu1 }
 0x118   : > { %v2945_v58 = vpop.f32.mrf.mxu0  ;;  %v2947_v55 = vpop.f32.mrf.mxu1 }
 0x11a   : > { %v2951_v52 = vpop.f32.mrf.mxu0  ;;  %v2953_v49 = vpop.f32.mrf.mxu1 }
 0x11b   : > { %3187 = vst [vmem:[#allocation2_spill] sm:$0xff] %v2953_v49 }
 0x11c   : > { %v2957_v46 = vpop.f32.mrf.mxu0  ;;  %v2959_v43 = vpop.f32.mrf.mxu1 }
 0x11d   : > { %3188 = vst [vmem:[#allocation3_spill] sm:$0xff] %v2957_v46  ;;  %3189 = vst [vmem:[#allocation4_spill] sm:$0xff] %v2959_v43 }
 0x11e   : > { %v2963_v40 = vpop.f32.mrf.mxu0  ;;  %v2965_v37 = vpop.f32.mrf.mxu1 }
 0x11f   : > { %3190 = vst [vmem:[#allocation5_spill] sm:$0xff] %v2963_v40  ;;  %3191 = vst [vmem:[#allocation6_spill] sm:$0xff] %v2965_v37 }
 0x120   : > { %v2969_v34 = vpop.f32.mrf.mxu0  ;;  %v2971_v31 = vpop.f32.mrf.mxu1 }
 0x121   : > { %3192 = vst [vmem:[#allocation7_spill] sm:$0xff] %v2969_v34  ;;  %3193 = vst [vmem:[#allocation8_spill] sm:$0xff] %v2971_v31 }
 0x122   : > { %v2975_v28 = vpop.f32.mrf.mxu0  ;;  %v2977_v25 = vpop.f32.mrf.mxu1 }
 0x123   : > { %3194 = vst [vmem:[#allocation9_spill] sm:$0xff] %v2975_v28  ;;  %3195 = vst [vmem:[#allocation10_spill] sm:$0xff] %v2977_v25 }
 0x124   : > { %v2981_v22 = vpop.f32.mrf.mxu0  ;;  %v2983_v19 = vpop.f32.mrf.mxu1 }
 0x125   : > { %3196 = vst [vmem:[#allocation11_spill] sm:$0xff] %v2981_v22  ;;  %3197 = vst [vmem:[#allocation12_spill] sm:$0xff] %v2983_v19 }
 0x126   : > { %v2987_v16 = vpop.f32.mrf.mxu0  ;;  %v2989_v13 = vpop.f32.mrf.mxu1 }
 0x127   : > { %3198 = vst [vmem:[#allocation13_spill] sm:$0xff] %v2987_v16  ;;  %3199 = vst [vmem:[#allocation14_spill] sm:$0xff] %v2989_v13 }
 0x128   : > { %v2993_v10 = vpop.f32.mrf.mxu0  ;;  %v2995_v31 = vpop.f32.mrf.mxu1 }
 0x129   : > { %3200 = vst [vmem:[#allocation15_spill] sm:$0xff] %v2993_v10  ;;  %3201 = vst [vmem:[#allocation16_spill] sm:$0xff] %v2995_v31 }
 0x12a   : > { %v2999_v25 = vpop.f32.mrf.mxu0  ;;  %v3001_v28 = vpop.f32.mrf.mxu1 }
 0x12b   : > { %3202 = vst [vmem:[#allocation17_spill] sm:$0xff] %v2999_v25  ;;  %3203 = vst [vmem:[#allocation18_spill] sm:$0xff] %v3001_v28 }
 0x12c   : > { %v2420_v19 = vpop.f32.mrf.mxu0  ;;  %v2468_v22 = vpop.f32.mrf.mxu1 }
 0x12d   : > { %v1576_v34 = vmax.f32 %v2420_v19, %v2468_v22 }
 0x12e   : > { %v1126_v37 = vpop.f32.mrf.mxu0  ;;  %v1415_v40 = vpop.f32.mrf.mxu1 }
 0x12f   : > { %v1608_v13 = vmax.f32 %v3204_v6, %v1576_v34  ;;  %v1574_v16 = vmax.f32 %v1126_v37, %v1415_v40 }
 0x130   : > { %v2421_v31 = vpop.f32.mrf.mxu0  ;;  %v2469_v10 = vpop.f32.mrf.mxu1 }
 0x131   : > { %v1606_v28 = vmax.f32 %v3205_v3, %v1574_v16  ;;  %v1577_v25 = vmax.f32 %v2421_v31, %v2469_v10  ;;  %v1647_v43 = vadd.f32 %v3011_v0, %v1608_v13 }
 0x132   : > { %v1129_v19 = vpop.f32.mrf.mxu0  ;;  %v1418_v22 = vpop.f32.mrf.mxu1 }
 0x133   : > { %v1609_v9 = vmax.f32 %v3206_v8, %v1577_v25  ;;  %v1575_v34 = vmax.f32 %v1129_v19, %v1418_v22  ;;  %v1645_v6 = vadd.f32 %v3011_v0, %v1606_v28  ;;  %v1679_v3 = vmax.f32 %v1647_v43, 0.0 }
 0x134   : > { %v2424_v37 = vpop.f32.mrf.mxu0  ;;  %v2472_v40 = vpop.f32.mrf.mxu1 }
 0x135   : > { %v1648_v46 = vadd.f32 %v3011_v0, %v1609_v9  ;;  %v1607_v10 = vmax.f32 %v3207_v11, %v1575_v34  ;;  %v1580_v12 = vmax.f32 %v2424_v37, %v2472_v40  ;;  %v1677_v28 = vmax.f32 %v1645_v6, 0.0 }
 0x136   : > { %v1142_v16 = vpop.f32.mrf.mxu0  ;;  %v1431_v31 = vpop.f32.mrf.mxu1 }
 0x137   : > { %v1680_v13 = vmax.f32 %v1648_v46, 0.0  ;;  %v1646_v49 = vadd.f32 %v3011_v0, %v1607_v10  ;;  %v1578_v14 = vmax.f32 %v1142_v16, %v1431_v31  ;;  %v1612_v25 = vmax.f32 %v3208_v15, %v1580_v12 }
 0x138   : > { %v2425_v17 = vpop.f32.mrf.mxu0  ;;  %v2473_v18 = vpop.f32.mrf.mxu1  ;;  %v3209_v46 = vmax.f32 %v2843_v23, %v2845_v24  ;;  %v3211_v23 = vmax.f32 %v2855_v29, %v2857_v30 }
 0x139   : > { %v2123_v19 = vpack.c.bf16 %v1680_v13, %v1679_v3  ;;  %v1678_v43 = vmax.f32 %v1646_v49, 0.0  ;;  %v1581_v8 = vmax.f32 %v2425_v17, %v2473_v18  ;;  %v1651_v20 = vadd.f32 %v3011_v0, %v1612_v25 }
 0x13a   : > { %v1610_v22 = vmax.f32 %v3209_v46, %v1578_v14  ;;  %v1145_v9 = vpop.f32.mrf.mxu0  ;;  %v1434_v34 = vpop.f32.mrf.mxu1 }
 0x13b   : > { %2195 = vst [vmem:[%s3030_s11 + $0x8] sm:$0xff] %v2123_v19   ;;  %v2118_v37 = vpack.c.bf16 %v1678_v43, %v1677_v28  ;;  %v1579_v40 = vmax.f32 %v1145_v9, %v1434_v34  ;;  %v1613_v11 = vmax.f32 %v3210_v21, %v1581_v8  ;;  %v1683_v15 = vmax.f32 %v1651_v20, 0.0 }
 0x13c   : > { %v2428_v10 = vpop.f32.mrf.mxu0  ;;  %v2476_v6 = vpop.f32.mrf.mxu1  ;;  %v1649_v49 = vadd.f32 %v3011_v0, %v1610_v22  ;;  %v3213_v43 = vmax.f32 %v2867_v35, %v2869_v36  ;;  %v3215_v36 = vmax.f32 %v2879_v41, %v2881_v42 }
 0x13d   : > { %2119 = vst [vmem:[%s3030_s11] sm:$0xff] %v2118_v37   ;;  %v1611_v24 = vmax.f32 %v3211_v23, %v1579_v40  ;;  %v1584_v12 = vmax.f32 %v2428_v10, %v2476_v6  ;;  %v1652_v16 = vadd.f32 %v3011_v0, %v1613_v11 }
 0x13e   : > { %v1158_v31 = vpop.f32.mrf.mxu0  ;;  %v1447_v3 = vpop.f32.mrf.mxu1  ;;  %v1681_v29 = vmax.f32 %v1649_v49, 0.0 }
 0x13f   : > { %v1650_v13 = vadd.f32 %v3011_v0, %v1611_v24  ;;  %v1616_v27 = vmax.f32 %v3212_v26, %v1584_v12  ;;  %v1582_v14 = vmax.f32 %v1158_v31, %v1447_v3  ;;  %v1684_v25 = vmax.f32 %v1652_v16, 0.0 }
 0x140   : > { %v2429_v17 = vpop.f32.mrf.mxu0  ;;  %v2477_v18 = vpop.f32.mrf.mxu1  ;;  %v3217_v26 = vmax.f32 %v2891_v47, %v2893_v48 }
 0x141   : > { %v1682_v30 = vmax.f32 %v1650_v13, 0.0  ;;  %v1585_v28 = vmax.f32 %v2429_v17, %v2477_v18  ;;  %v2133_v19 = vpack.c.bf16 %v1684_v25, %v1683_v15  ;;  %v1614_v46 = vmax.f32 %v3213_v43, %v1582_v14 }
 0x142   : > { %v1161_v22 = vpop.f32.mrf.mxu0  ;;  %v1450_v8 = vpop.f32.mrf.mxu1  ;;  %v1655_v32 = vadd.f32 %v3011_v0, %v1616_v27 }
 0x143   : > { %v2128_v9 = vpack.c.bf16 %v1682_v30, %v1681_v29  ;;  %v1617_v34 = vmax.f32 %v3214_v33, %v1585_v28  ;;  %2197 = vst [vmem:[%s3030_s11 + $0x18] sm:$0xff] %v2133_v19   ;;  %v1583_v37 = vmax.f32 %v1161_v22, %v1450_v8  ;;  %v1653_v35 = vadd.f32 %v3011_v0, %v1614_v46 }
 0x144   : > { %v2432_v40 = vpop.f32.mrf.mxu0  ;;  %v2480_v20 = vpop.f32.mrf.mxu1  ;;  %v1687_v23 = vmax.f32 %v1655_v32, 0.0  ;;  %v3219_v19 = vmax.f32 %v2903_v53, %v2905_v54  ;;  %v3220_v33 = vmax.f32 %v2909_v56, %v2911_v57  ;;  %v3222_v56 = vmax.f32 %v2921_v62, %v2923_v63 }
 0x145   : > { %2196 = vst [vmem:[%s3030_s11 + $0x10] sm:$0xff] %v2128_v9   ;;  %v1656_v21 = vadd.f32 %v3011_v0, %v1617_v34  ;;  %v1588_v11 = vmax.f32 %v2432_v40, %v2480_v20  ;;  %v1615_v10 = vmax.f32 %v3215_v36, %v1583_v37  ;;  %v1685_v27 = vmax.f32 %v1653_v35, 0.0 }
 0x146   : > { %v1174_v6 = vpop.f32.mrf.mxu0  ;;  %v1463_v49 = vpop.f32.mrf.mxu1  ;;  %v3224_v62 = vmax.f32 %v2933_v4, %v2935_v5  ;;  %v3226_v5 = vmax.f32 %v2945_v58, %v2947_v55  ;;  %v3229_v58 = vld [vmem:[#allocation3_spill] sm:$0xff] }
 0x147   : > { %v1688_v38 = vmax.f32 %v1656_v21, 0.0  ;;  %v1620_v24 = vmax.f32 %v3216_v39, %v1588_v11  ;;  %v1586_v12 = vmax.f32 %v1174_v6, %v1463_v49  ;;  %v1654_v16 = vadd.f32 %v3011_v0, %v1615_v10 }
 0x148   : > { %v2433_v31 = vpop.f32.mrf.mxu0  ;;  %v2481_v3 = vpop.f32.mrf.mxu1  ;;  %v3221_v21 = vmax.f32 %v2915_v59, %v2917_v60  ;;  %v3223_v59 = vmax.f32 %v2927_v1, %v2929_v2 }
 0x149   : > { %v2143_v13 = vpack.c.bf16 %v1688_v38, %v1687_v23  ;;  %v1618_v41 = vmax.f32 %v3217_v26, %v1586_v12  ;;  %v1589_v42 = vmax.f32 %v2433_v31, %v2481_v3  ;;  %v1686_v14 = vmax.f32 %v1654_v16, 0.0 }
 0x14a   : > { %v1177_v15 = vpop.f32.mrf.mxu0  ;;  %v1466_v25 = vpop.f32.mrf.mxu1  ;;  %v1659_v44 = vadd.f32 %v3011_v0, %v1620_v24 }
 0x14b   : > { %2199 = vst [vmem:[%s3030_s11 + $0x28] sm:$0xff] %v2143_v13   ;;  %v1621_v17 = vmax.f32 %v3218_v45, %v1589_v42  ;;  %v1587_v18 = vmax.f32 %v1177_v15, %v1466_v25  ;;  %v2138_v29 = vpack.c.bf16 %v1686_v14, %v1685_v27  ;;  %v1657_v47 = vadd.f32 %v3011_v0, %v1618_v41 }
 0x14c   : > { %v2436_v30 = vpop.f32.mrf.mxu0  ;;  %v2484_v28 = vpop.f32.mrf.mxu1  ;;  %v1691_v9 = vmax.f32 %v1659_v44, 0.0  ;;  %v3225_v44 = vmax.f32 %v2939_v7, %v2941_v61  ;;  %v3227_v7 = vld [vmem:[#allocation2_spill] sm:$0xff] }
 0x14d   : > { %v1660_v48 = vadd.f32 %v3011_v0, %v1621_v17  ;;  %v1619_v43 = vmax.f32 %v3219_v19, %v1587_v18  ;;  %v1592_v46 = vmax.f32 %v2436_v30, %v2484_v28  ;;  %2198 = vst [vmem:[%s3030_s11 + $0x20] sm:$0xff] %v2138_v29   ;;  %v1689_v20 = vmax.f32 %v1657_v47, 0.0 }
 0x14e   : > { %v1190_v22 = vpop.f32.mrf.mxu0  ;;  %v1479_v8 = vpop.f32.mrf.mxu1 }
 0x14f   : > { %v1692_v50 = vmax.f32 %v1660_v48, 0.0  ;;  %v1658_v51 = vadd.f32 %v3011_v0, %v1619_v43  ;;  %v1590_v32 = vmax.f32 %v1190_v22, %v1479_v8  ;;  %v1624_v34 = vmax.f32 %v3220_v33, %v1592_v46 }
 0x150   : > { %v2437_v37 = vpop.f32.mrf.mxu0  ;;  %v2485_v40 = vpop.f32.mrf.mxu1  ;;  %v3228_v46 = vmax.f32 %v2951_v52, %v3227_v7 }
 0x151   : > { %v2153_v53 = vpack.c.bf16 %v1692_v50, %v1691_v9  ;;  %v1690_v54 = vmax.f32 %v1658_v51, 0.0  ;;  %v1622_v11 = vmax.f32 %v3221_v21, %v1590_v32  ;;  %v1593_v35 = vmax.f32 %v2437_v37, %v2485_v40  ;;  %v3230_v51 = vld [vmem:[#allocation4_spill] sm:$0xff]  ;;  %v3233_v21 = vld [vmem:[#allocation6_spill] sm:$0xff] }
 0x152   : > { %v1193_v36 = vpop.f32.mrf.mxu0  ;;  %v1482_v10 = vpop.f32.mrf.mxu1  ;;  %v1663_v23 = vadd.f32 %v3011_v0, %v1624_v34  ;;  %v3231_v32 = vmax.f32 %v3229_v58, %v3230_v51  ;;  %v3250_v51 = vld [vmem:[#allocation17_spill] sm:$0xff] }
 0x153   : > { %2201 = vst [vmem:[%s3030_s11 + $0x38] sm:$0xff] %v2153_v53   ;;  %v2148_v6 = vpack.c.bf16 %v1690_v54, %v1689_v20  ;;  %v1591_v49 = vmax.f32 %v1193_v36, %v1482_v10  ;;  %v1625_v57 = vmax.f32 %v3222_v56, %v1593_v35  ;;  %v1661_v24 = vadd.f32 %v3011_v0, %v1622_v11  ;;  %v3232_v54 = vld [vmem:[#allocation5_spill] sm:$0xff]  ;;  %v3235_v56 = vld [vmem:[#allocation7_spill] sm:$0xff] }
 0x154   : > { %v2440_v38 = vpop.f32.mrf.mxu0  ;;  %v2488_v39 = vpop.f32.mrf.mxu1  ;;  %v1695_v41 = vmax.f32 %v1663_v23, 0.0  ;;  %v3234_v11 = vmax.f32 %v3232_v54, %v3233_v21 }
 0x155   : > { %2200 = vst [vmem:[%s3030_s11 + $0x30] sm:$0xff] %v2148_v6   ;;  %v1623_v60 = vmax.f32 %v3223_v59, %v1591_v49  ;;  %v1596_v12 = vmax.f32 %v2440_v38, %v2488_v39  ;;  %v1664_v16 = vadd.f32 %v3011_v0, %v1625_v57  ;;  %v1693_v1 = vmax.f32 %v1661_v24, 0.0  ;;  %v3236_v57 = vld [vmem:[#allocation8_spill] sm:$0xff] }
 0x156   : > { %v1206_v31 = vpop.f32.mrf.mxu0  ;;  %v1495_v3 = vpop.f32.mrf.mxu1  ;;  %v3237_v38 = vmax.f32 %v3235_v56, %v3236_v57 }
 0x157   : > { %v1662_v13 = vadd.f32 %v3011_v0, %v1623_v60  ;;  %v1628_v63 = vmax.f32 %v3224_v62, %v1596_v12  ;;  %v1594_v26 = vmax.f32 %v1206_v31, %v1495_v3  ;;  %v1696_v42 = vmax.f32 %v1664_v16, 0.0  ;;  %v3238_v3 = vld [vmem:[#allocation9_spill] sm:$0xff] }
 0x158   : > { %v2441_v27 = vpop.f32.mrf.mxu0  ;;  %v2489_v14 = vpop.f32.mrf.mxu1 }
 0x159   : > { %v1694_v2 = vmax.f32 %v1662_v13, 0.0  ;;  %v1597_v15 = vmax.f32 %v2441_v27, %v2489_v14  ;;  %v2163_v25 = vpack.c.bf16 %v1696_v42, %v1695_v41  ;;  %v1626_v45 = vmax.f32 %v3225_v44, %v1594_v26  ;;  %v3239_v13 = vld [vmem:[#allocation10_spill] sm:$0xff] }
 0x15a   : > { %v1209_v17 = vpop.f32.mrf.mxu0  ;;  %v1498_v18 = vpop.f32.mrf.mxu1  ;;  %v1667_v4 = vadd.f32 %v3011_v0, %v1628_v63  ;;  %v3240_v62 = vmax.f32 %v3238_v3, %v3239_v13 }
 0x15b   : > { %v2158_v29 = vpack.c.bf16 %v1694_v2, %v1693_v1  ;;  %v1629_v30 = vmax.f32 %v3226_v5, %v1597_v15  ;;  %2203 = vst [vmem:[%s3030_s11 + $0x48] sm:$0xff] %v2163_v25   ;;  %v1595_v28 = vmax.f32 %v1209_v17, %v1498_v18  ;;  %v1665_v61 = vadd.f32 %v3011_v0, %v1626_v45  ;;  %v3241_v15 = vld [vmem:[#allocation11_spill] sm:$0xff]  ;;  %v3242_v25 = vld [vmem:[#allocation12_spill] sm:$0xff] }
 0x15c   : > { %v2444_v47 = vpop.f32.mrf.mxu0  ;;  %v2492_v48 = vpop.f32.mrf.mxu1  ;;  %v1699_v50 = vmax.f32 %v1667_v4, 0.0  ;;  %v3243_v44 = vmax.f32 %v3241_v15, %v3242_v25 }
 0x15d   : > { %2202 = vst [vmem:[%s3030_s11 + $0x40] sm:$0xff] %v2158_v29   ;;  %v1668_v19 = vadd.f32 %v3011_v0, %v1629_v30  ;;  %v1600_v43 = vmax.f32 %v2444_v47, %v2492_v48  ;;  %v1627_v22 = vmax.f32 %v3228_v46, %v1595_v28  ;;  %v1697_v36 = vmax.f32 %v1665_v61, 0.0  ;;  %v3244_v30 = vld [vmem:[#allocation13_spill] sm:$0xff]  ;;  %v3245_v28 = vld [vmem:[#allocation14_spill] sm:$0xff] }
 0x15e   : > { %v1222_v8 = vpop.f32.mrf.mxu0  ;;  %v1511_v9 = vpop.f32.mrf.mxu1  ;;  %v3246_v47 = vmax.f32 %v3244_v30, %v3245_v28 }
 0x15f   : > { %v1700_v55 = vmax.f32 %v1668_v19, 0.0  ;;  %v1632_v33 = vmax.f32 %v3231_v32, %v1600_v43  ;;  %v1598_v34 = vmax.f32 %v1222_v8, %v1511_v9  ;;  %v1666_v37 = vadd.f32 %v3011_v0, %v1627_v22  ;;  %v3247_v8 = vld [vmem:[#allocation15_spill] sm:$0xff]  ;;  %v3248_v9 = vld [vmem:[#allocation16_spill] sm:$0xff]  ;;  %v3251_v32 = vld [vmem:[#allocation18_spill] sm:$0xff] }
 0x160   : > { %v2445_v40 = vpop.f32.mrf.mxu0  ;;  %v2493_v20 = vpop.f32.mrf.mxu1 }
 0x161   : > { %v2173_v53 = vpack.c.bf16 %v1700_v55, %v1699_v50  ;;  %v1630_v52 = vmax.f32 %v3234_v11, %v1598_v34  ;;  %v1601_v35 = vmax.f32 %v2445_v40, %v2493_v20  ;;  %v1698_v10 = vmax.f32 %v1666_v37, 0.0 }
 0x162   : > { %v1225_v6 = vpop.f32.mrf.mxu0  ;;  %v1514_v49 = vpop.f32.mrf.mxu1  ;;  %v1671_v23 = vadd.f32 %v3011_v0, %v1632_v33  ;;  %v3249_v50 = vmax.f32 %v3247_v8, %v3248_v9  ;;  %v3252_v33 = vmax.f32 %v3250_v51, %v3251_v32 }
 0x163   : > { %2205 = vst [vmem:[%s3030_s11 + $0x58] sm:$0xff] %v2173_v53   ;;  %v1633_v39 = vmax.f32 %v3237_v38, %v1601_v35  ;;  %v1599_v24 = vmax.f32 %v1225_v6, %v1514_v49  ;;  %v2168_v59 = vpack.c.bf16 %v1698_v10, %v1697_v36  ;;  %v1669_v16 = vadd.f32 %v3011_v0, %v1630_v52 }
 0x164   : > { %v2448_v60 = vpop.f32.mrf.mxu0  ;;  %v2496_v12 = vpop.f32.mrf.mxu1  ;;  %v1703_v27 = vmax.f32 %v1671_v23, 0.0 }
 0x165   : > { %v1672_v31 = vadd.f32 %v3011_v0, %v1633_v39  ;;  %v1631_v63 = vmax.f32 %v3240_v62, %v1599_v24  ;;  %v1604_v26 = vmax.f32 %v2448_v60, %v2496_v12  ;;  %2204 = vst [vmem:[%s3030_s11 + $0x50] sm:$0xff] %v2168_v59   ;;  %v1701_v29 = vmax.f32 %v1669_v16, 0.0 }
 0x166   : > { %v1238_v41 = vpop.f32.mrf.mxu0  ;;  %v1527_v42 = vpop.f32.mrf.mxu1 }
 0x167   : > { %v1704_v14 = vmax.f32 %v1672_v31, 0.0  ;;  %v1670_v1 = vadd.f32 %v3011_v0, %v1631_v63  ;;  %v1602_v2 = vmax.f32 %v1238_v41, %v1527_v42  ;;  %v1636_v45 = vmax.f32 %v3243_v44, %v1604_v26 }
 0x168   : > { %v2449_v17 = vpop.f32.mrf.mxu0  ;;  %v2497_v18 = vpop.f32.mrf.mxu1 }
 0x169   : > { %v2183_v4 = vpack.c.bf16 %v1704_v14, %v1703_v27  ;;  %v1702_v5 = vmax.f32 %v1670_v1, 0.0  ;;  %v1634_v48 = vmax.f32 %v3246_v47, %v1602_v2  ;;  %v1605_v19 = vmax.f32 %v2449_v17, %v2497_v18 }
 0x16a   : > { %v1241_v43 = vpop.f32.mrf.mxu0  ;;  %v1530_v61 = vpop.f32.mrf.mxu1  ;;  %v1675_v22 = vadd.f32 %v3011_v0, %v1636_v45 }
 0x16b   : > { %2207 = vst [vmem:[%s3030_s11 + $0x68] sm:$0xff] %v2183_v4   ;;  %v2178_v7 = vpack.c.bf16 %v1702_v5, %v1701_v29  ;;  %v1603_v46 = vmax.f32 %v1241_v43, %v1530_v61  ;;  %v1637_v55 = vmax.f32 %v3249_v50, %v1605_v19  ;;  %v1673_v58 = vadd.f32 %v3011_v0, %v1634_v48 }
 0x16c   : > { %v1707_v20 = vmax.f32 %v1675_v22, 0.0 }
 0x16d   : > { %2206 = vst [vmem:[%s3030_s11 + $0x60] sm:$0xff] %v2178_v7   ;;  %v1635_v34 = vmax.f32 %v3252_v33, %v1603_v46  ;;  %v1676_v37 = vadd.f32 %v3011_v0, %v1637_v55  ;;  %v1705_v54 = vmax.f32 %v1673_v58, 0.0 }
 0x16f   : > { %v1674_v40 = vadd.f32 %v3011_v0, %v1635_v34  ;;  %v1708_v53 = vmax.f32 %v1676_v37, 0.0 }
 0x171   : > { %v1706_v21 = vmax.f32 %v1674_v40, 0.0  ;;  %v2193_v11 = vpack.c.bf16 %v1708_v53, %v1707_v20 }
 0x173   : > { %v2188_v52 = vpack.c.bf16 %v1706_v21, %v1705_v54  ;;  %2209 = vst [vmem:[%s3030_s11 + $0x78] sm:$0xff] %v2193_v11  }
 0x175   : > { %2208 = vst [vmem:[%s3030_s11 + $0x70] sm:$0xff] %v2188_v52  }
 0x176 PF: > { %s16_s21 = sadd.s32 1, %s2584_s21  }
 0x177   : > { %p13_p4 = scmp.ge.s32.totalorder %s16_s21, 4  }
 0x179   :  { %15 = sbr.rel (!%p13_p4) target bundleno = 1 (0x1), region = 83 }

// kernel: cnn_forward.4
= control target key start
LH: loop header
LB: loop body
LE: loop exit
PB: predicated region body
PF: predicated region fallthrough
CT: control target
= control target key end

     0   :  { %s4601_s4 = inlined_call_operand.vmem [shape: bf16[1024,128], index: 4, kind: input, shape index: {}]   ;;  %s4602_s0 = inlined_call_operand.vmem [shape: bf16[56,1024], index: 0, kind: input, shape index: {}]   ;;  %s4603_s1 = inlined_call_operand.vmem [shape: bf16[56,1024], index: 1, kind: input, shape index: {}]   ;;  %s4604_s2 = inlined_call_operand.vmem [shape: bf16[56,1024], index: 2, kind: input, shape index: {}]   ;;  %s4605_s3 = inlined_call_operand.vmem [shape: bf16[56,1024], index: 3, kind: input, shape index: {}]   ;;  %s4606_s5 = inlined_call_operand.vmem [shape: f32[1,128], index: 5, kind: input, shape index: {}]   ;;  %s4607_s6 = inlined_call_operand.vmem [shape: bf16[56,128], index: 6, kind: output, shape index: {}]  }
   0x1   :  { %v3408_v0 = vld [vmem:[%s4601_s4 + $0x78] sm:$0xff]   ;;  %v3431_v4 = vld [vmem:[%s4601_s4 + $0x70] sm:$0xff]   ;;  %v3455_v8 = vld [vmem:[%s4601_s4 + $0x68] sm:$0xff]  }
   0x2   :  { %v3413_v1 = vld [vmem:[%s4601_s4 + $0xf8] sm:$0xff]   ;;  %2570 = vmatprep.subr.bf16.mxu0 %v3408_v0  ;;  %v3437_v5 = vld [vmem:[%s4601_s4 + $0xf0] sm:$0xff]   ;;  %v3461_v9 = vld [vmem:[%s4601_s4 + $0xe8] sm:$0xff]  }
   0x3   :  { %v3419_v2 = vld [vmem:[%s4601_s4 + $0x38] sm:$0xff]   ;;  %2610 = vmatprep.subr.bf16.mxu1 %v3413_v1  ;;  %v3443_v6 = vld [vmem:[%s4601_s4 + $0x30] sm:$0xff]   ;;  %v3467_v10 = vld [vmem:[%s4601_s4 + $0x28] sm:$0xff]  }
   0x4   :  { %v3425_v3 = vld [vmem:[%s4601_s4 + $0xb8] sm:$0xff]   ;;  %2571 = vmatpush3.bf16.msra.mxu0 %v3419_v2  ;;  %v3449_v7 = vld [vmem:[%s4601_s4 + $0xb0] sm:$0xff]   ;;  %v3473_v11 = vld [vmem:[%s4601_s4 + $0xa8] sm:$0xff]  }
   0x5   :  { %2611 = vmatpush3.bf16.msra.mxu1 %v3425_v3  ;;  %2572 = vmatprep.subr.bf16.mxu0 %v3431_v4  ;;  %v3479_v12 = vld [vmem:[%s4601_s4 + $0x60] sm:$0xff]   ;;  %v3503_v16 = vld [vmem:[%s4601_s4 + $0x58] sm:$0xff]   ;;  %v3527_v20 = vld [vmem:[%s4601_s4 + $0x50] sm:$0xff]  }
   0x6   :  { %2612 = vmatprep.subr.bf16.mxu1 %v3437_v5  ;;  %v3485_v13 = vld [vmem:[%s4601_s4 + $0xe0] sm:$0xff]   ;;  %v3509_v17 = vld [vmem:[%s4601_s4 + $0xd8] sm:$0xff]   ;;  %v3533_v21 = vld [vmem:[%s4601_s4 + $0xd0] sm:$0xff]  }
   0x7   :  { %v3491_v14 = vld [vmem:[%s4601_s4 + $0x20] sm:$0xff]   ;;  %v3515_v18 = vld [vmem:[%s4601_s4 + $0x18] sm:$0xff]   ;;  %v3539_v22 = vld [vmem:[%s4601_s4 + $0x10] sm:$0xff]  }
   0x8   :  { %2573 = vmatpush3.bf16.msra.mxu0 %v3443_v6  ;;  %v3497_v15 = vld [vmem:[%s4601_s4 + $0xa0] sm:$0xff]   ;;  %v3521_v19 = vld [vmem:[%s4601_s4 + $0x98] sm:$0xff]   ;;  %v3545_v23 = vld [vmem:[%s4601_s4 + $0x90] sm:$0xff]  }
   0x9   :  { %2613 = vmatpush3.bf16.msra.mxu1 %v3449_v7  ;;  %2574 = vmatprep.subr.bf16.mxu0 %v3455_v8  ;;  %v3551_v24 = vld [vmem:[%s4601_s4 + $0x48] sm:$0xff]   ;;  %v3575_v28 = vld [vmem:[%s4601_s4 + $0x40] sm:$0xff]   ;;  %v3612_v40 = vld [vmem:[%s4601_s4 + $0x178] sm:$0xff]  }
   0xa   :  { %2614 = vmatprep.subr.bf16.mxu1 %v3461_v9  ;;  %v3557_v25 = vld [vmem:[%s4601_s4 + $0xc8] sm:$0xff]   ;;  %v3581_v29 = vld [vmem:[%s4601_s4 + $0xc0] sm:$0xff]   ;;  %v3617_v41 = vld [vmem:[%s4601_s4 + $0x1f8] sm:$0xff]  }
   0xb   :  { %v3563_v26 = vld [vmem:[%s4601_s4 + $0x8] sm:$0xff]   ;;  %v3587_v30 = vld [vmem:[%s4601_s4] sm:$0xff]   ;;  %v3622_v42 = vld [vmem:[%s4601_s4 + $0x138] sm:$0xff]  }
   0xc   :  { %2575 = vmatpush3.bf16.msra.mxu0 %v3467_v10  ;;  %v3569_v27 = vld [vmem:[%s4601_s4 + $0x88] sm:$0xff]   ;;  %v3593_v31 = vld [vmem:[%s4601_s4 + $0x80] sm:$0xff]   ;;  %v3628_v43 = vld [vmem:[%s4601_s4 + $0x1b8] sm:$0xff]  }
   0xd   :  { %2615 = vmatpush3.bf16.msra.mxu1 %v3473_v11  ;;  %2576 = vmatprep.subr.bf16.mxu0 %v3479_v12  ;;  %v152_v32 = vld [vmem:[%s4602_s0] sm:$0xff]  ;;  %v153_v34 = vld [vmem:[%s4602_s0 + $0x8] sm:$0xff]  ;;  %v3635_v44 = vld [vmem:[%s4601_s4 + $0x170] sm:$0xff]  }
   0xe   :  { %2616 = vmatprep.subr.bf16.mxu1 %v3485_v13  ;;  %v156_v33 = vld [vmem:[%s4602_s0 + $0x20] sm:$0xff]  ;;  %v157_v37 = vld [vmem:[%s4602_s0 + $0x28] sm:$0xff]  ;;  %v3641_v45 = vld [vmem:[%s4601_s4 + $0x1f0] sm:$0xff]  }
   0xf   :  { %v2346_v35 = vcombine.low %v152_v32, %v156_v33  ;;  %v2347_v36 = vcombine.high %v152_v32, %v156_v33  ;;  %v2348_v38 = vcombine.low %v153_v34, %v157_v37  ;;  %v2349_v39 = vcombine.high %v153_v34, %v157_v37  ;;  %v3647_v46 = vld [vmem:[%s4601_s4 + $0x130] sm:$0xff]   ;;  %v160_v48 = vld [vmem:[%s4602_s0 + $0x40] sm:$0xff]  ;;  %v161_v51 = vld [vmem:[%s4602_s0 + $0x48] sm:$0xff] }
  0x10   :  { %2577 = vmatpush3.bf16.msra.mxu0 %v3491_v14  ;;  %v3653_v47 = vld [vmem:[%s4601_s4 + $0x1b0] sm:$0xff]   ;;  %v164_v49 = vld [vmem:[%s4602_s0 + $0x60] sm:$0xff]  ;;  %v165_v52 = vld [vmem:[%s4602_s0 + $0x68] sm:$0xff] }
  0x11   :  { %2617 = vmatpush3.bf16.msra.mxu1 %v3497_v15  ;;  %2578 = vmatprep.subr.bf16.mxu0 %v3503_v16  ;;  %v2355_v50 = vcombine.high %v160_v48, %v164_v49  ;;  %v2354_v53 = vcombine.low %v160_v48, %v164_v49  ;;  %v2357_v54 = vcombine.high %v161_v51, %v165_v52  ;;  %v3672_v56 = vld [vmem:[%s4601_s4 + $0x168] sm:$0xff]   ;;  %v3695_v60 = vld [vmem:[%s4601_s4 + $0x160] sm:$0xff]   ;;  %v3732_v48 = vld [vmem:[%s4601_s4 + $0x158] sm:$0xff]  }
  0x12   :  { %2618 = vmatprep.subr.bf16.mxu1 %v3509_v17  ;;  %744 = vmatprep.mubr.bf16.mxu0 %v2347_v36  ;;  %v2356_v55 = vcombine.low %v161_v51, %v165_v52  ;;  %v3677_v57 = vld [vmem:[%s4601_s4 + $0x1e8] sm:$0xff]   ;;  %v3701_v61 = vld [vmem:[%s4601_s4 + $0x1e0] sm:$0xff]   ;;  %4641 = vst [vmem:[#allocation3_spill] sm:$0xff] %v3732_v48  ;;  %v3737_v49 = vld [vmem:[%s4601_s4 + $0x1d8] sm:$0xff]  }
  0x13   :  { %808 = vmatprep.mubr.bf16.mxu1 %v2349_v39  ;;  %v3682_v58 = vld [vmem:[%s4601_s4 + $0x128] sm:$0xff]   ;;  %v3707_v62 = vld [vmem:[%s4601_s4 + $0x120] sm:$0xff]   ;;  %4642 = vst [vmem:[#allocation4_spill] sm:$0xff] %v3737_v49  ;;  %v3747_v51 = vld [vmem:[%s4601_s4 + $0x198] sm:$0xff]  }
  0x14   :  { %2579 = vmatpush3.bf16.msra.mxu0 %v3515_v18  ;;  %v3688_v59 = vld [vmem:[%s4601_s4 + $0x1a8] sm:$0xff]   ;;  %v3713_v63 = vld [vmem:[%s4601_s4 + $0x1a0] sm:$0xff]   ;;  %4644 = vst [vmem:[#allocation6_spill] sm:$0xff] %v3747_v51  ;;  %v3754_v52 = vld [vmem:[%s4601_s4 + $0x150] sm:$0xff]  }
  0x15   :  { %2619 = vmatpush3.bf16.msra.mxu1 %v3521_v19  ;;  %2580 = vmatprep.subr.bf16.mxu0 %v3527_v20  ;;  %4640 = vst [vmem:[#allocation2_spill] sm:$0xff] %v3713_v63  ;;  %v168_v32 = vld [vmem:[%s4602_s0 + $0x80] sm:$0xff]  ;;  %v169_v34 = vld [vmem:[%s4602_s0 + $0x88] sm:$0xff]  ;;  %4645 = vst [vmem:[#allocation7_spill] sm:$0xff] %v3754_v52 }
  0x16   :  { %2620 = vmatprep.subr.bf16.mxu1 %v3533_v21  ;;  %v172_v33 = vld [vmem:[%s4602_s0 + $0xa0] sm:$0xff] }
  0x17   :  { %v2363_v36 = vcombine.high %v168_v32, %v172_v33 }
  0x18   :  { %2581 = vmatpush3.bf16.msra.mxu0 %v3539_v22 }
  0x19   :  { %2621 = vmatpush3.bf16.msra.mxu1 %v3545_v23  ;;  %2582 = vmatprep.subr.bf16.mxu0 %v3551_v24 }
  0x1a   :  { %2622 = vmatprep.subr.bf16.mxu1 %v3557_v25 }
  0x1c   :  { %2583 = vmatpush3.bf16.msra.mxu0 %v3563_v26 }
  0x1d   :  { %2623 = vmatpush3.bf16.msra.mxu1 %v3569_v27  ;;  %2584 = vmatprep.subr.bf16.mxu0 %v3575_v28 }
  0x1e   :  { %2624 = vmatprep.subr.bf16.mxu1 %v3581_v29 }
  0x20   :  { %2585 = vmatpush3.bf16.msra.mxu0 %v3587_v30 }
  0x21   :  { %2625 = vmatpush3.bf16.msra.mxu1 %v3593_v31  ;;  %2650 = vmatprep.subr.bf16.mxu0 %v3612_v40 }
  0x22   :  { %2690 = vmatprep.subr.bf16.mxu1 %v3617_v41 }
  0x23   :  { %745 = vmatmul.mubr.bf16.vlgmr.msra.gmra.mxu0 %v2346_v35  ;;  %v173_v35 = vld [vmem:[%s4602_s0 + $0xa8] sm:$0xff] }
  0x24   :  { %809 = vmatmul.mubr.bf16.vlgmr.msra.gmra.mxu1 %v2348_v38  ;;  %2651 = vmatpush3.bf16.msra.mxu0 %v3622_v42  ;;  %v2365_v37 = vcombine.high %v169_v34, %v173_v35  ;;  %v2362_v38 = vcombine.low %v168_v32, %v172_v33  ;;  %v2364_v39 = vcombine.low %v169_v34, %v173_v35  ;;  %v176_v32 = vld [vmem:[%s4602_s0 + $0xc0] sm:$0xff]  ;;  %v177_v33 = vld [vmem:[%s4602_s0 + $0xc8] sm:$0xff] }
  0x25   :  { %2691 = vmatpush3.bf16.msra.mxu1 %v3628_v43  ;;  %2652 = vmatprep.subr.bf16.mxu0 %v3635_v44  ;;  %v2371_v34 = vcombine.high %v176_v32, %v176_v32  ;;  %v2373_v35 = vcombine.high %v177_v33, %v177_v33 }
  0x26   :  { %2692 = vmatprep.subr.bf16.mxu1 %v3641_v45  ;;  %752 = vmatprep.mubr.bf16.mxu0 %v2355_v50  ;;  %v3742_v50 = vld [vmem:[%s4601_s4 + $0x118] sm:$0xff]  }
  0x27   :  { %816 = vmatprep.mubr.bf16.mxu1 %v2357_v54  ;;  %4643 = vst [vmem:[#allocation5_spill] sm:$0xff] %v3742_v50  ;;  %v3767_v54 = vld [vmem:[%s4601_s4 + $0x110] sm:$0xff]  }
  0x28   :  { %2653 = vmatpush3.bf16.msra.mxu0 %v3647_v46  ;;  %4647 = vst [vmem:[#allocation9_spill] sm:$0xff] %v3767_v54 }
  0x29   :  { %2693 = vmatpush3.bf16.msra.mxu1 %v3653_v47  ;;  %2654 = vmatprep.subr.bf16.mxu0 %v3672_v56 }
  0x2a   :  { %2694 = vmatprep.subr.bf16.mxu1 %v3677_v57 }
  0x2b   :  { %753 = vmatmul.mubr.bf16.gmra.mxu0 %v2354_v53  ;;  %v3761_v53 = vld [vmem:[%s4601_s4 + $0x1d0] sm:$0xff]  }
  0x2c   :  { %817 = vmatmul.mubr.bf16.gmra.mxu1 %v2356_v55  ;;  %2655 = vmatpush3.bf16.msra.mxu0 %v3682_v58  ;;  %4646 = vst [vmem:[#allocation8_spill] sm:$0xff] %v3761_v53  ;;  %v3773_v55 = vld [vmem:[%s4601_s4 + $0x190] sm:$0xff]  }
  0x2d   :  { %2695 = vmatpush3.bf16.msra.mxu1 %v3688_v59  ;;  %2656 = vmatprep.subr.bf16.mxu0 %v3695_v60  ;;  %4648 = vst [vmem:[#allocation10_spill] sm:$0xff] %v3773_v55 }
  0x2e   :  { %2696 = vmatprep.subr.bf16.mxu1 %v3701_v61  ;;  %760 = vmatprep.mubr.bf16.mxu0 %v2363_v36  ;;  %v2370_v36 = vcombine.low %v176_v32, %v176_v32  ;;  %v3801_v32 = vld [vmem:[%s4601_s4 + $0x188] sm:$0xff]  }
  0x2f   :  { %824 = vmatprep.mubr.bf16.mxu1 %v2365_v37  ;;  %v3786_v37 = vld [vmem:[%s4601_s4 + $0x148] sm:$0xff]   ;;  %4652 = vst [vmem:[#allocation14_spill] sm:$0xff] %v3801_v32 }
  0x30   :  { %2657 = vmatpush3.bf16.msra.mxu0 %v3707_v62  ;;  %4649 = vst [vmem:[#allocation11_spill] sm:$0xff] %v3786_v37 }
  0x31   :  { %2697 = vmatpush3.bf16.msra.mxu1 %v3713_v63  ;;  %2658 = vmatprep.subr.bf16.mxu0 %v3732_v48 }
  0x32   :  { %2698 = vmatprep.subr.bf16.mxu1 %v3737_v49 }
  0x33   :  { %761 = vmatmul.mubr.bf16.gmra.mxu0 %v2362_v38  ;;  %v2372_v38 = vcombine.low %v177_v33, %v177_v33  ;;  %v3808_v33 = vld [vmem:[%s4601_s4 + $0x140] sm:$0xff]  }
  0x34   :  { %825 = vmatmul.mubr.bf16.gmra.mxu1 %v2364_v39  ;;  %2659 = vmatpush3.bf16.msra.mxu0 %v3742_v50  ;;  %v3791_v39 = vld [vmem:[%s4601_s4 + $0x1c8] sm:$0xff]   ;;  %4653 = vst [vmem:[#allocation15_spill] sm:$0xff] %v3808_v33 }
  0x35   :  { %2699 = vmatpush3.bf16.msra.mxu1 %v3747_v51  ;;  %2660 = vmatprep.subr.bf16.mxu0 %v3754_v52  ;;  %4650 = vst [vmem:[#allocation12_spill] sm:$0xff] %v3791_v39  ;;  %v163_v52 = vld [vmem:[%s4602_s0 + $0x58] sm:$0xff] }
  0x36   :  { %2700 = vmatprep.subr.bf16.mxu1 %v3761_v53  ;;  %768 = vmatprep.mubr.bf16.mxu0 %v2371_v34  ;;  %v3815_v34 = vld [vmem:[%s4601_s4 + $0x1c0] sm:$0xff]   ;;  %v166_v53 = vld [vmem:[%s4602_s0 + $0x70] sm:$0xff] }
  0x37   :  { %832 = vmatprep.mubr.bf16.mxu1 %v2373_v35  ;;  %4654 = vst [vmem:[#allocation16_spill] sm:$0xff] %v3815_v34  ;;  %v3821_v35 = vld [vmem:[%s4601_s4 + $0x100] sm:$0xff]  }
  0x38   :  { %2661 = vmatpush3.bf16.msra.mxu0 %v3767_v54  ;;  %v162_v54 = vld [vmem:[%s4602_s0 + $0x50] sm:$0xff] }
  0x39   :  { %2701 = vmatpush3.bf16.msra.mxu1 %v3773_v55  ;;  %v3796_v55 = vld [vmem:[%s4601_s4 + $0x108] sm:$0xff]   ;;  %2662 = vmatprep.subr.bf16.mxu0 %v3786_v37 }
  0x3a   :  { %4651 = vst [vmem:[#allocation13_spill] sm:$0xff] %v3796_v55  ;;  %2702 = vmatprep.subr.bf16.mxu1 %v3791_v39 }
  0x3b   :  { %769 = vmatmul.mubr.bf16.gmra.mxu0 %v2370_v36  ;;  %v3827_v36 = vld [vmem:[%s4601_s4 + $0x180] sm:$0xff]  }
  0x3c   :  { %833 = vmatmul.mubr.bf16.gmra.mxu1 %v2372_v38  ;;  %2663 = vmatpush3.bf16.msra.mxu0 %v3796_v55  ;;  %4655 = vst [vmem:[#allocation17_spill] sm:$0xff] %v3827_v36  ;;  %v154_v38 = vld [vmem:[%s4602_s0 + $0x10] sm:$0xff] }
  0x3d   :  { %2703 = vmatpush3.bf16.msra.mxu1 %v3801_v32  ;;  %2664 = vmatprep.subr.bf16.mxu0 %v3808_v33  ;;  %v158_v33 = vld [vmem:[%s4602_s0 + $0x30] sm:$0xff]  ;;  %v155_v32 = vld [vmem:[%s4602_s0 + $0x18] sm:$0xff] }
  0x3e   :  { %2704 = vmatprep.subr.bf16.mxu1 %v3815_v34  ;;  %v159_v34 = vld [vmem:[%s4602_s0 + $0x38] sm:$0xff]  ;;  %v2350_v55 = vcombine.low %v154_v38, %v158_v33  ;;  %v2351_v39 = vcombine.high %v154_v38, %v158_v33  ;;  %v2359_v38 = vcombine.high %v162_v54, %v166_v53 }
  0x3f   :  { %v2352_v37 = vcombine.low %v155_v32, %v159_v34  ;;  %v2353_v51 = vcombine.high %v155_v32, %v159_v34  ;;  %v167_v33 = vld [vmem:[%s4602_s0 + $0x78] sm:$0xff]  ;;  %v2358_v32 = vcombine.low %v162_v54, %v166_v53 }
  0x40   :  { %2665 = vmatpush3.bf16.msra.mxu0 %v3821_v35  ;;  %872 = vmatprep.mubr.bf16.mxu0 %v2351_v39  ;;  %v170_v39 = vld [vmem:[%s4602_s0 + $0x90] sm:$0xff]  ;;  %v175_v34 = vld [vmem:[%s4602_s0 + $0xb8] sm:$0xff] }
  0x41   :  { %2705 = vmatpush3.bf16.msra.mxu1 %v3827_v36  ;;  %2730 = vmatprep.subr.bf16.mxu0 %v3408_v0  ;;  %v2361_v36 = vcombine.high %v163_v52, %v167_v33 }
  0x42   :  { %2770 = vmatprep.subr.bf16.mxu1 %v3413_v1  ;;  %936 = vmatprep.mubr.bf16.mxu1 %v2353_v51  ;;  %v174_v51 = vld [vmem:[%s4602_s0 + $0xb0] sm:$0xff] }
  0x43   :  { %873 = vmatmul.mubr.bf16.vlgmr.msra.gmra.mxu0 %v2350_v55  ;;  %v2360_v55 = vcombine.low %v163_v52, %v167_v33  ;;  %v2367_v53 = vcombine.high %v170_v39, %v174_v51  ;;  %v2366_v52 = vcombine.low %v170_v39, %v174_v51 }
  0x44   :  { %937 = vmatmul.mubr.bf16.vlgmr.msra.gmra.mxu1 %v2352_v37  ;;  %2731 = vmatpush3.bf16.msra.mxu0 %v3419_v2  ;;  %v171_v37 = vld [vmem:[%s4602_s0 + $0x98] sm:$0xff] }
  0x45   :  { %2771 = vmatpush3.bf16.msra.mxu1 %v3425_v3  ;;  %2732 = vmatprep.subr.bf16.mxu0 %v3431_v4  ;;  %v2369_v54 = vcombine.high %v171_v37, %v175_v34  ;;  %v2368_v33 = vcombine.low %v171_v37, %v175_v34  ;;  %v972_v37 = vld [vmem:[%s4603_s1 + $0x20] sm:$0xff] }
  0x46   :  { %2772 = vmatprep.subr.bf16.mxu1 %v3437_v5  ;;  %880 = vmatprep.mubr.bf16.mxu0 %v2359_v38  ;;  %v179_v38 = vld [vmem:[%s4602_s0 + $0xd8] sm:$0xff] }
  0x47   :  { %944 = vmatprep.mubr.bf16.mxu1 %v2361_v36  ;;  %v178_v36 = vld [vmem:[%s4602_s0 + $0xd0] sm:$0xff]  ;;  %v2377_v39 = vcombine.high %v179_v38, %v179_v38  ;;  %v2376_v34 = vcombine.low %v179_v38, %v179_v38  ;;  %v976_v38 = vld [vmem:[%s4603_s1 + $0x40] sm:$0xff] }
  0x48   :  { %2733 = vmatpush3.bf16.msra.mxu0 %v3443_v6  ;;  %v2374_v51 = vcombine.low %v178_v36, %v178_v36 }
  0x49   :  { %2773 = vmatpush3.bf16.msra.mxu1 %v3449_v7  ;;  %2734 = vmatprep.subr.bf16.mxu0 %v3455_v8 }
  0x4a   :  { %2774 = vmatprep.subr.bf16.mxu1 %v3461_v9 }
  0x4b   :  { %881 = vmatmul.mubr.bf16.gmra.mxu0 %v2358_v32  ;;  %v2375_v32 = vcombine.high %v178_v36, %v178_v36 }
  0x4c   :  { %945 = vmatmul.mubr.bf16.gmra.mxu1 %v2360_v55  ;;  %2735 = vmatpush3.bf16.msra.mxu0 %v3467_v10  ;;  %v968_v55 = vld [vmem:[%s4603_s1] sm:$0xff] }
  0x4d   :  { %2775 = vmatpush3.bf16.msra.mxu1 %v3473_v11  ;;  %2736 = vmatprep.subr.bf16.mxu0 %v3479_v12 }
  0x4e   :  { %2776 = vmatprep.subr.bf16.mxu1 %v3485_v13  ;;  %888 = vmatprep.mubr.bf16.mxu0 %v2367_v53  ;;  %v969_v53 = vld [vmem:[%s4603_s1 + $0x8] sm:$0xff] }
  0x4f   :  { %952 = vmatprep.mubr.bf16.mxu1 %v2369_v54  ;;  %v973_v54 = vld [vmem:[%s4603_s1 + $0x28] sm:$0xff] }
  0x50   :  { %2737 = vmatpush3.bf16.msra.mxu0 %v3491_v14  ;;  %v2445_v36 = vcombine.high %v969_v53, %v973_v54 }
  0x51   :  { %2777 = vmatpush3.bf16.msra.mxu1 %v3497_v15  ;;  %2738 = vmatprep.subr.bf16.mxu0 %v3503_v16 }
  0x52   :  { %2778 = vmatprep.subr.bf16.mxu1 %v3509_v17 }
  0x53   :  { %889 = vmatmul.mubr.bf16.gmra.mxu0 %v2366_v52  ;;  %v2443_v52 = vcombine.high %v968_v55, %v972_v37 }
  0x54   :  { %953 = vmatmul.mubr.bf16.gmra.mxu1 %v2368_v33  ;;  %2739 = vmatpush3.bf16.msra.mxu0 %v3515_v18  ;;  %v2442_v33 = vcombine.low %v968_v55, %v972_v37  ;;  %v981_v55 = vld [vmem:[%s4603_s1 + $0x68] sm:$0xff] }
  0x55   :  { %2779 = vmatpush3.bf16.msra.mxu1 %v3521_v19  ;;  %2740 = vmatprep.subr.bf16.mxu0 %v3527_v20 }
  0x56   :  { %2780 = vmatprep.subr.bf16.mxu1 %v3533_v21  ;;  %896 = vmatprep.mubr.bf16.mxu0 %v2375_v32  ;;  %v980_v32 = vld [vmem:[%s4603_s1 + $0x60] sm:$0xff] }
  0x57   :  { %960 = vmatprep.mubr.bf16.mxu1 %v2377_v39  ;;  %v2444_v39 = vcombine.low %v969_v53, %v973_v54  ;;  %v2451_v37 = vcombine.high %v976_v38, %v980_v32  ;;  %v2450_v53 = vcombine.low %v976_v38, %v980_v32  ;;  %v984_v54 = vld [vmem:[%s4603_s1 + $0x80] sm:$0xff] }
  0x58   :  { %2741 = vmatpush3.bf16.msra.mxu0 %v3539_v22 }
  0x59   :  { %2781 = vmatpush3.bf16.msra.mxu1 %v3545_v23  ;;  %2742 = vmatprep.subr.bf16.mxu0 %v3551_v24 }
  0x5a   :  { %2782 = vmatprep.subr.bf16.mxu1 %v3557_v25 }
  0x5b   :  { %897 = vmatmul.mubr.bf16.gmra.mxu0 %v2374_v51  ;;  %v977_v51 = vld [vmem:[%s4603_s1 + $0x48] sm:$0xff] }
  0x5c   :  { %961 = vmatmul.mubr.bf16.gmra.mxu1 %v2376_v34  ;;  %2743 = vmatpush3.bf16.msra.mxu0 %v3563_v26  ;;  %v2453_v34 = vcombine.high %v977_v51, %v981_v55 }
  0x5d   :  { %2783 = vmatpush3.bf16.msra.mxu1 %v3569_v27  ;;  %2744 = vmatprep.subr.bf16.mxu0 %v3575_v28 }
  0x5e   :  { %2784 = vmatprep.subr.bf16.mxu1 %v3581_v29  ;;  %1176 = vmatprep.mubr.bf16.mxu0 %v2443_v52  ;;  %v988_v52 = vld [vmem:[%s4603_s1 + $0xa0] sm:$0xff] }
  0x5f   :  { %1240 = vmatprep.mubr.bf16.mxu1 %v2445_v36  ;;  %v2452_v36 = vcombine.low %v977_v51, %v981_v55  ;;  %v2459_v38 = vcombine.high %v984_v54, %v988_v52  ;;  %v2458_v51 = vcombine.low %v984_v54, %v988_v52  ;;  %v992_v55 = vld [vmem:[%s4603_s1 + $0xc0] sm:$0xff] }
  0x60   :  { %2745 = vmatpush3.bf16.msra.mxu0 %v3587_v30  ;;  %v4656_v52 = vld [vmem:[#allocation6_spill] sm:$0xff] }
  0x61   :  { %2785 = vmatpush3.bf16.msra.mxu1 %v3593_v31  ;;  %2810 = vmatprep.subr.bf16.mxu0 %v3612_v40 }
  0x62   :  { %2850 = vmatprep.subr.bf16.mxu1 %v3617_v41 }
  0x63   :  { %1177 = vmatmul.mubr.bf16.vlgmr.msra.gmra.mxu0 %v2442_v33  ;;  %v985_v33 = vld [vmem:[%s4603_s1 + $0x88] sm:$0xff] }
  0x64   :  { %1241 = vmatmul.mubr.bf16.vlgmr.msra.gmra.mxu1 %v2444_v39  ;;  %2811 = vmatpush3.bf16.msra.mxu0 %v3622_v42  ;;  %v989_v39 = vld [vmem:[%s4603_s1 + $0xa8] sm:$0xff] }
  0x65   :  { %2851 = vmatpush3.bf16.msra.mxu1 %v3628_v43  ;;  %2812 = vmatprep.subr.bf16.mxu0 %v3635_v44  ;;  %v2461_v32 = vcombine.high %v985_v33, %v989_v39 }
  0x66   :  { %2852 = vmatprep.subr.bf16.mxu1 %v3641_v45  ;;  %1184 = vmatprep.mubr.bf16.mxu0 %v2451_v37  ;;  %v2460_v37 = vcombine.low %v985_v33, %v989_v39  ;;  %v4658_v33 = vld [vmem:[#allocation8_spill] sm:$0xff]  ;;  %v2466_v39 = vcombine.low %v992_v55, %v992_v55 }
  0x67   :  { %1248 = vmatprep.mubr.bf16.mxu1 %v2453_v34  ;;  %v993_v34 = vld [vmem:[%s4603_s1 + $0xc8] sm:$0xff] }
  0x68   :  { %2813 = vmatpush3.bf16.msra.mxu0 %v3647_v46  ;;  %v2469_v54 = vcombine.high %v993_v34, %v993_v34 }
  0x69   :  { %2853 = vmatpush3.bf16.msra.mxu1 %v3653_v47  ;;  %2814 = vmatprep.subr.bf16.mxu0 %v3672_v56 }
  0x6a   :  { %2854 = vmatprep.subr.bf16.mxu1 %v3677_v57 }
  0x6b   :  { %1185 = vmatmul.mubr.bf16.gmra.mxu0 %v2450_v53  ;;  %v2467_v53 = vcombine.high %v992_v55, %v992_v55  ;;  %v4660_v55 = vld [vmem:[#allocation10_spill] sm:$0xff] }
  0x6c   :  { %1249 = vmatmul.mubr.bf16.gmra.mxu1 %v2452_v36  ;;  %2815 = vmatpush3.bf16.msra.mxu0 %v3682_v58  ;;  %v4657_v36 = vld [vmem:[#allocation7_spill] sm:$0xff] }
  0x6d   :  { %2855 = vmatpush3.bf16.msra.mxu1 %v3688_v59  ;;  %2816 = vmatprep.subr.bf16.mxu0 %v3695_v60 }
  0x6e   :  { %2856 = vmatprep.subr.bf16.mxu1 %v3701_v61  ;;  %1192 = vmatprep.mubr.bf16.mxu0 %v2459_v38  ;;  %v970_v38 = vld [vmem:[%s4603_s1 + $0x10] sm:$0xff] }
  0x6f   :  { %1256 = vmatprep.mubr.bf16.mxu1 %v2461_v32  ;;  %v974_v32 = vld [vmem:[%s4603_s1 + $0x30] sm:$0xff] }
  0x70   :  { %2817 = vmatpush3.bf16.msra.mxu0 %v3707_v62 }
  0x71   :  { %2857 = vmatpush3.bf16.msra.mxu1 %v3713_v63  ;;  %2818 = vmatprep.subr.bf16.mxu0 %v3732_v48  ;;  %v4666_v48 = vld [vmem:[#allocation16_spill] sm:$0xff]  ;;  %v2446_v63 = vcombine.low %v970_v38, %v974_v32 }
  0x72   :  { %2858 = vmatprep.subr.bf16.mxu1 %v3737_v49  ;;  %v4665_v49 = vld [vmem:[#allocation15_spill] sm:$0xff] }
  0x73   :  { %1193 = vmatmul.mubr.bf16.gmra.mxu0 %v2458_v51  ;;  %v4659_v51 = vld [vmem:[#allocation9_spill] sm:$0xff] }
  0x74   :  { %1257 = vmatmul.mubr.bf16.gmra.mxu1 %v2460_v37  ;;  %2819 = vmatpush3.bf16.msra.mxu0 %v3742_v50  ;;  %v2468_v37 = vcombine.low %v993_v34, %v993_v34  ;;  %v4664_v34 = vld [vmem:[#allocation14_spill] sm:$0xff] }
  0x75   :  { %2859 = vmatpush3.bf16.msra.mxu1 %v4656_v52  ;;  %2820 = vmatprep.subr.bf16.mxu0 %v4657_v36  ;;  %v971_v36 = vld [vmem:[%s4603_s1 + $0x18] sm:$0xff]  ;;  %v2447_v52 = vcombine.high %v970_v38, %v974_v32 }
  0x76   :  { %2860 = vmatprep.subr.bf16.mxu1 %v4658_v33  ;;  %1200 = vmatprep.mubr.bf16.mxu0 %v2467_v53  ;;  %v975_v53 = vld [vmem:[%s4603_s1 + $0x38] sm:$0xff]  ;;  %v4662_v33 = vld [vmem:[#allocation12_spill] sm:$0xff] }
  0x77   :  { %1264 = vmatprep.mubr.bf16.mxu1 %v2469_v54  ;;  %v4661_v54 = vld [vmem:[#allocation11_spill] sm:$0xff]  ;;  %v2449_v50 = vcombine.high %v971_v36, %v975_v53 }
  0x78   :  { %2821 = vmatpush3.bf16.msra.mxu0 %v4659_v51  ;;  %v4663_v51 = vld [vmem:[#allocation13_spill] sm:$0xff] }
  0x79   :  { %2861 = vmatpush3.bf16.msra.mxu1 %v4660_v55  ;;  %2822 = vmatprep.subr.bf16.mxu0 %v4661_v54  ;;  %v978_v54 = vld [vmem:[%s4603_s1 + $0x50] sm:$0xff] }
  0x7a   :  { %2862 = vmatprep.subr.bf16.mxu1 %v4662_v33 }
  0x7b   :  { %1201 = vmatmul.mubr.bf16.gmra.mxu0 %v2466_v39  ;;  %v982_v39 = vld [vmem:[%s4603_s1 + $0x70] sm:$0xff] }
  0x7c   :  { %1265 = vmatmul.mubr.bf16.gmra.mxu1 %v2468_v37  ;;  %2823 = vmatpush3.bf16.msra.mxu0 %v4663_v51  ;;  %v2448_v37 = vcombine.low %v971_v36, %v975_v53  ;;  %v2455_v38 = vcombine.high %v978_v54, %v982_v39  ;;  %v2454_v36 = vcombine.low %v978_v54, %v982_v39  ;;  %v4674_v53 = vld [vmem:[#allocation8_spill] sm:$0xff] }
  0x7d   :  { %2863 = vmatpush3.bf16.msra.mxu1 %v4664_v34  ;;  %2824 = vmatprep.subr.bf16.mxu0 %v4665_v49  ;;  %v979_v49 = vld [vmem:[%s4603_s1 + $0x58] sm:$0xff]  ;;  %v1402_v39 = vld [vmem:[%s4604_s2 + $0x10] sm:$0xff] }
  0x7e   :  { %2864 = vmatprep.subr.bf16.mxu1 %v4666_v48  ;;  %1304 = vmatprep.mubr.bf16.mxu0 %v2447_v52  ;;  %v983_v52 = vld [vmem:[%s4603_s1 + $0x78] sm:$0xff] }
  0x7f   :  { %1368 = vmatprep.mubr.bf16.mxu1 %v2449_v50  ;;  %v4667_v50 = vld [vmem:[#allocation17_spill] sm:$0xff]  ;;  %v2457_v32 = vcombine.high %v979_v49, %v983_v52 }
  0x80   :  { %2825 = vmatpush3.bf16.msra.mxu0 %v3821_v35 }
  0x81   :  { %2865 = vmatpush3.bf16.msra.mxu1 %v4667_v50  ;;  %2890 = vmatprep.subr.bf16.mxu0 %v3408_v0  ;;  %v986_v0 = vld [vmem:[%s4603_s1 + $0x90] sm:$0xff] }
  0x82   :  { %2930 = vmatprep.subr.bf16.mxu1 %v3413_v1  ;;  %v990_v1 = vld [vmem:[%s4603_s1 + $0xb0] sm:$0xff] }
  0x83   :  { %1305 = vmatmul.mubr.bf16.vlgmr.msra.gmra.mxu0 %v2446_v63 }
  0x84   :  { %1369 = vmatmul.mubr.bf16.vlgmr.msra.gmra.mxu1 %v2448_v37  ;;  %2891 = vmatpush3.bf16.msra.mxu0 %v3419_v2  ;;  %v2456_v2 = vcombine.low %v979_v49, %v983_v52  ;;  %v4672_v49 = vld [vmem:[#allocation6_spill] sm:$0xff]  ;;  %v1406_v37 = vld [vmem:[%s4604_s2 + $0x30] sm:$0xff]  ;;  %v4675_v52 = vld [vmem:[#allocation9_spill] sm:$0xff] }
  0x85   :  { %2931 = vmatpush3.bf16.msra.mxu1 %v3425_v3  ;;  %2892 = vmatprep.subr.bf16.mxu0 %v3431_v4  ;;  %v987_v3 = vld [vmem:[%s4603_s1 + $0x98] sm:$0xff] }
  0x86   :  { %2932 = vmatprep.subr.bf16.mxu1 %v3437_v5  ;;  %1312 = vmatprep.mubr.bf16.mxu0 %v2455_v38  ;;  %v991_v4 = vld [vmem:[%s4603_s1 + $0xb8] sm:$0xff]  ;;  %v2463_v5 = vcombine.high %v986_v0, %v990_v1 }
  0x87   :  { %1376 = vmatprep.mubr.bf16.mxu1 %v2457_v32  ;;  %v2465_v63 = vcombine.high %v987_v3, %v991_v4  ;;  %v1403_v32 = vld [vmem:[%s4604_s2 + $0x18] sm:$0xff] }
  0x88   :  { %2893 = vmatpush3.bf16.msra.mxu0 %v3443_v6  ;;  %v2462_v6 = vcombine.low %v986_v0, %v990_v1  ;;  %v4676_v0 = vld [vmem:[#allocation11_spill] sm:$0xff]  ;;  %v2479_v1 = vcombine.high %v1402_v39, %v1406_v37 }
  0x89   :  { %2933 = vmatpush3.bf16.msra.mxu1 %v3449_v7  ;;  %2894 = vmatprep.subr.bf16.mxu0 %v3455_v8  ;;  %v994_v7 = vld [vmem:[%s4603_s1 + $0xd0] sm:$0xff]  ;;  %v2464_v8 = vcombine.low %v987_v3, %v991_v4  ;;  %v4677_v3 = vld [vmem:[#allocation15_spill] sm:$0xff]  ;;  %v2478_v4 = vcombine.low %v1402_v39, %v1406_v37 }
  0x8a   :  { %2934 = vmatprep.subr.bf16.mxu1 %v3461_v9  ;;  %v995_v9 = vld [vmem:[%s4603_s1 + $0xd8] sm:$0xff] }
  0x8b   :  { %1313 = vmatmul.mubr.bf16.gmra.mxu0 %v2454_v36  ;;  %v1407_v36 = vld [vmem:[%s4604_s2 + $0x38] sm:$0xff] }
  0x8c   :  { %1377 = vmatmul.mubr.bf16.gmra.mxu1 %v2456_v2  ;;  %2895 = vmatpush3.bf16.msra.mxu0 %v3467_v10  ;;  %v2471_v10 = vcombine.high %v994_v7, %v994_v7  ;;  %v2481_v2 = vcombine.high %v1403_v32, %v1407_v36 }
  0x8d   :  { %2935 = vmatpush3.bf16.msra.mxu1 %v3473_v11  ;;  %2896 = vmatprep.subr.bf16.mxu0 %v3479_v12  ;;  %v2473_v11 = vcombine.high %v995_v9, %v995_v9  ;;  %v2470_v12 = vcombine.low %v994_v7, %v994_v7  ;;  %v3308_v7 = vld [vmem:[%s4601_s4 + $0x38] sm:$0xff]  }
  0x8e   :  { %2936 = vmatprep.subr.bf16.mxu1 %v3485_v13  ;;  %1320 = vmatprep.mubr.bf16.mxu0 %v2463_v5  ;;  %v1400_v13 = vld [vmem:[%s4604_s2] sm:$0xff]  ;;  %v3306_v5 = vld [vmem:[%s4601_s4 + $0x78] sm:$0xff]  }
  0x8f   :  { %1384 = vmatprep.mubr.bf16.mxu1 %v2465_v63 }
  0x90   :  { %2897 = vmatpush3.bf16.msra.mxu0 %v3491_v14  ;;  %v1404_v14 = vld [vmem:[%s4604_s2 + $0x20] sm:$0xff] }
  0x91   :  { %2937 = vmatpush3.bf16.msra.mxu1 %v3497_v15  ;;  %2898 = vmatprep.subr.bf16.mxu0 %v3503_v16  ;;  %v2472_v15 = vcombine.low %v995_v9, %v995_v9  ;;  %v1401_v16 = vld [vmem:[%s4604_s2 + $0x8] sm:$0xff]  ;;  %v3311_v9 = vld [vmem:[%s4601_s4 + $0xf0] sm:$0xff]  }
  0x92   :  { %2938 = vmatprep.subr.bf16.mxu1 %v3509_v17  ;;  %v1405_v17 = vld [vmem:[%s4604_s2 + $0x28] sm:$0xff] }
  0x93   :  { %1321 = vmatmul.mubr.bf16.gmra.mxu0 %v2462_v6 }
  0x94   :  { %1385 = vmatmul.mubr.bf16.gmra.mxu1 %v2464_v8  ;;  %2899 = vmatpush3.bf16.msra.mxu0 %v3515_v18  ;;  %v2475_v18 = vcombine.high %v1400_v13, %v1404_v14  ;;  %v3310_v8 = vld [vmem:[%s4601_s4 + $0x70] sm:$0xff]  }
  0x95   :  { %2939 = vmatpush3.bf16.msra.mxu1 %v3521_v19  ;;  %2900 = vmatprep.subr.bf16.mxu0 %v3527_v20  ;;  %v2477_v19 = vcombine.high %v1401_v16, %v1405_v17  ;;  %v2474_v20 = vcombine.low %v1400_v13, %v1404_v14  ;;  %v3312_v13 = vld [vmem:[%s4601_s4 + $0x30] sm:$0xff]  }
  0x96   :  { %2940 = vmatprep.subr.bf16.mxu1 %v3533_v21  ;;  %1328 = vmatprep.mubr.bf16.mxu0 %v2471_v10  ;;  %v1408_v21 = vld [vmem:[%s4604_s2 + $0x40] sm:$0xff] }
  0x97   :  { %1392 = vmatprep.mubr.bf16.mxu1 %v2473_v11  ;;  %v1418_v11 = vld [vmem:[%s4604_s2 + $0x90] sm:$0xff] }
  0x98   :  { %2901 = vmatpush3.bf16.msra.mxu0 %v3539_v22  ;;  %v1412_v22 = vld [vmem:[%s4604_s2 + $0x60] sm:$0xff] }
  0x99   :  { %2941 = vmatpush3.bf16.msra.mxu1 %v3545_v23  ;;  %2902 = vmatprep.subr.bf16.mxu0 %v3551_v24  ;;  %v2476_v23 = vcombine.low %v1401_v16, %v1405_v17  ;;  %v1409_v24 = vld [vmem:[%s4604_s2 + $0x48] sm:$0xff]  ;;  %v1423_v16 = vld [vmem:[%s4604_s2 + $0xb8] sm:$0xff]  ;;  %v3313_v17 = vld [vmem:[%s4601_s4 + $0xb0] sm:$0xff]  }
  0x9a   :  { %2942 = vmatprep.subr.bf16.mxu1 %v3557_v25  ;;  %v1413_v25 = vld [vmem:[%s4604_s2 + $0x68] sm:$0xff] }
  0x9b   :  { %1329 = vmatmul.mubr.bf16.gmra.mxu0 %v2470_v12  ;;  %v1422_v12 = vld [vmem:[%s4604_s2 + $0xb0] sm:$0xff] }
  0x9c   :  { %1393 = vmatmul.mubr.bf16.gmra.mxu1 %v2472_v15  ;;  %2903 = vmatpush3.bf16.msra.mxu0 %v3563_v26  ;;  %v2483_v26 = vcombine.high %v1408_v21, %v1412_v22  ;;  %v1419_v15 = vld [vmem:[%s4604_s2 + $0x98] sm:$0xff] }
  0x9d   :  { %2943 = vmatpush3.bf16.msra.mxu1 %v3569_v27  ;;  %2904 = vmatprep.subr.bf16.mxu0 %v3575_v28  ;;  %v2485_v27 = vcombine.high %v1409_v24, %v1413_v25  ;;  %v2482_v28 = vcombine.low %v1408_v21, %v1412_v22  ;;  %v2497_v21 = vcombine.high %v1419_v15, %v1423_v16  ;;  %v3316_v22 = vld [vmem:[%s4601_s4 + $0x28] sm:$0xff]  }
  0x9e   :  { %2944 = vmatprep.subr.bf16.mxu1 %v3581_v29  ;;  %1608 = vmatprep.mubr.bf16.mxu0 %v2475_v18  ;;  %v1416_v29 = vld [vmem:[%s4604_s2 + $0x80] sm:$0xff]  ;;  %v3314_v18 = vld [vmem:[%s4601_s4 + $0x68] sm:$0xff]  }
  0x9f   :  { %1672 = vmatprep.mubr.bf16.mxu1 %v2477_v19  ;;  %v3315_v19 = vld [vmem:[%s4601_s4 + $0xe8] sm:$0xff]  }
  0xa0   :  { %2905 = vmatpush3.bf16.msra.mxu0 %v3587_v30  ;;  %v1420_v30 = vld [vmem:[%s4604_s2 + $0xa0] sm:$0xff] }
  0xa1   :  { %2945 = vmatpush3.bf16.msra.mxu1 %v3593_v31  ;;  %2970 = vmatprep.subr.bf16.mxu0 %v3612_v40  ;;  %v2484_v31 = vcombine.low %v1409_v24, %v1413_v25  ;;  %v1417_v40 = vld [vmem:[%s4604_s2 + $0x88] sm:$0xff]  ;;  %v3318_v24 = vld [vmem:[%s4601_s4 + $0x60] sm:$0xff]  }
  0xa2   :  { %3010 = vmatprep.subr.bf16.mxu1 %v3617_v41  ;;  %v1421_v41 = vld [vmem:[%s4604_s2 + $0xa8] sm:$0xff]  ;;  %v3319_v25 = vld [vmem:[%s4601_s4 + $0xe0] sm:$0xff]  }
  0xa3   :  { %1609 = vmatmul.mubr.bf16.vlgmr.msra.gmra.mxu0 %v2474_v20  ;;  %v2495_v20 = vcombine.high %v1418_v11, %v1422_v12 }
  0xa4   :  { %1673 = vmatmul.mubr.bf16.vlgmr.msra.gmra.mxu1 %v2476_v23  ;;  %2971 = vmatpush3.bf16.msra.mxu0 %v3622_v42  ;;  %v2491_v42 = vcombine.high %v1416_v29, %v1420_v30  ;;  %v3317_v23 = vld [vmem:[%s4601_s4 + $0xa8] sm:$0xff]  }
  0xa5   :  { %3011 = vmatpush3.bf16.msra.mxu1 %v3628_v43  ;;  %2972 = vmatprep.subr.bf16.mxu0 %v3635_v44  ;;  %v2493_v43 = vcombine.high %v1417_v40, %v1421_v41  ;;  %v2490_v44 = vcombine.low %v1416_v29, %v1420_v30  ;;  %v2496_v29 = vcombine.low %v1419_v15, %v1423_v16  ;;  %v1427_v30 = vld [vmem:[%s4604_s2 + $0xd8] sm:$0xff]  ;;  %v3342_v16 = vld [vmem:[%s4601_s4 + $0x170] sm:$0xff]  }
  0xa6   :  { %3012 = vmatprep.subr.bf16.mxu1 %v3641_v45  ;;  %1616 = vmatprep.mubr.bf16.mxu0 %v2483_v26  ;;  %v1424_v45 = vld [vmem:[%s4604_s2 + $0xc0] sm:$0xff]  ;;  %v2494_v26 = vcombine.low %v1418_v11, %v1422_v12  ;;  %v3340_v12 = vld [vmem:[%s4601_s4 + $0x138] sm:$0xff]  }
  0xa7   :  { %1680 = vmatprep.mubr.bf16.mxu1 %v2485_v27  ;;  %v2498_v54 = vcombine.low %v1424_v45, %v1424_v45  ;;  %v1426_v27 = vld [vmem:[%s4604_s2 + $0xd0] sm:$0xff]  ;;  %v3341_v15 = vld [vmem:[%s4601_s4 + $0x1b8] sm:$0xff]  }
  0xa8   :  { %2973 = vmatpush3.bf16.msra.mxu0 %v3647_v46  ;;  %v2492_v46 = vcombine.low %v1417_v40, %v1421_v41  ;;  %v3322_v40 = vld [vmem:[%s4601_s4 + $0x58] sm:$0xff]  }
  0xa9   :  { %3013 = vmatpush3.bf16.msra.mxu1 %v3653_v47  ;;  %2974 = vmatprep.subr.bf16.mxu0 %v3672_v56  ;;  %v1425_v47 = vld [vmem:[%s4604_s2 + $0xc8] sm:$0xff]  ;;  %v4668_v56 = vld [vmem:[#allocation2_spill] sm:$0xff]  ;;  %v3323_v41 = vld [vmem:[%s4601_s4 + $0xd8] sm:$0xff]  }
  0xaa   :  { %3014 = vmatprep.subr.bf16.mxu1 %v3677_v57  ;;  %v4669_v57 = vld [vmem:[#allocation3_spill] sm:$0xff]  ;;  %v2500_v38 = vcombine.low %v1425_v47, %v1425_v47 }
  0xab   :  { %1617 = vmatmul.mubr.bf16.gmra.mxu0 %v2482_v28  ;;  %v3320_v28 = vld [vmem:[%s4601_s4 + $0x20] sm:$0xff]  }
  0xac   :  { %1681 = vmatmul.mubr.bf16.gmra.mxu1 %v2484_v31  ;;  %2975 = vmatpush3.bf16.msra.mxu0 %v3682_v58  ;;  %v4670_v58 = vld [vmem:[#allocation4_spill] sm:$0xff]  ;;  %v3321_v31 = vld [vmem:[%s4601_s4 + $0xa0] sm:$0xff]  }
  0xad   :  { %3015 = vmatpush3.bf16.msra.mxu1 %v3688_v59  ;;  %2976 = vmatprep.subr.bf16.mxu0 %v3695_v60  ;;  %v2499_v59 = vcombine.high %v1424_v45, %v1424_v45  ;;  %v2501_v60 = vcombine.high %v1425_v47, %v1425_v47  ;;  %v3325_v45 = vld [vmem:[%s4601_s4 + $0x98] sm:$0xff]   ;;  %v3327_v47 = vld [vmem:[%s4601_s4 + $0xd0] sm:$0xff]  }
  0xae   :  { %3016 = vmatprep.subr.bf16.mxu1 %v3701_v61  ;;  %1624 = vmatprep.mubr.bf16.mxu0 %v2491_v42  ;;  %v4671_v61 = vld [vmem:[#allocation5_spill] sm:$0xff]  ;;  %v2503_v42 = vcombine.high %v1426_v27, %v1426_v27 }
  0xaf   :  { %1688 = vmatprep.mubr.bf16.mxu1 %v2493_v43  ;;  %v2505_v43 = vcombine.high %v1427_v30, %v1427_v30 }
  0xb0   :  { %2977 = vmatpush3.bf16.msra.mxu0 %v3707_v62  ;;  %v4673_v62 = vld [vmem:[#allocation7_spill] sm:$0xff] }
  0xb1   :  { %3017 = vmatpush3.bf16.msra.mxu1 %v4668_v56  ;;  %2978 = vmatprep.subr.bf16.mxu0 %v4669_v57  ;;  %v2502_v56 = vcombine.low %v1426_v27, %v1426_v27  ;;  %v1832_v57 = vld [vmem:[%s4605_s3] sm:$0xff] }
  0xb2   :  { %3018 = vmatprep.subr.bf16.mxu1 %v4670_v58  ;;  %v1836_v58 = vld [vmem:[%s4605_s3 + $0x20] sm:$0xff] }
  0xb3   :  { %1625 = vmatmul.mubr.bf16.gmra.mxu0 %v2490_v44  ;;  %v3324_v44 = vld [vmem:[%s4601_s4 + $0x18] sm:$0xff]   ;;  %v2507_v39 = vcombine.high %v1832_v57, %v1836_v58 }
  0xb4   :  { %1689 = vmatmul.mubr.bf16.gmra.mxu1 %v2492_v46  ;;  %2979 = vmatpush3.bf16.msra.mxu0 %v4671_v61  ;;  %v3326_v46 = vld [vmem:[%s4601_s4 + $0x50] sm:$0xff]   ;;  %v1833_v61 = vld [vmem:[%s4605_s3 + $0x8] sm:$0xff] }
  0xb5   :  { %3019 = vmatpush3.bf16.msra.mxu1 %v4672_v49  ;;  %2980 = vmatprep.subr.bf16.mxu0 %v4673_v62  ;;  %v1837_v49 = vld [vmem:[%s4605_s3 + $0x28] sm:$0xff]  ;;  %v3329_v62 = vld [vmem:[%s4601_s4 + $0x90] sm:$0xff]  }
  0xb6   :  { %3020 = vmatprep.subr.bf16.mxu1 %v4674_v53  ;;  %1632 = vmatprep.mubr.bf16.mxu0 %v2499_v59  ;;  %v3328_v59 = vld [vmem:[%s4601_s4 + $0x10] sm:$0xff]   ;;  %v3330_v53 = vld [vmem:[%s4601_s4 + $0x48] sm:$0xff]   ;;  %v2509_v37 = vcombine.high %v1833_v61, %v1837_v49 }
  0xb7   :  { %1696 = vmatprep.mubr.bf16.mxu1 %v2501_v60  ;;  %v2504_v60 = vcombine.low %v1427_v30, %v1427_v30  ;;  %v1853_v30 = vld [vmem:[%s4605_s3 + $0xa8] sm:$0xff] }
  0xb8   :  { %2981 = vmatpush3.bf16.msra.mxu0 %v4675_v52  ;;  %v3332_v52 = vld [vmem:[%s4601_s4 + $0x8] sm:$0xff]  }
  0xb9   :  { %3021 = vmatpush3.bf16.msra.mxu1 %v4660_v55  ;;  %2982 = vmatprep.subr.bf16.mxu0 %v4676_v0  ;;  %v1410_v55 = vld [vmem:[%s4604_s2 + $0x50] sm:$0xff] }
  0xba   :  { %3022 = vmatprep.subr.bf16.mxu1 %v4662_v33  ;;  %v1414_v33 = vld [vmem:[%s4604_s2 + $0x70] sm:$0xff] }
  0xbb   :  { %1633 = vmatmul.mubr.bf16.gmra.mxu0 %v2498_v54  ;;  %v2487_v63 = vcombine.high %v1410_v55, %v1414_v33  ;;  %v2486_v10 = vcombine.low %v1410_v55, %v1414_v33  ;;  %v3331_v54 = vld [vmem:[%s4601_s4 + $0xc8] sm:$0xff]   ;;  %v3336_v55 = vld [vmem:[%s4601_s4] sm:$0xff]   ;;  %v2508_v33 = vcombine.low %v1833_v61, %v1837_v49 }
  0xbc   :  { %1697 = vmatmul.mubr.bf16.gmra.mxu1 %v2500_v38  ;;  %2983 = vmatpush3.bf16.msra.mxu0 %v4663_v51  ;;  %v2480_v51 = vcombine.low %v1403_v32, %v1407_v36  ;;  %v3333_v38 = vld [vmem:[%s4601_s4 + $0x88] sm:$0xff]   ;;  %v3334_v32 = vld [vmem:[%s4601_s4 + $0x40] sm:$0xff]  }
  0xbd   :  { %3023 = vmatpush3.bf16.msra.mxu1 %v4664_v34  ;;  %2984 = vmatprep.subr.bf16.mxu0 %v4677_v3  ;;  %v1411_v34 = vld [vmem:[%s4604_s2 + $0x58] sm:$0xff]  ;;  %v3335_v36 = vld [vmem:[%s4601_s4 + $0xc0] sm:$0xff]  }
  0xbe   :  { %3024 = vmatprep.subr.bf16.mxu1 %v4666_v48  ;;  %1736 = vmatprep.mubr.bf16.mxu0 %v2479_v1  ;;  %v1415_v48 = vld [vmem:[%s4604_s2 + $0x78] sm:$0xff]  ;;  %v2506_v1 = vcombine.low %v1832_v57, %v1836_v58  ;;  %v1840_v3 = vld [vmem:[%s4605_s3 + $0x40] sm:$0xff]  ;;  %v3348_v57 = vld [vmem:[%s4601_s4 + $0x128] sm:$0xff]  }
  0xbf   :  { %1800 = vmatprep.mubr.bf16.mxu1 %v2481_v2  ;;  %v2489_v6 = vcombine.high %v1411_v34, %v1415_v48  ;;  %v2488_v14 = vcombine.low %v1411_v34, %v1415_v48  ;;  %v1841_v34 = vld [vmem:[%s4605_s3 + $0x48] sm:$0xff]  ;;  %v3350_v61 = vld [vmem:[%s4601_s4 + $0x160] sm:$0xff]  }
  0xc0   :  { %2985 = vmatpush3.bf16.msra.mxu0 %v3821_v35  ;;  %v3307_v35 = vld [vmem:[%s4601_s4 + $0xf8] sm:$0xff]   ;;  %v1845_v48 = vld [vmem:[%s4605_s3 + $0x68] sm:$0xff] }
  0xc1   :  { %3025 = vmatpush3.bf16.msra.mxu1 %v4667_v50  ;;  %3050 = vmatprep.subr.bf16.mxu0 %v3306_v5  ;;  %v3309_v50 = vld [vmem:[%s4601_s4 + $0xb8] sm:$0xff]   ;;  %v3337_v5 = vld [vmem:[%s4601_s4 + $0x80] sm:$0xff]   ;;  %v2517_v11 = vcombine.high %v1841_v34, %v1845_v48 }
  0xc2   :  { %3090 = vmatprep.subr.bf16.mxu1 %v3307_v35  ;;  %v3338_v35 = vld [vmem:[%s4601_s4 + $0x178] sm:$0xff]  }
  0xc3   :  { %1737 = vmatmul.mubr.bf16.vlgmr.msra.gmra.mxu0 %v2478_v4  ;;  %v1844_v4 = vld [vmem:[%s4605_s3 + $0x60] sm:$0xff] }
  0xc4   :  { %1801 = vmatmul.mubr.bf16.vlgmr.msra.gmra.mxu1 %v2480_v51  ;;  %3051 = vmatpush3.bf16.msra.mxu0 %v3308_v7  ;;  %v3339_v7 = vld [vmem:[%s4601_s4 + $0x1f8] sm:$0xff]  }
  0xc5   :  { %3091 = vmatpush3.bf16.msra.mxu1 %v3309_v50  ;;  %3052 = vmatprep.subr.bf16.mxu0 %v3310_v8 }
  0xc6   :  { %3092 = vmatprep.subr.bf16.mxu1 %v3311_v9  ;;  %1744 = vmatprep.mubr.bf16.mxu0 %v2487_v63  ;;  %v2515_v9 = vcombine.high %v1840_v3, %v1844_v4 }
  0xc7   :  { %1808 = vmatprep.mubr.bf16.mxu1 %v2489_v6 }
  0xc8   :  { %3053 = vmatpush3.bf16.msra.mxu0 %v3312_v13 }
  0xc9   :  { %3093 = vmatpush3.bf16.msra.mxu1 %v3313_v17  ;;  %3054 = vmatprep.subr.bf16.mxu0 %v3314_v18 }
  0xca   :  { %3094 = vmatprep.subr.bf16.mxu1 %v3315_v19  ;;  %v3343_v19 = vld [vmem:[%s4601_s4 + $0x1f0] sm:$0xff]  }
  0xcb   :  { %1745 = vmatmul.mubr.bf16.gmra.mxu0 %v2486_v10 }
  0xcc   :  { %1809 = vmatmul.mubr.bf16.gmra.mxu1 %v2488_v14  ;;  %3055 = vmatpush3.bf16.msra.mxu0 %v3316_v22  ;;  %v2514_v22 = vcombine.low %v1840_v3, %v1844_v4  ;;  %v3354_v4 = vld [vmem:[%s4601_s4 + $0x158] sm:$0xff]  }
  0xcd   :  { %3095 = vmatpush3.bf16.msra.mxu1 %v3317_v23  ;;  %3056 = vmatprep.subr.bf16.mxu0 %v3318_v24  ;;  %v1848_v23 = vld [vmem:[%s4605_s3 + $0x80] sm:$0xff] }
  0xce   :  { %3096 = vmatprep.subr.bf16.mxu1 %v3319_v25  ;;  %1752 = vmatprep.mubr.bf16.mxu0 %v2495_v20  ;;  %v1852_v24 = vld [vmem:[%s4605_s3 + $0xa0] sm:$0xff]  ;;  %v3344_v25 = vld [vmem:[%s4601_s4 + $0x130] sm:$0xff]  }
  0xcf   :  { %1816 = vmatprep.mubr.bf16.mxu1 %v2497_v21 }
  0xd0   :  { %3057 = vmatpush3.bf16.msra.mxu0 %v3320_v28  ;;  %v2516_v28 = vcombine.low %v1841_v34, %v1845_v48 }
  0xd1   :  { %3097 = vmatpush3.bf16.msra.mxu1 %v3321_v31  ;;  %3058 = vmatprep.subr.bf16.mxu0 %v3322_v40  ;;  %v3345_v31 = vld [vmem:[%s4601_s4 + $0x1b0] sm:$0xff]   ;;  %v3346_v40 = vld [vmem:[%s4601_s4 + $0x168] sm:$0xff]  }
  0xd2   :  { %3098 = vmatprep.subr.bf16.mxu1 %v3323_v41 }
  0xd3   :  { %1753 = vmatmul.mubr.bf16.gmra.mxu0 %v2494_v26 }
  0xd4   :  { %1817 = vmatmul.mubr.bf16.gmra.mxu1 %v2496_v29  ;;  %3059 = vmatpush3.bf16.msra.mxu0 %v3324_v44  ;;  %v1849_v29 = vld [vmem:[%s4605_s3 + $0x88] sm:$0xff] }
  0xd5   :  { %3099 = vmatpush3.bf16.msra.mxu1 %v3325_v45  ;;  %3060 = vmatprep.subr.bf16.mxu0 %v3326_v46  ;;  %v2523_v45 = vcombine.high %v1848_v23, %v1852_v24 }
  0xd6   :  { %3100 = vmatprep.subr.bf16.mxu1 %v3327_v47  ;;  %1760 = vmatprep.mubr.bf16.mxu0 %v2503_v42  ;;  %v3347_v42 = vld [vmem:[%s4601_s4 + $0x1e8] sm:$0xff]  }
  0xd7   :  { %1824 = vmatprep.mubr.bf16.mxu1 %v2505_v43 }
  0xd8   :  { %3061 = vmatpush3.bf16.msra.mxu0 %v3328_v59  ;;  %v3349_v59 = vld [vmem:[%s4601_s4 + $0x1a8] sm:$0xff]  }
  0xd9   :  { %3101 = vmatpush3.bf16.msra.mxu1 %v3329_v62  ;;  %3062 = vmatprep.subr.bf16.mxu0 %v3330_v53  ;;  %v3351_v62 = vld [vmem:[%s4601_s4 + $0x1e0] sm:$0xff]  }
  0xda   :  { %3102 = vmatprep.subr.bf16.mxu1 %v3331_v54 }
  0xdb   :  { %1761 = vmatmul.mubr.bf16.gmra.mxu0 %v2502_v56  ;;  %v2525_v56 = vcombine.high %v1849_v29, %v1853_v30 }
  0xdc   :  { %1825 = vmatmul.mubr.bf16.gmra.mxu1 %v2504_v60  ;;  %3063 = vmatpush3.bf16.msra.mxu0 %v3332_v52  ;;  %v1856_v52 = vld [vmem:[%s4605_s3 + $0xc0] sm:$0xff] }
  0xdd   :  { %3103 = vmatpush3.bf16.msra.mxu1 %v3333_v38  ;;  %3064 = vmatprep.subr.bf16.mxu0 %v3334_v32  ;;  %v3352_v38 = vld [vmem:[%s4601_s4 + $0x120] sm:$0xff]   ;;  %v2524_v32 = vcombine.low %v1849_v29, %v1853_v30  ;;  %v3363_v29 = vld [vmem:[%s4601_s4 + $0x1c8] sm:$0xff]  }
  0xde   :  { %3104 = vmatprep.subr.bf16.mxu1 %v3335_v36  ;;  %2040 = vmatprep.mubr.bf16.mxu0 %v2507_v39  ;;  %v1857_v36 = vld [vmem:[%s4605_s3 + $0xc8] sm:$0xff] }
  0xdf   :  { %2104 = vmatprep.mubr.bf16.mxu1 %v2509_v37  ;;  %v2522_v37 = vcombine.low %v1848_v23, %v1852_v24  ;;  %v2533_v48 = vcombine.high %v1857_v36, %v1857_v36  ;;  %v3361_v23 = vld [vmem:[%s4601_s4 + $0x190] sm:$0xff]   ;;  %v3362_v24 = vld [vmem:[%s4601_s4 + $0x148] sm:$0xff]  }
  0xe0   :  { %3065 = vmatpush3.bf16.msra.mxu0 %v3336_v55  ;;  %v3355_v55 = vld [vmem:[%s4601_s4 + $0x1d8] sm:$0xff]  }
  0xe1   :  { %3105 = vmatpush3.bf16.msra.mxu1 %v3337_v5  ;;  %3130 = vmatprep.subr.bf16.mxu0 %v3338_v35  ;;  %v3356_v5 = vld [vmem:[%s4601_s4 + $0x118] sm:$0xff]  }
  0xe2   :  { %3170 = vmatprep.subr.bf16.mxu1 %v3339_v7 }
  0xe3   :  { %v2586_v0 = vpop.f32.mrf.mxu0  ;;  %2041 = vmatmul.mubr.bf16.vlgmr.msra.gmra.mxu0 %v2506_v1 }
  0xe4   :  { %v2626_v2 = vpop.f32.mrf.mxu1  ;;  %2105 = vmatmul.mubr.bf16.vlgmr.msra.gmra.mxu1 %v2508_v33  ;;  %3131 = vmatpush3.bf16.msra.mxu0 %v3340_v12  ;;  %v2531_v33 = vcombine.high %v1856_v52, %v1856_v52 }
  0xe5   :  { %v2587_v51 = vpop.f32.mrf.mxu0  ;;  %3171 = vmatpush3.bf16.msra.mxu1 %v3341_v15  ;;  %3132 = vmatprep.subr.bf16.mxu0 %v3342_v16  ;;  %v1834_v15 = vld [vmem:[%s4605_s3 + $0x10] sm:$0xff] }
  0xe6   :  { %v2588_v63 = vadd.f32 %v2587_v51, %v2586_v0  ;;  %v2627_v6 = vpop.f32.mrf.mxu1  ;;  %3172 = vmatprep.subr.bf16.mxu1 %v3343_v19  ;;  %2048 = vmatprep.mubr.bf16.mxu0 %v2515_v9  ;;  %v3353_v0 = vld [vmem:[%s4601_s4 + $0x1a0] sm:$0xff]   ;;  %v1838_v16 = vld [vmem:[%s4605_s3 + $0x30] sm:$0xff] }
  0xe7   :  { %v2628_v50 = vadd.f32 %v2627_v6, %v2626_v2  ;;  %v2589_v8 = vpop.f32.mrf.mxu0  ;;  %2112 = vmatprep.mubr.bf16.mxu1 %v2517_v11  ;;  %v3357_v6 = vld [vmem:[%s4601_s4 + $0x198] sm:$0xff]   ;;  %v2511_v30 = vcombine.high %v1834_v15, %v1838_v16 }
  0xe8   :  { %v2629_v10 = vpop.f32.mrf.mxu1  ;;  %3133 = vmatpush3.bf16.msra.mxu0 %v3344_v25 }
  0xe9   :  { %v4298_v13 = vadd.f32 %v2628_v50, %v2588_v63  ;;  %v2590_v14 = vpop.f32.mrf.mxu0  ;;  %3173 = vmatpush3.bf16.msra.mxu1 %v3345_v31  ;;  %3134 = vmatprep.subr.bf16.mxu0 %v3346_v40  ;;  %v3364_v40 = vld [vmem:[%s4601_s4 + $0x108] sm:$0xff]  }
  0xea   :  { %v2591_v17 = vadd.f32 %v2590_v14, %v2589_v8  ;;  %v2630_v18 = vpop.f32.mrf.mxu1  ;;  %3174 = vmatprep.subr.bf16.mxu1 %v3347_v42  ;;  %v3358_v8 = vld [vmem:[%s4601_s4 + $0x150] sm:$0xff]   ;;  %v2530_v14 = vcombine.low %v1856_v52, %v1856_v52 }
  0xeb   :  { %v2631_v20 = vadd.f32 %v2630_v18, %v2629_v10  ;;  %v2592_v21 = vpop.f32.mrf.mxu0  ;;  %2049 = vmatmul.mubr.bf16.gmra.mxu0 %v2514_v22  ;;  %v3359_v10 = vld [vmem:[%s4601_s4 + $0x1d0] sm:$0xff]   ;;  %v1839_v22 = vld [vmem:[%s4605_s3 + $0x38] sm:$0xff] }
  0xec   :  { %v2632_v27 = vpop.f32.mrf.mxu1  ;;  %2113 = vmatmul.mubr.bf16.gmra.mxu1 %v2516_v28  ;;  %3135 = vmatpush3.bf16.msra.mxu0 %v3348_v57 }
  0xed   :  { %v4318_v26 = vadd.f32 %v2631_v20, %v2591_v17  ;;  %v2593_v41 = vpop.f32.mrf.mxu0  ;;  %3175 = vmatpush3.bf16.msra.mxu1 %v3349_v59  ;;  %3136 = vmatprep.subr.bf16.mxu0 %v3350_v61  ;;  %v3360_v17 = vld [vmem:[%s4601_s4 + $0x110] sm:$0xff]   ;;  %v2532_v20 = vcombine.low %v1857_v36, %v1857_v36  ;;  %v3367_v59 = vld [vmem:[%s4601_s4 + $0x1c0] sm:$0xff]   ;;  %v1843_v61 = vld [vmem:[%s4605_s3 + $0x58] sm:$0xff] }
  0xee   :  { %v2594_v43 = vadd.f32 %v2593_v41, %v2592_v21  ;;  %v2633_v44 = vpop.f32.mrf.mxu1  ;;  %3176 = vmatprep.subr.bf16.mxu1 %v3351_v62  ;;  %2056 = vmatprep.mubr.bf16.mxu0 %v2523_v45  ;;  %v1835_v21 = vld [vmem:[%s4605_s3 + $0x18] sm:$0xff] }
  0xef   :  { %v2634_v46 = vadd.f32 %v2633_v44, %v2632_v27  ;;  %v2595_v47 = vpop.f32.mrf.mxu0  ;;  %2120 = vmatprep.mubr.bf16.mxu1 %v2525_v56  ;;  %v2513_v31 = vcombine.high %v1835_v21, %v1839_v22  ;;  %v1846_v56 = vld [vmem:[%s4605_s3 + $0x70] sm:$0xff]  ;;  %v2512_v52 = vcombine.low %v1835_v21, %v1839_v22 }
  0xf0   :  { %v2635_v58 = vpop.f32.mrf.mxu1  ;;  %3137 = vmatpush3.bf16.msra.mxu0 %v3352_v38 }
  0xf1   :  { %v4341_v60 = vadd.f32 %v2634_v46, %v2594_v43  ;;  %v2596_v49 = vpop.f32.mrf.mxu0  ;;  %3177 = vmatpush3.bf16.msra.mxu1 %v3353_v0  ;;  %3138 = vmatprep.subr.bf16.mxu0 %v3354_v4  ;;  %v3365_v43 = vld [vmem:[%s4601_s4 + $0x188] sm:$0xff]   ;;  %v3366_v46 = vld [vmem:[%s4601_s4 + $0x140] sm:$0xff]   ;;  %v1850_v4 = vld [vmem:[%s4605_s3 + $0x90] sm:$0xff] }
  0xf2   :  { %v2597_v53 = vadd.f32 %v2596_v49, %v2595_v47  ;;  %v2636_v54 = vpop.f32.mrf.mxu1  ;;  %3178 = vmatprep.subr.bf16.mxu1 %v3355_v55  ;;  %v1842_v47 = vld [vmem:[%s4605_s3 + $0x50] sm:$0xff]  ;;  %v1847_v49 = vld [vmem:[%s4605_s3 + $0x78] sm:$0xff] }
  0xf3   :  { %v2637_v39 = vadd.f32 %v2636_v54, %v2635_v58  ;;  %v2598_v2 = vpop.f32.mrf.mxu0  ;;  %2057 = vmatmul.mubr.bf16.gmra.mxu0 %v2522_v37  ;;  %v3368_v54 = vld [vmem:[%s4601_s4 + $0x100] sm:$0xff]   ;;  %v2519_v38 = vcombine.high %v1842_v47, %v1846_v56  ;;  %v2521_v36 = vcombine.high %v1843_v61, %v1847_v49  ;;  %v1854_v55 = vld [vmem:[%s4605_s3 + $0xb0] sm:$0xff] }
  0xf4   :  { %v2638_v3 = vpop.f32.mrf.mxu1  ;;  %2121 = vmatmul.mubr.bf16.gmra.mxu1 %v2524_v32  ;;  %3139 = vmatpush3.bf16.msra.mxu0 %v3356_v5  ;;  %v3369_v32 = vld [vmem:[%s4601_s4 + $0x180] sm:$0xff]  }
  0xf5   :  { %v4361_v1 = vadd.f32 %v2637_v39, %v2597_v53  ;;  %v2599_v51 = vpop.f32.mrf.mxu0  ;;  %3179 = vmatpush3.bf16.msra.mxu1 %v3357_v6  ;;  %3140 = vmatprep.subr.bf16.mxu0 %v3358_v8  ;;  %v2510_v53 = vcombine.low %v1834_v15, %v1838_v16  ;;  %v2527_v8 = vcombine.high %v1850_v4, %v1854_v55 }
  0xf6   :  { %v2639_v34 = vpop.f32.mrf.mxu1  ;;  %v2600_v35 = vadd.f32 %v2599_v51, %v2598_v2  ;;  %3180 = vmatprep.subr.bf16.mxu1 %v3359_v10  ;;  %2064 = vmatprep.mubr.bf16.mxu0 %v2531_v33 }
  0xf7   :  { %v2640_v63 = vadd.f32 %v2639_v34, %v2638_v3  ;;  %v2601_v7 = vpop.f32.mrf.mxu0  ;;  %2128 = vmatprep.mubr.bf16.mxu1 %v2533_v48  ;;  %v1851_v34 = vld [vmem:[%s4605_s3 + $0x98] sm:$0xff] }
  0xf8   :  { %v2641_v50 = vpop.f32.mrf.mxu1  ;;  %3141 = vmatpush3.bf16.msra.mxu0 %v3360_v17  ;;  %v1855_v48 = vld [vmem:[%s4605_s3 + $0xb8] sm:$0xff] }
  0xf9   :  { %v4378_v9 = vadd.f32 %v2640_v63, %v2600_v35  ;;  %v2602_v11 = vpop.f32.mrf.mxu0  ;;  %3181 = vmatpush3.bf16.msra.mxu1 %v3361_v23  ;;  %3142 = vmatprep.subr.bf16.mxu0 %v3362_v24  ;;  %v2518_v63 = vcombine.low %v1842_v47, %v1846_v56  ;;  %v1859_v24 = vld [vmem:[%s4605_s3 + $0xd8] sm:$0xff] }
  0xfa   :  { %v2642_v12 = vpop.f32.mrf.mxu1  ;;  %v2603_v18 = vadd.f32 %v2602_v11, %v2601_v7  ;;  %3182 = vmatprep.subr.bf16.mxu1 %v3363_v29  ;;  %v2529_v11 = vcombine.high %v1851_v34, %v1855_v48 }
  0xfb   :  { %v2643_v19 = vadd.f32 %v2642_v12, %v2641_v50  ;;  %v2604_v27 = vpop.f32.mrf.mxu0  ;;  %2065 = vmatmul.mubr.bf16.gmra.mxu0 %v2530_v14  ;;  %v2520_v50 = vcombine.low %v1843_v61, %v1847_v49 }
  0xfc   :  { %v2644_v28 = vpop.f32.mrf.mxu1  ;;  %2129 = vmatmul.mubr.bf16.gmra.mxu1 %v2532_v20  ;;  %3143 = vmatpush3.bf16.msra.mxu0 %v3364_v40 }
  0xfd   :  { %v4404_v25 = vadd.f32 %v2643_v19, %v2603_v18  ;;  %v2605_v41 = vpop.f32.mrf.mxu0  ;;  %3183 = vmatpush3.bf16.msra.mxu1 %v3365_v43  ;;  %3144 = vmatprep.subr.bf16.mxu0 %v3366_v46 }
  0xfe   :  { %v2645_v42 = vpop.f32.mrf.mxu1  ;;  %v2606_v44 = vadd.f32 %v2605_v41, %v2604_v27  ;;  %3184 = vmatprep.subr.bf16.mxu1 %v3367_v59  ;;  %2168 = vmatprep.mubr.bf16.mxu0 %v2511_v30 }
  0xff   :  { %v2646_v45 = vadd.f32 %v2645_v42, %v2644_v28  ;;  %v2607_v57 = vpop.f32.mrf.mxu0  ;;  %2232 = vmatprep.mubr.bf16.mxu1 %v2513_v31  ;;  %v2528_v31 = vcombine.low %v1851_v34, %v1855_v48  ;;  %v2537_v42 = vcombine.high %v1859_v24, %v1859_v24 }
 0x100   :  { %v2647_v58 = vpop.f32.mrf.mxu1  ;;  %3145 = vmatpush3.bf16.msra.mxu0 %v3368_v54 }
 0x101   :  { %v4433_v62 = vadd.f32 %v2646_v45, %v2606_v44  ;;  %v2608_v39 = vpop.f32.mrf.mxu0  ;;  %3185 = vmatpush3.bf16.msra.mxu1 %v3369_v32 }
 0x102   :  { %v2648_v37 = vpop.f32.mrf.mxu1 }
 0x103   :  { %v2666_v0 = vpop.f32.mrf.mxu0  ;;  %2169 = vmatmul.mubr.bf16.vlgmr.msra.gmra.mxu0 %v2510_v53 }
 0x104   :  { %v2706_v2 = vpop.f32.mrf.mxu1  ;;  %2233 = vmatmul.mubr.bf16.vlgmr.msra.gmra.mxu1 %v2512_v52  ;;  %2176 = vmatprep.mubr.bf16.mxu0 %v2519_v38  ;;  %v2536_v52 = vcombine.low %v1859_v24, %v1859_v24 }
 0x105   :  { %v2667_v3 = vpop.f32.mrf.mxu0  ;;  %2240 = vmatprep.mubr.bf16.mxu1 %v2521_v36 }
 0x106   :  { %v2668_v33 = vadd.f32 %v2667_v3, %v2666_v0  ;;  %v2707_v51 = vpop.f32.mrf.mxu1 }
 0x107   :  { %v2708_v5 = vadd.f32 %v2707_v51, %v2706_v2  ;;  %v2669_v35 = vpop.f32.mrf.mxu0 }
 0x108   :  { %v875_v6 = vadd.f32 %v2668_v33, %v4298_v13  ;;  %v2709_v7 = vpop.f32.mrf.mxu1  ;;  %v1858_v13 = vld [vmem:[%s4605_s3 + $0xd0] sm:$0xff] }
 0x109   :  { %v2670_v10 = vpop.f32.mrf.mxu0  ;;  %v2535_v40 = vcombine.high %v1858_v13, %v1858_v13  ;;  %v2534_v54 = vcombine.low %v1858_v13, %v1858_v13 }
 0x10a   :  { %v4454_v12 = vadd.f32 %v2708_v5, %v875_v6  ;;  %v2671_v14 = vadd.f32 %v2670_v10, %v2669_v35  ;;  %v2710_v15 = vpop.f32.mrf.mxu1 }
 0x10b   :  { %v2711_v16 = vadd.f32 %v2710_v15, %v2709_v7  ;;  %v2672_v17 = vpop.f32.mrf.mxu0  ;;  %2177 = vmatmul.mubr.bf16.gmra.mxu0 %v2518_v63 }
 0x10c   :  { %v878_v18 = vadd.f32 %v2671_v14, %v4318_v26  ;;  %v2712_v19 = vpop.f32.mrf.mxu1  ;;  %2241 = vmatmul.mubr.bf16.gmra.mxu1 %v2520_v50  ;;  %2184 = vmatprep.mubr.bf16.mxu0 %v2527_v8  ;;  %v2526_v26 = vcombine.low %v1850_v4, %v1854_v55 }
 0x10d   :  { %v2673_v20 = vpop.f32.mrf.mxu0  ;;  %2248 = vmatprep.mubr.bf16.mxu1 %v2529_v11 }
 0x10e   :  { %v4460_v21 = vadd.f32 %v2711_v16, %v878_v18  ;;  %v2674_v22 = vadd.f32 %v2673_v20, %v2672_v17  ;;  %v2713_v23 = vpop.f32.mrf.mxu1 }
 0x10f   :  { %v2714_v27 = vadd.f32 %v2713_v23, %v2712_v19  ;;  %v2675_v28 = vpop.f32.mrf.mxu0 }
 0x110   :  { %v883_v29 = vadd.f32 %v2674_v22, %v4341_v60  ;;  %v2715_v30 = vpop.f32.mrf.mxu1 }
 0x111   :  { %v2676_v41 = vpop.f32.mrf.mxu0 }
 0x112   :  { %v4466_v43 = vadd.f32 %v2714_v27, %v883_v29  ;;  %v2677_v44 = vadd.f32 %v2676_v41, %v2675_v28  ;;  %v2716_v45 = vpop.f32.mrf.mxu1 }
 0x113   :  { %v2717_v46 = vadd.f32 %v2716_v45, %v2715_v30  ;;  %v2678_v47 = vpop.f32.mrf.mxu0  ;;  %2185 = vmatmul.mubr.bf16.gmra.mxu0 %v2526_v26 }
 0x114   :  { %v886_v56 = vadd.f32 %v2677_v44, %v4361_v1  ;;  %v2718_v57 = vpop.f32.mrf.mxu1  ;;  %2249 = vmatmul.mubr.bf16.gmra.mxu1 %v2528_v31  ;;  %2192 = vmatprep.mubr.bf16.mxu0 %v2535_v40 }
 0x115   :  { %v2679_v58 = vpop.f32.mrf.mxu0  ;;  %2256 = vmatprep.mubr.bf16.mxu1 %v2537_v42 }
 0x116   :  { %v4469_v60 = vadd.f32 %v2717_v46, %v886_v56  ;;  %v2680_v59 = vadd.f32 %v2679_v58, %v2678_v47  ;;  %v2719_v61 = vpop.f32.mrf.mxu1 }
 0x117   :  { %v2720_v49 = vadd.f32 %v2719_v61, %v2718_v57  ;;  %v2681_v53 = vpop.f32.mrf.mxu0 }
 0x118   :  { %v891_v39 = vadd.f32 %v2680_v59, %v4378_v9  ;;  %v2721_v37 = vpop.f32.mrf.mxu1 }
 0x119   :  { %v2682_v38 = vpop.f32.mrf.mxu0 }
 0x11a   :  { %v4472_v32 = vadd.f32 %v2720_v49, %v891_v39  ;;  %v2683_v1 = vadd.f32 %v2682_v38, %v2681_v53  ;;  %v2722_v36 = vpop.f32.mrf.mxu1 }
 0x11b   :  { %v2723_v0 = vadd.f32 %v2722_v36, %v2721_v37  ;;  %v2684_v2 = vpop.f32.mrf.mxu0  ;;  %2193 = vmatmul.mubr.bf16.gmra.mxu0 %v2534_v54 }
 0x11c   :  { %v894_v3 = vadd.f32 %v2683_v1, %v4404_v25  ;;  %v2724_v4 = vpop.f32.mrf.mxu1  ;;  %2257 = vmatmul.mubr.bf16.gmra.mxu1 %v2536_v52 }
 0x11d   :  { %v2685_v55 = vpop.f32.mrf.mxu0 }
 0x11e   :  { %v4475_v33 = vadd.f32 %v2723_v0, %v894_v3  ;;  %v2686_v51 = vadd.f32 %v2685_v55, %v2684_v2  ;;  %v2725_v34 = vpop.f32.mrf.mxu1 }
 0x11f   :  { %v2726_v9 = vadd.f32 %v2725_v34, %v2724_v4  ;;  %v2687_v48 = vpop.f32.mrf.mxu0 }
 0x120   :  { %4678 = vst [vmem:[#allocation10_spill] sm:$0xff] %v4475_v33  ;;  %v899_v5 = vadd.f32 %v2686_v51, %v4433_v62  ;;  %v2727_v35 = vpop.f32.mrf.mxu1 }
 0x121   :  { %v2688_v63 = vpop.f32.mrf.mxu0 }
 0x122   :  { %v4478_v6 = vadd.f32 %v2726_v9, %v899_v5  ;;  %v2728_v7 = vpop.f32.mrf.mxu1 }
 0x123   :  { %v2746_v50 = vpop.f32.mrf.mxu0 }
 0x124   :  { %4679 = vst [vmem:[#allocation12_spill] sm:$0xff] %v4478_v6  ;;  %v2786_v8 = vpop.f32.mrf.mxu1 }
 0x125   :  { %v2747_v10 = vpop.f32.mrf.mxu0 }
 0x126   :  { %v2748_v25 = vadd.f32 %v2747_v10, %v2746_v50  ;;  %v2787_v11 = vpop.f32.mrf.mxu1 }
 0x127   :  { %v2788_v14 = vadd.f32 %v2787_v11, %v2786_v8  ;;  %v2749_v15 = vpop.f32.mrf.mxu0 }
 0x128   :  { %v2789_v16 = vpop.f32.mrf.mxu1 }
 0x129   :  { %v1243_v17 = vadd.f32 %v2788_v14, %v2748_v25  ;;  %v2750_v18 = vpop.f32.mrf.mxu0 }
 0x12a   :  { %v2751_v19 = vadd.f32 %v2750_v18, %v2749_v15  ;;  %v2790_v20 = vpop.f32.mrf.mxu1 }
 0x12b   :  { %v2791_v13 = vadd.f32 %v2790_v20, %v2789_v16  ;;  %v2752_v22 = vpop.f32.mrf.mxu0 }
 0x12c   :  { %v2792_v62 = vpop.f32.mrf.mxu1 }
 0x12d   :  { %v1246_v23 = vadd.f32 %v2791_v13, %v2751_v19  ;;  %v2753_v24 = vpop.f32.mrf.mxu0 }
 0x12e   :  { %v2754_v27 = vadd.f32 %v2753_v24, %v2752_v22  ;;  %v2793_v28 = vpop.f32.mrf.mxu1 }
 0x12f   :  { %v2794_v26 = vadd.f32 %v2793_v28, %v2792_v62  ;;  %v2755_v29 = vpop.f32.mrf.mxu0 }
 0x130   :  { %v2795_v30 = vpop.f32.mrf.mxu1 }
 0x131   :  { %v1251_v31 = vadd.f32 %v2794_v26, %v2754_v27  ;;  %v2756_v40 = vpop.f32.mrf.mxu0 }
 0x132   :  { %v2757_v41 = vadd.f32 %v2756_v40, %v2755_v29  ;;  %v2796_v42 = vpop.f32.mrf.mxu1 }
 0x133   :  { %v2797_v44 = vadd.f32 %v2796_v42, %v2795_v30  ;;  %v2758_v45 = vpop.f32.mrf.mxu0 }
 0x134   :  { %v2798_v46 = vpop.f32.mrf.mxu1 }
 0x135   :  { %v1254_v47 = vadd.f32 %v2797_v44, %v2757_v41  ;;  %v2759_v56 = vpop.f32.mrf.mxu0 }
 0x136   :  { %v2760_v57 = vadd.f32 %v2759_v56, %v2758_v45  ;;  %v2799_v58 = vpop.f32.mrf.mxu1 }
 0x137   :  { %v2800_v59 = vadd.f32 %v2799_v58, %v2798_v46  ;;  %v2761_v61 = vpop.f32.mrf.mxu0 }
 0x138   :  { %v2801_v49 = vpop.f32.mrf.mxu1 }
 0x139   :  { %v1259_v53 = vadd.f32 %v2800_v59, %v2760_v57  ;;  %v2762_v54 = vpop.f32.mrf.mxu0 }
 0x13a   :  { %v2763_v39 = vadd.f32 %v2762_v54, %v2761_v61  ;;  %v2802_v37 = vpop.f32.mrf.mxu1 }
 0x13b   :  { %v2803_v52 = vadd.f32 %v2802_v37, %v2801_v49  ;;  %v2764_v38 = vpop.f32.mrf.mxu0 }
 0x13c   :  { %v2804_v1 = vpop.f32.mrf.mxu1 }
 0x13d   :  { %v1262_v36 = vadd.f32 %v2803_v52, %v2763_v39  ;;  %v2765_v0 = vpop.f32.mrf.mxu0 }
 0x13e   :  { %v2766_v2 = vadd.f32 %v2765_v0, %v2764_v38  ;;  %v2805_v3 = vpop.f32.mrf.mxu1 }
 0x13f   :  { %v2806_v4 = vadd.f32 %v2805_v3, %v2804_v1  ;;  %v2767_v55 = vpop.f32.mrf.mxu0 }
 0x140   :  { %v2807_v51 = vpop.f32.mrf.mxu1 }
 0x141   :  { %v4480_v34 = vadd.f32 %v2806_v4, %v2766_v2  ;;  %v2768_v9 = vpop.f32.mrf.mxu0 }
 0x142   :  { %v2808_v48 = vpop.f32.mrf.mxu1 }
 0x143   :  { %v2826_v5 = vpop.f32.mrf.mxu0 }
 0x144   :  { %v2866_v35 = vpop.f32.mrf.mxu1 }
 0x145   :  { %v2827_v63 = vpop.f32.mrf.mxu0 }
 0x146   :  { %v2828_v7 = vadd.f32 %v2827_v63, %v2826_v5  ;;  %v2867_v50 = vpop.f32.mrf.mxu1 }
 0x147   :  { %v2868_v8 = vadd.f32 %v2867_v50, %v2866_v35  ;;  %v2829_v10 = vpop.f32.mrf.mxu0 }
 0x148   :  { %v1307_v25 = vadd.f32 %v2828_v7, %v1243_v17  ;;  %v2869_v11 = vpop.f32.mrf.mxu1 }
 0x149   :  { %v2830_v14 = vpop.f32.mrf.mxu0 }
 0x14a   :  { %v4482_v15 = vadd.f32 %v2868_v8, %v1307_v25  ;;  %v2831_v16 = vadd.f32 %v2830_v14, %v2829_v10  ;;  %v2870_v18 = vpop.f32.mrf.mxu1 }
 0x14b   :  { %v2871_v19 = vadd.f32 %v2870_v18, %v2869_v11  ;;  %v2832_v20 = vpop.f32.mrf.mxu0 }
 0x14c   :  { %v1310_v22 = vadd.f32 %v2831_v16, %v1246_v23  ;;  %v2872_v62 = vpop.f32.mrf.mxu1 }
 0x14d   :  { %v2833_v24 = vpop.f32.mrf.mxu0 }
 0x14e   :  { %v4486_v27 = vadd.f32 %v2871_v19, %v1310_v22  ;;  %v2834_v28 = vadd.f32 %v2833_v24, %v2832_v20  ;;  %v2873_v26 = vpop.f32.mrf.mxu1 }
 0x14f   :  { %v2874_v29 = vadd.f32 %v2873_v26, %v2872_v62  ;;  %v2835_v17 = vpop.f32.mrf.mxu0 }
 0x150   :  { %v1315_v40 = vadd.f32 %v2834_v28, %v1251_v31  ;;  %v2875_v41 = vpop.f32.mrf.mxu1 }
 0x151   :  { %v2836_v42 = vpop.f32.mrf.mxu0 }
 0x152   :  { %v4490_v44 = vadd.f32 %v2874_v29, %v1315_v40  ;;  %v2837_v45 = vadd.f32 %v2836_v42, %v2835_v17  ;;  %v2876_v46 = vpop.f32.mrf.mxu1 }
 0x153   :  { %v2877_v56 = vadd.f32 %v2876_v46, %v2875_v41  ;;  %v2838_v23 = vpop.f32.mrf.mxu0 }
 0x154   :  { %v1318_v58 = vadd.f32 %v2837_v45, %v1254_v47  ;;  %v2878_v59 = vpop.f32.mrf.mxu1 }
 0x155   :  { %v2839_v61 = vpop.f32.mrf.mxu0 }
 0x156   :  { %v4494_v49 = vadd.f32 %v2877_v56, %v1318_v58  ;;  %v2840_v54 = vadd.f32 %v2839_v61, %v2838_v23  ;;  %v2879_v39 = vpop.f32.mrf.mxu1 }
 0x157   :  { %v2880_v37 = vadd.f32 %v2879_v39, %v2878_v59  ;;  %v2841_v31 = vpop.f32.mrf.mxu0 }
 0x158   :  { %v1323_v38 = vadd.f32 %v2840_v54, %v1259_v53  ;;  %v2881_v1 = vpop.f32.mrf.mxu1 }
 0x159   :  { %v2842_v0 = vpop.f32.mrf.mxu0 }
 0x15a   :  { %v4498_v2 = vadd.f32 %v2880_v37, %v1323_v38  ;;  %v2843_v3 = vadd.f32 %v2842_v0, %v2841_v31  ;;  %v2882_v4 = vpop.f32.mrf.mxu1 }
 0x15b   :  { %v2883_v55 = vadd.f32 %v2882_v4, %v2881_v1  ;;  %v2844_v47 = vpop.f32.mrf.mxu0 }
 0x15c   :  { %v1326_v9 = vadd.f32 %v2843_v3, %v1262_v36  ;;  %v2884_v48 = vpop.f32.mrf.mxu1 }
 0x15d   :  { %v2845_v5 = vpop.f32.mrf.mxu0 }
 0x15e   :  { %v4502_v35 = vadd.f32 %v2883_v55, %v1326_v9  ;;  %v2846_v63 = vadd.f32 %v2845_v5, %v2844_v47  ;;  %v2885_v7 = vpop.f32.mrf.mxu1 }
 0x15f   :  { %v2886_v50 = vadd.f32 %v2885_v7, %v2884_v48  ;;  %v2847_v53 = vpop.f32.mrf.mxu0 }
 0x160   :  { %4680 = vst [vmem:[#allocation13_spill] sm:$0xff] %v4502_v35  ;;  %v1331_v10 = vadd.f32 %v2846_v63, %v4480_v34  ;;  %v2887_v25 = vpop.f32.mrf.mxu1 }
 0x161   :  { %v2848_v11 = vpop.f32.mrf.mxu0 }
 0x162   :  { %v4507_v14 = vadd.f32 %v2886_v50, %v1331_v10  ;;  %v2888_v16 = vpop.f32.mrf.mxu1 }
 0x163   :  { %v2906_v18 = vpop.f32.mrf.mxu0 }
 0x164   :  { %4681 = vst [vmem:[#allocation14_spill] sm:$0xff] %v4507_v14  ;;  %v2946_v19 = vpop.f32.mrf.mxu1 }
 0x165   :  { %v2907_v20 = vpop.f32.mrf.mxu0 }
 0x166   :  { %v2908_v22 = vadd.f32 %v2907_v20, %v2906_v18  ;;  %v2947_v62 = vpop.f32.mrf.mxu1 }
 0x167   :  { %v2948_v24 = vadd.f32 %v2947_v62, %v2946_v19  ;;  %v2909_v28 = vpop.f32.mrf.mxu0 }
 0x168   :  { %v2949_v26 = vpop.f32.mrf.mxu1 }
 0x169   :  { %v1675_v29 = vadd.f32 %v2948_v24, %v2908_v22  ;;  %v2910_v17 = vpop.f32.mrf.mxu0 }
 0x16a   :  { %v2911_v40 = vadd.f32 %v2910_v17, %v2909_v28  ;;  %v2950_v34 = vpop.f32.mrf.mxu1 }
 0x16b   :  { %v2951_v41 = vadd.f32 %v2950_v34, %v2949_v26  ;;  %v2912_v42 = vpop.f32.mrf.mxu0 }
 0x16c   :  { %v2952_v45 = vpop.f32.mrf.mxu1 }
 0x16d   :  { %v1678_v46 = vadd.f32 %v2951_v41, %v2911_v40  ;;  %v2913_v56 = vpop.f32.mrf.mxu0 }
 0x16e   :  { %v2914_v23 = vadd.f32 %v2913_v56, %v2912_v42  ;;  %v2953_v58 = vpop.f32.mrf.mxu1 }
 0x16f   :  { %v2954_v59 = vadd.f32 %v2953_v58, %v2952_v45  ;;  %v2915_v61 = vpop.f32.mrf.mxu0 }
 0x170   :  { %v2955_v54 = vpop.f32.mrf.mxu1 }
 0x171   :  { %v1683_v39 = vadd.f32 %v2954_v59, %v2914_v23  ;;  %v2916_v37 = vpop.f32.mrf.mxu0 }
 0x172   :  { %v2917_v31 = vadd.f32 %v2916_v37, %v2915_v61  ;;  %v2956_v38 = vpop.f32.mrf.mxu1 }
 0x173   :  { %v2957_v1 = vadd.f32 %v2956_v38, %v2955_v54  ;;  %v2918_v0 = vpop.f32.mrf.mxu0 }
 0x174   :  { %v2958_v3 = vpop.f32.mrf.mxu1 }
 0x175   :  { %v1686_v4 = vadd.f32 %v2957_v1, %v2917_v31  ;;  %v2919_v55 = vpop.f32.mrf.mxu0 }
 0x176   :  { %v2920_v47 = vadd.f32 %v2919_v55, %v2918_v0  ;;  %v2959_v9 = vpop.f32.mrf.mxu1 }
 0x177   :  { %v2960_v48 = vadd.f32 %v2959_v9, %v2958_v3  ;;  %v2921_v5 = vpop.f32.mrf.mxu0 }
 0x178   :  { %v2961_v63 = vpop.f32.mrf.mxu1 }
 0x179   :  { %v1691_v7 = vadd.f32 %v2960_v48, %v2920_v47  ;;  %v2922_v50 = vpop.f32.mrf.mxu0 }
 0x17a   :  { %v2923_v53 = vadd.f32 %v2922_v50, %v2921_v5  ;;  %v2962_v10 = vpop.f32.mrf.mxu1 }
 0x17b   :  { %v2963_v25 = vadd.f32 %v2962_v10, %v2961_v63  ;;  %v2924_v11 = vpop.f32.mrf.mxu0 }
 0x17c   :  { %v2964_v16 = vpop.f32.mrf.mxu1 }
 0x17d   :  { %v1694_v18 = vadd.f32 %v2963_v25, %v2923_v53  ;;  %v2925_v19 = vpop.f32.mrf.mxu0 }
 0x17e   :  { %v2926_v20 = vadd.f32 %v2925_v19, %v2924_v11  ;;  %v2965_v22 = vpop.f32.mrf.mxu1 }
 0x17f   :  { %v2966_v62 = vadd.f32 %v2965_v22, %v2964_v16  ;;  %v2927_v24 = vpop.f32.mrf.mxu0 }
 0x180   :  { %v2967_v28 = vpop.f32.mrf.mxu1 }
 0x181   :  { %v1699_v26 = vadd.f32 %v2966_v62, %v2926_v20  ;;  %v2928_v17 = vpop.f32.mrf.mxu0 }
 0x182   :  { %v2968_v40 = vpop.f32.mrf.mxu1 }
 0x183   :  { %v2986_v34 = vpop.f32.mrf.mxu0 }
 0x184   :  { %v3026_v41 = vpop.f32.mrf.mxu1 }
 0x185   :  { %v2987_v42 = vpop.f32.mrf.mxu0 }
 0x186   :  { %v2988_v45 = vadd.f32 %v2987_v42, %v2986_v34  ;;  %v3027_v56 = vpop.f32.mrf.mxu1 }
 0x187   :  { %v3028_v23 = vadd.f32 %v3027_v56, %v3026_v41  ;;  %v2989_v58 = vpop.f32.mrf.mxu0 }
 0x188   :  { %v1739_v59 = vadd.f32 %v2988_v45, %v1675_v29  ;;  %v3029_v61 = vpop.f32.mrf.mxu1 }
 0x189   :  { %v2990_v54 = vpop.f32.mrf.mxu0 }
 0x18a   :  { %v4511_v37 = vadd.f32 %v3028_v23, %v1739_v59  ;;  %v2991_v31 = vadd.f32 %v2990_v54, %v2989_v58  ;;  %v3030_v38 = vpop.f32.mrf.mxu1 }
 0x18b   :  { %v3031_v1 = vadd.f32 %v3030_v38, %v3029_v61  ;;  %v2992_v0 = vpop.f32.mrf.mxu0 }
 0x18c   :  { %v1742_v3 = vadd.f32 %v2991_v31, %v1678_v46  ;;  %v3032_v55 = vpop.f32.mrf.mxu1 }
 0x18d   :  { %v2993_v47 = vpop.f32.mrf.mxu0 }
 0x18e   :  { %v4513_v9 = vadd.f32 %v3031_v1, %v1742_v3  ;;  %v2994_v48 = vadd.f32 %v2993_v47, %v2992_v0  ;;  %v3033_v5 = vpop.f32.mrf.mxu1 }
 0x18f   :  { %v3034_v63 = vadd.f32 %v3033_v5, %v3032_v55  ;;  %v2995_v50 = vpop.f32.mrf.mxu0 }
 0x190   :  { %v1747_v53 = vadd.f32 %v2994_v48, %v1683_v39  ;;  %v3035_v10 = vpop.f32.mrf.mxu1 }
 0x191   :  { %v2996_v29 = vpop.f32.mrf.mxu0 }
 0x192   :  { %v4515_v25 = vadd.f32 %v3034_v63, %v1747_v53  ;;  %v2997_v11 = vadd.f32 %v2996_v29, %v2995_v50  ;;  %v3036_v16 = vpop.f32.mrf.mxu1 }
 0x193   :  { %v3037_v19 = vadd.f32 %v3036_v16, %v3035_v10  ;;  %v2998_v20 = vpop.f32.mrf.mxu0 }
 0x194   :  { %v1750_v22 = vadd.f32 %v2997_v11, %v1686_v4  ;;  %v3038_v62 = vpop.f32.mrf.mxu1 }
 0x195   :  { %v2999_v46 = vpop.f32.mrf.mxu0 }
 0x196   :  { %v4517_v24 = vadd.f32 %v3037_v19, %v1750_v22  ;;  %v3000_v28 = vadd.f32 %v2999_v46, %v2998_v20  ;;  %v3039_v17 = vpop.f32.mrf.mxu1 }
 0x197   :  { %v3040_v40 = vadd.f32 %v3039_v17, %v3038_v62  ;;  %v3001_v34 = vpop.f32.mrf.mxu0 }
 0x198   :  { %v1755_v41 = vadd.f32 %v3000_v28, %v1691_v7  ;;  %v3041_v42 = vpop.f32.mrf.mxu1 }
 0x199   :  { %v3002_v39 = vpop.f32.mrf.mxu0 }
 0x19a   :  { %v4519_v45 = vadd.f32 %v3040_v40, %v1755_v41  ;;  %v3003_v56 = vadd.f32 %v3002_v39, %v3001_v34  ;;  %v3042_v23 = vpop.f32.mrf.mxu1 }
 0x19b   :  { %v3043_v58 = vadd.f32 %v3042_v23, %v3041_v42  ;;  %v3004_v59 = vpop.f32.mrf.mxu0 }
 0x19c   :  { %v1758_v61 = vadd.f32 %v3003_v56, %v1694_v18  ;;  %v3044_v54 = vpop.f32.mrf.mxu1 }
 0x19d   :  { %v3005_v4 = vpop.f32.mrf.mxu0 }
 0x19e   :  { %v4521_v31 = vadd.f32 %v3043_v58, %v1758_v61  ;;  %v3006_v38 = vadd.f32 %v3005_v4, %v3004_v59  ;;  %v3045_v1 = vpop.f32.mrf.mxu1 }
 0x19f   :  { %v3046_v0 = vadd.f32 %v3045_v1, %v3044_v54  ;;  %v3007_v3 = vpop.f32.mrf.mxu0 }
 0x1a0   :  { %v1763_v55 = vadd.f32 %v3006_v38, %v1699_v26  ;;  %v3047_v47 = vpop.f32.mrf.mxu1 }
 0x1a1   :  { %v3008_v7 = vpop.f32.mrf.mxu0 }
 0x1a2   :  { %v4523_v48 = vadd.f32 %v3046_v0, %v1763_v55  ;;  %v3048_v5 = vpop.f32.mrf.mxu1 }
 0x1a3   :  { %v3066_v63 = vpop.f32.mrf.mxu0 }
 0x1a4   :  { %4682 = vst [vmem:[#allocation16_spill] sm:$0xff] %v4523_v48  ;;  %v3106_v50 = vpop.f32.mrf.mxu1 }
 0x1a5   :  { %v3067_v53 = vpop.f32.mrf.mxu0 }
 0x1a6   :  { %v3107_v10 = vpop.f32.mrf.mxu1  ;;  %v3068_v3 = vadd.f32 %v3067_v53, %v3066_v63 }
 0x1a7   :  { %v3069_v29 = vpop.f32.mrf.mxu0  ;;  %v3108_v55 = vadd.f32 %v3107_v10, %v3106_v50 }
 0x1a8   :  { %v3109_v18 = vpop.f32.mrf.mxu1 }
 0x1a9   :  { %v3070_v11 = vpop.f32.mrf.mxu0  ;;  %v2107_v8 = vadd.f32 %v3108_v55, %v3068_v3 }
 0x1aa   :  { %v3110_v16 = vpop.f32.mrf.mxu1  ;;  %v3071_v51 = vadd.f32 %v3070_v11, %v3069_v29 }
 0x1ab   :  { %v3072_v19 = vpop.f32.mrf.mxu0  ;;  %v3111_v52 = vadd.f32 %v3110_v16, %v3109_v18 }
 0x1ac   :  { %v3112_v20 = vpop.f32.mrf.mxu1 }
 0x1ad   :  { %v3073_v22 = vpop.f32.mrf.mxu0 }
 0x1ae   :  { %v3113_v62 = vpop.f32.mrf.mxu1  ;;  %v3074_v35 = vadd.f32 %v3073_v22, %v3072_v19  ;;  %v4684_v22 = vmax.f32 %v4460_v21, %v4486_v27 }
 0x1af   :  { %v3075_v46 = vpop.f32.mrf.mxu0  ;;  %v3114_v33 = vadd.f32 %v3113_v62, %v3112_v20 }
 0x1b0   :  { %v3115_v28 = vpop.f32.mrf.mxu1 }
 0x1b1   :  { %v3076_v26 = vpop.f32.mrf.mxu0  ;;  %v2115_v18 = vadd.f32 %v3114_v33, %v3074_v35 }
 0x1b2   :  { %v3116_v17 = vpop.f32.mrf.mxu1 }
 0x1b3   :  { %v3078_v40 = vpop.f32.mrf.mxu0  ;;  %v3117_v16 = vadd.f32 %v3116_v17, %v3115_v28 }
 0x1b4   :  { %v3118_v34 = vpop.f32.mrf.mxu1 }
 0x1b5   :  { %v3079_v41 = vpop.f32.mrf.mxu0 }
 0x1b6   :  { %v3119_v42 = vpop.f32.mrf.mxu1 }
 0x1b7   :  { %v4525_v39 = vpop.f32.mrf.mxu0  ;;  %v3120_v19 = vadd.f32 %v3119_v42, %v3118_v34 }
 0x1b8   :  { %v4527_v56 = vpop.f32.mrf.mxu1 }
 0x1b9   :  { %v4529_v23 = vpop.f32.mrf.mxu0 }
 0x1ba   :  { %v4531_v58 = vpop.f32.mrf.mxu1 }
 0x1bb   :  { %v4533_v59 = vpop.f32.mrf.mxu0  ;;  %v3123_v42 = vadd.f32 %v4531_v58, %v4527_v56 }
 0x1bc   :  { %v4535_v61 = vpop.f32.mrf.mxu1 }
 0x1bd   :  { %v4537_v54 = vpop.f32.mrf.mxu0 }
 0x1be   :  { %v4539_v4 = vpop.f32.mrf.mxu1  ;;  %v3086_v56 = vadd.f32 %v4537_v54, %v4533_v59 }
 0x1bf   :  { %v3087_v38 = vpop.f32.mrf.mxu0 }
 0x1c0   :  { %v3127_v1 = vpop.f32.mrf.mxu1 }
 0x1c1   :  { %v3088_v0 = vpop.f32.mrf.mxu0  ;;  %v2110_v1 = vadd.f32 %v3111_v52, %v3071_v51 }
 0x1c2   :  { %v3128_v47 = vpop.f32.mrf.mxu1 }
 0x1c3   :  { %v3146_v7 = vpop.f32.mrf.mxu0 }
 0x1c4   :  { %v3186_v5 = vpop.f32.mrf.mxu1 }
 0x1c5   :  { %v3147_v36 = vpop.f32.mrf.mxu0 }
 0x1c6   :  { %v3148_v57 = vadd.f32 %v3147_v36, %v3146_v7  ;;  %v3187_v30 = vpop.f32.mrf.mxu1  ;;  %v3077_v36 = vadd.f32 %v3076_v26, %v3075_v46 }
 0x1c7   :  { %v3149_v13 = vpop.f32.mrf.mxu0  ;;  %v3188_v6 = vadd.f32 %v3187_v30, %v3186_v5  ;;  %v4683_v30 = vmax.f32 %v4454_v12, %v4482_v15 }
 0x1c8   :  { %v2171_v14 = vadd.f32 %v3148_v57, %v2107_v8  ;;  %v3189_v48 = vpop.f32.mrf.mxu1  ;;  %v2118_v15 = vadd.f32 %v3117_v16, %v3077_v36 }
 0x1c9   :  { %v3150_v38 = vpop.f32.mrf.mxu0 }
 0x1ca   :  { %v2235_v0 = vadd.f32 %v3188_v6, %v2171_v14  ;;  %v3151_v63 = vadd.f32 %v3150_v38, %v3149_v13  ;;  %v3190_v50 = vpop.f32.mrf.mxu1  ;;  %v4548_v6 = vld [vmem:[%s4606_s5] ss:$0 sm:$0xff] }
 0x1cb   :  { %v3152_v53 = vpop.f32.mrf.mxu0  ;;  %v3191_v3 = vadd.f32 %v3190_v50, %v3189_v48  ;;  %v3080_v48 = vadd.f32 %v3079_v41, %v3078_v40  ;;  %v3083_v41 = vadd.f32 %v4529_v23, %v4525_v39  ;;  %v3126_v23 = vadd.f32 %v4539_v4, %v4535_v61 }
 0x1cc   :  { %v2271_v10 = vmax.f32 %v4511_v37, %v2235_v0  ;;  %v2174_v47 = vadd.f32 %v3151_v63, %v2110_v1  ;;  %v3192_v29 = vpop.f32.mrf.mxu1  ;;  %v4685_v1 = vmax.f32 %v4466_v43, %v4490_v44 }
 0x1cd   :  { %v3153_v11 = vpop.f32.mrf.mxu0  ;;  %v2123_v34 = vadd.f32 %v3120_v19, %v3080_v48  ;;  %v2126_v44 = vadd.f32 %v3123_v42, %v3083_v41 }
 0x1ce   :  { %v2278_v57 = vmax.f32 %v4683_v30, %v2271_v10  ;;  %v2238_v13 = vadd.f32 %v3191_v3, %v2174_v47  ;;  %v3154_v52 = vadd.f32 %v3153_v11, %v3152_v53  ;;  %v3193_v51 = vpop.f32.mrf.mxu1 }
 0x1cf   :  { %v3155_v8 = vpop.f32.mrf.mxu0  ;;  %v3194_v33 = vadd.f32 %v3193_v51, %v3192_v29 }
 0x1d0   :  { %v2272_v14 = vmax.f32 %v4513_v9, %v2238_v13  ;;  %v2179_v37 = vadd.f32 %v3154_v52, %v2115_v18  ;;  %v3195_v35 = vpop.f32.mrf.mxu1  ;;  %v2292_v20 = vadd.f32 %v4548_v6, %v2278_v57  ;;  %v2131_v13 = vadd.f32 %v3126_v23, %v3086_v56 }
 0x1d1   :  { %v3156_v12 = vpop.f32.mrf.mxu0 }
 0x1d2   :  { %v2279_v62 = vmax.f32 %v4684_v22, %v2272_v14  ;;  %v2243_v46 = vadd.f32 %v3194_v33, %v2179_v37  ;;  %v3157_v28 = vadd.f32 %v3156_v12, %v3155_v8  ;;  %v3196_v26 = vpop.f32.mrf.mxu1  ;;  %v2299_v21 = vmax.f32 %v2292_v20, 0.0 }
 0x1d3   :  { %v3158_v17 = vpop.f32.mrf.mxu0  ;;  %v3197_v5 = vadd.f32 %v3196_v26, %v3195_v35  ;;  %v4687_v14 = vmax.f32 %v4472_v32, %v4498_v2  ;;  %v4689_v32 = vld [vmem:[#allocation13_spill] sm:$0xff] }
 0x1d4   :  { %v2293_v55 = vadd.f32 %v4548_v6, %v2279_v62  ;;  %v2273_v9 = vmax.f32 %v4515_v25, %v2243_v46  ;;  %v2182_v7 = vadd.f32 %v3157_v28, %v2118_v15  ;;  %v3198_v40 = vpop.f32.mrf.mxu1  ;;  %v4688_v62 = vld [vmem:[#allocation10_spill] sm:$0xff] }
 0x1d5   :  { %v3159_v27 = vpop.f32.mrf.mxu0  ;;  %v4690_v2 = vmax.f32 %v4688_v62, %v4689_v32 }
 0x1d6   :  { %v2300_v38 = vmax.f32 %v2293_v55, 0.0  ;;  %v2280_v0 = vmax.f32 %v4685_v1, %v2273_v9  ;;  %v2246_v63 = vadd.f32 %v3197_v5, %v2182_v7  ;;  %v3160_v50 = vadd.f32 %v3159_v27, %v3158_v17  ;;  %v3199_v25 = vpop.f32.mrf.mxu1  ;;  %v4691_v55 = vld [vmem:[#allocation16_spill] sm:$0xff] }
 0x1d7   :  { %v3161_v53 = vpop.f32.mrf.mxu0  ;;  %v3200_v29 = vadd.f32 %v3199_v25, %v3198_v40  ;;  %v4692_v5 = vld [vmem:[#allocation12_spill] sm:$0xff]  ;;  %v4693_v40 = vld [vmem:[#allocation14_spill] sm:$0xff] }
 0x1d8   :  { %v2556_v10 = vpack.c.bf16 %v2300_v38, %v2299_v21  ;;  %v2274_v47 = vmax.f32 %v4517_v24, %v2246_v63  ;;  %v2187_v3 = vadd.f32 %v3160_v50, %v2123_v34  ;;  %v3201_v39 = vpop.f32.mrf.mxu1  ;;  %v2294_v58 = vadd.f32 %v4548_v6, %v2280_v0 }
 0x1d9   :  { %v3162_v43 = vpop.f32.mrf.mxu0  ;;  %v4686_v24 = vmax.f32 %v4469_v60, %v4494_v49  ;;  %v4694_v34 = vmax.f32 %v4692_v5, %v4693_v40 }
 0x1da   :  { %2557 = vst [vmem:[%s4607_s6] sm:$0xff] %v2556_v10   ;;  %v2251_v36 = vadd.f32 %v3200_v29, %v2187_v3  ;;  %v3163_v11 = vadd.f32 %v3162_v43, %v3161_v53  ;;  %v3202_v16 = vpop.f32.mrf.mxu1  ;;  %v2301_v52 = vmax.f32 %v2294_v58, 0.0 }
 0x1db   :  { %v2281_v18 = vmax.f32 %v4686_v24, %v2274_v47  ;;  %v3164_v30 = vpop.f32.mrf.mxu0  ;;  %v3203_v4 = vadd.f32 %v3202_v16, %v3201_v39 }
 0x1dc   :  { %v2275_v61 = vmax.f32 %v4519_v45, %v2251_v36  ;;  %v2190_v54 = vadd.f32 %v3163_v11, %v2126_v44  ;;  %v3204_v57 = vpop.f32.mrf.mxu1 }
 0x1dd   :  { %v2295_v59 = vadd.f32 %v4548_v6, %v2281_v18  ;;  %v3165_v51 = vpop.f32.mrf.mxu0 }
 0x1de   :  { %v2282_v60 = vmax.f32 %v4687_v14, %v2275_v61  ;;  %v2254_v49 = vadd.f32 %v3203_v4, %v2190_v54  ;;  %v3166_v37 = vadd.f32 %v3165_v51, %v3164_v30  ;;  %v3205_v33 = vpop.f32.mrf.mxu1 }
 0x1df   :  { %v2302_v8 = vmax.f32 %v2295_v59, 0.0  ;;  %v3167_v35 = vpop.f32.mrf.mxu0  ;;  %v3206_v45 = vadd.f32 %v3205_v33, %v3204_v57 }
 0x1e0   :  { %v2276_v19 = vmax.f32 %v4521_v31, %v2254_v49  ;;  %v2195_v20 = vadd.f32 %v3166_v37, %v2131_v13  ;;  %v3207_v12 = vpop.f32.mrf.mxu1  ;;  %v2296_v22 = vadd.f32 %v4548_v6, %v2282_v60 }
 0x1e1   :  { %v2561_v48 = vpack.c.bf16 %v2302_v8, %v2301_v52  ;;  %v3168_v15 = vpop.f32.mrf.mxu0 }
 0x1e2   :  { %v2283_v46 = vmax.f32 %v4690_v2, %v2276_v19  ;;  %v2259_v28 = vadd.f32 %v3206_v45, %v2195_v20  ;;  %v3208_v26 = vpop.f32.mrf.mxu1  ;;  %v2303_v9 = vmax.f32 %v2296_v22, 0.0 }
 0x1e3   :  { %2568 = vst [vmem:[%s4607_s6 + $0x8] sm:$0xff] %v2561_v48  }
 0x1e4   :  { %v2297_v17 = vadd.f32 %v4548_v6, %v2283_v46  ;;  %v2277_v31 = vmax.f32 %v4691_v55, %v2259_v28 }
 0x1e6   :  { %v2304_v7 = vmax.f32 %v2297_v17, 0.0  ;;  %v2284_v41 = vmax.f32 %v4694_v34, %v2277_v31 }
 0x1e8   :  { %v2566_v42 = vpack.c.bf16 %v2304_v7, %v2303_v9  ;;  %v2298_v21 = vadd.f32 %v4548_v6, %v2284_v41 }
 0x1ea   :  { %2569 = vst [vmem:[%s4607_s6 + $0x10] sm:$0xff] %v2566_v42   ;;  %v2305_v27 = vmax.f32 %v2298_v21, 0.0 }
 0x1ec   :  { %v2552_v38 = vpack.c.bf16 %v2305_v27, %v2305_v27 }
 0x1ee   :  { %2341 = vst [vmem:[%s4607_s6 + $0x18] sm:$0xf] %v2552_v38 }

// kernel: cnn_forward.5
= control target key start
LH: loop header
LB: loop body
LE: loop exit
PB: predicated region body
PF: predicated region fallthrough
CT: control target
= control target key end

     0   :  { %vm3325_vm0 = vmmov 0   ;;  %s4095_s1 = inlined_call_operand.vmem [shape: bf16[3200,128], index: 1, kind: input, shape index: {}]   ;;  %s4096_s0 = inlined_call_operand.vmem [shape: bf16[8,3200], index: 0, kind: input, shape index: {}]   ;;  %s4097_s2 = inlined_call_operand.vmem [shape: f32[1,128], index: 2, kind: input, shape index: {}]   ;;  %s4098_s3 = inlined_call_operand.vmem [shape: bf16[128,128], index: 3, kind: input, shape index: {}]   ;;  %s4099_s5 = inlined_call_operand.vmem [shape: bf16[128,128], index: 5, kind: input, shape index: {}]   ;;  %s4100_s4 = inlined_call_operand.vmem [shape: f32[1,128], index: 4, kind: input, shape index: {}]   ;;  %s4101_s6 = inlined_call_operand.vmem [shape: f32[1,128], index: 6, kind: input, shape index: {}]   ;;  %s4102_s7 = inlined_call_operand.vmem [shape: f32[8,128], index: 7, kind: output, shape index: {}]  }
   0x1   :  { %v3083_v0 = vld [vmem:[%s4095_s1 + $0x78] sm:$0xff]   ;;  %v3087_v4 = vld [vmem:[%s4095_s1 + $0x70] sm:$0xff]   ;;  %v3091_v8 = vld [vmem:[%s4095_s1 + $0x68] sm:$0xff]  }
   0x2   :  { %v3084_v1 = vld [vmem:[%s4095_s1 + $0x38] sm:$0xff]   ;;  %2730 = vmatprep.subr.bf16.mxu0 %v3083_v0  ;;  %v3088_v5 = vld [vmem:[%s4095_s1 + $0x30] sm:$0xff]   ;;  %v3092_v9 = vld [vmem:[%s4095_s1 + $0x28] sm:$0xff]  }
   0x3   :  { %v3085_v2 = vld [vmem:[%s4095_s1 + $0xf8] sm:$0xff]   ;;  %2731 = vmatpush3.bf16.msra.mxu0 %v3084_v1  ;;  %v3089_v6 = vld [vmem:[%s4095_s1 + $0xf0] sm:$0xff]   ;;  %v3093_v10 = vld [vmem:[%s4095_s1 + $0xe8] sm:$0xff]  }
   0x4   :  { %v3086_v3 = vld [vmem:[%s4095_s1 + $0xb8] sm:$0xff]   ;;  %2752 = vmatprep.subr.bf16.mxu1 %v3085_v2  ;;  %2732 = vmatprep.subr.bf16.mxu0 %v3087_v4  ;;  %v3090_v7 = vld [vmem:[%s4095_s1 + $0xb0] sm:$0xff]   ;;  %v3094_v11 = vld [vmem:[%s4095_s1 + $0xa8] sm:$0xff]  }
   0x5   :  { %2753 = vmatpush3.bf16.msra.mxu1 %v3086_v3  ;;  %v3095_v12 = vld [vmem:[%s4095_s1 + $0x60] sm:$0xff]   ;;  %v3099_v16 = vld [vmem:[%s4095_s1 + $0x58] sm:$0xff]   ;;  %v3103_v20 = vld [vmem:[%s4095_s1 + $0x50] sm:$0xff]  }
   0x6   :  { %2754 = vmatprep.subr.bf16.mxu1 %v3089_v6  ;;  %v3096_v13 = vld [vmem:[%s4095_s1 + $0x20] sm:$0xff]   ;;  %v3100_v17 = vld [vmem:[%s4095_s1 + $0x18] sm:$0xff]   ;;  %v3104_v21 = vld [vmem:[%s4095_s1 + $0x10] sm:$0xff]  }
   0x7   :  { %2733 = vmatpush3.bf16.msra.mxu0 %v3088_v5  ;;  %v3097_v14 = vld [vmem:[%s4095_s1 + $0xe0] sm:$0xff]   ;;  %v3101_v18 = vld [vmem:[%s4095_s1 + $0xd8] sm:$0xff]   ;;  %v3105_v22 = vld [vmem:[%s4095_s1 + $0xd0] sm:$0xff]  }
   0x8   :  { %2734 = vmatprep.subr.bf16.mxu0 %v3091_v8  ;;  %v3098_v15 = vld [vmem:[%s4095_s1 + $0xa0] sm:$0xff]   ;;  %v3102_v19 = vld [vmem:[%s4095_s1 + $0x98] sm:$0xff]   ;;  %v3106_v23 = vld [vmem:[%s4095_s1 + $0x90] sm:$0xff]  }
   0x9   :  { %2755 = vmatpush3.bf16.msra.mxu1 %v3090_v7  ;;  %v3107_v24 = vld [vmem:[%s4095_s1 + $0x48] sm:$0xff]   ;;  %v3111_v28 = vld [vmem:[%s4095_s1 + $0x40] sm:$0xff]   ;;  %v3117_v35 = vld [vmem:[%s4095_s1 + $0x178] sm:$0xff]  }
   0xa   :  { %2756 = vmatprep.subr.bf16.mxu1 %v3093_v10  ;;  %v3108_v25 = vld [vmem:[%s4095_s1 + $0x8] sm:$0xff]   ;;  %v3112_v29 = vld [vmem:[%s4095_s1] sm:$0xff]   ;;  %v3120_v39 = vld [vmem:[%s4095_s1 + $0x138] sm:$0xff]  }
   0xb   :  { %2735 = vmatpush3.bf16.msra.mxu0 %v3092_v9  ;;  %v3109_v26 = vld [vmem:[%s4095_s1 + $0xc8] sm:$0xff]   ;;  %v3113_v30 = vld [vmem:[%s4095_s1 + $0xc0] sm:$0xff]   ;;  %v3121_v40 = vld [vmem:[%s4095_s1 + $0x1f8] sm:$0xff]  }
   0xc   :  { %2736 = vmatprep.subr.bf16.mxu0 %v3095_v12  ;;  %v3110_v27 = vld [vmem:[%s4095_s1 + $0x88] sm:$0xff]   ;;  %v27_v31 = vld [vmem:[%s4096_s0] sm:$0xff]  ;;  %v3122_v41 = vld [vmem:[%s4095_s1 + $0x1b8] sm:$0xff]  }
   0xd   :  { %2757 = vmatpush3.bf16.msra.mxu1 %v3094_v11  ;;  %v2487_v32 = vcombine.low %v27_v31, %v27_v31  ;;  %v2488_v33 = vcombine.high %v27_v31, %v27_v31  ;;  %v3116_v34 = vld [vmem:[%s4095_s1 + $0x80] sm:$0xff]   ;;  %v28_v36 = vld [vmem:[%s4096_s0 + $0x8] sm:$0xff]  ;;  %v3123_v42 = vld [vmem:[%s4095_s1 + $0x170] sm:$0xff]  }
   0xe   :  { %2758 = vmatprep.subr.bf16.mxu1 %v3097_v14  ;;  %v2489_v37 = vcombine.low %v28_v36, %v28_v36  ;;  %v2490_v38 = vcombine.high %v28_v36, %v28_v36  ;;  %v3124_v43 = vld [vmem:[%s4095_s1 + $0x130] sm:$0xff]   ;;  %v3127_v46 = vld [vmem:[%s4095_s1 + $0x168] sm:$0xff]   ;;  %v3131_v50 = vld [vmem:[%s4095_s1 + $0x160] sm:$0xff]  }
   0xf   :  { %2737 = vmatpush3.bf16.msra.mxu0 %v3096_v13  ;;  %1767 = vmatprep.mubr.bf16.mxu0 %v2488_v33  ;;  %v3125_v44 = vld [vmem:[%s4095_s1 + $0x1f0] sm:$0xff]   ;;  %v3128_v47 = vld [vmem:[%s4095_s1 + $0x128] sm:$0xff]   ;;  %v3132_v51 = vld [vmem:[%s4095_s1 + $0x120] sm:$0xff]  }
  0x10   :  { %2738 = vmatprep.subr.bf16.mxu0 %v3099_v16  ;;  %1807 = vmatprep.mubr.bf16.mxu1 %v2490_v38  ;;  %v3126_v45 = vld [vmem:[%s4095_s1 + $0x1b0] sm:$0xff]   ;;  %v3129_v48 = vld [vmem:[%s4095_s1 + $0x1e8] sm:$0xff]   ;;  %v3133_v52 = vld [vmem:[%s4095_s1 + $0x1e0] sm:$0xff]  }
  0x11   :  { %2759 = vmatpush3.bf16.msra.mxu1 %v3098_v15  ;;  %v3130_v49 = vld [vmem:[%s4095_s1 + $0x1a8] sm:$0xff]   ;;  %v3134_v53 = vld [vmem:[%s4095_s1 + $0x1a0] sm:$0xff]   ;;  %v3135_v54 = vld [vmem:[%s4095_s1 + $0x158] sm:$0xff]  }
  0x12   :  { %2760 = vmatprep.subr.bf16.mxu1 %v3101_v18  ;;  %v3136_v55 = vld [vmem:[%s4095_s1 + $0x118] sm:$0xff]   ;;  %v3139_v58 = vld [vmem:[%s4095_s1 + $0x150] sm:$0xff]   ;;  %v3143_v62 = vld [vmem:[%s4095_s1 + $0x148] sm:$0xff]  }
  0x13   :  { %2739 = vmatpush3.bf16.msra.mxu0 %v3100_v17  ;;  %v3137_v56 = vld [vmem:[%s4095_s1 + $0x1d8] sm:$0xff]   ;;  %v3140_v59 = vld [vmem:[%s4095_s1 + $0x110] sm:$0xff]   ;;  %v3144_v63 = vld [vmem:[%s4095_s1 + $0x108] sm:$0xff]  }
  0x14   :  { %2740 = vmatprep.subr.bf16.mxu0 %v3103_v20  ;;  %v3138_v57 = vld [vmem:[%s4095_s1 + $0x198] sm:$0xff]   ;;  %v3141_v60 = vld [vmem:[%s4095_s1 + $0x1d0] sm:$0xff]   ;;  %v3145_v0 = vld [vmem:[%s4095_s1 + $0x1c8] sm:$0xff]  }
  0x15   :  { %2761 = vmatpush3.bf16.msra.mxu1 %v3102_v19  ;;  %v3142_v61 = vld [vmem:[%s4095_s1 + $0x190] sm:$0xff]   ;;  %v3146_v1 = vld [vmem:[%s4095_s1 + $0x188] sm:$0xff]   ;;  %v3147_v2 = vld [vmem:[%s4095_s1 + $0x140] sm:$0xff]  }
  0x16   :  { %2762 = vmatprep.subr.bf16.mxu1 %v3105_v22  ;;  %v3148_v3 = vld [vmem:[%s4095_s1 + $0x100] sm:$0xff]   ;;  %v29_v5 = vld [vmem:[%s4096_s0 + $0x10] sm:$0xff]  ;;  %v3153_v9 = vld [vmem:[%s4095_s1 + $0x278] sm:$0xff]  }
  0x17   :  { %2741 = vmatpush3.bf16.msra.mxu0 %v3104_v21  ;;  %v3149_v4 = vld [vmem:[%s4095_s1 + $0x1c0] sm:$0xff]   ;;  %v2491_v6 = vcombine.low %v29_v5, %v29_v5  ;;  %v2492_v7 = vcombine.high %v29_v5, %v29_v5  ;;  %v30_v10 = vld [vmem:[%s4096_s0 + $0x18] sm:$0xff]  ;;  %v3159_v16 = vld [vmem:[%s4095_s1 + $0x270] sm:$0xff]  }
  0x18   :  { %2742 = vmatprep.subr.bf16.mxu0 %v3107_v24  ;;  %v3152_v8 = vld [vmem:[%s4095_s1 + $0x180] sm:$0xff]   ;;  %v2493_v11 = vcombine.low %v30_v10, %v30_v10  ;;  %v2494_v12 = vcombine.high %v30_v10, %v30_v10  ;;  %v3156_v13 = vld [vmem:[%s4095_s1 + $0x238] sm:$0xff]   ;;  %v3160_v17 = vld [vmem:[%s4095_s1 + $0x230] sm:$0xff]  }
  0x19   :  { %2763 = vmatpush3.bf16.msra.mxu1 %v3106_v23  ;;  %v3157_v14 = vld [vmem:[%s4095_s1 + $0x2f8] sm:$0xff]   ;;  %v3161_v18 = vld [vmem:[%s4095_s1 + $0x2f0] sm:$0xff]   ;;  %v3163_v20 = vld [vmem:[%s4095_s1 + $0x268] sm:$0xff]  }
  0x1a   :  { %2764 = vmatprep.subr.bf16.mxu1 %v3109_v26  ;;  %v3158_v15 = vld [vmem:[%s4095_s1 + $0x2b8] sm:$0xff]   ;;  %v3162_v19 = vld [vmem:[%s4095_s1 + $0x2b0] sm:$0xff]   ;;  %v3164_v21 = vld [vmem:[%s4095_s1 + $0x228] sm:$0xff]  }
  0x1b   :  { %2743 = vmatpush3.bf16.msra.mxu0 %v3108_v25  ;;  %v3165_v22 = vld [vmem:[%s4095_s1 + $0x2e8] sm:$0xff]   ;;  %v3167_v24 = vld [vmem:[%s4095_s1 + $0x260] sm:$0xff]   ;;  %v3174_v31 = vld [vmem:[%s4095_s1 + $0x298] sm:$0xff]  }
  0x1c   :  { %2744 = vmatprep.subr.bf16.mxu0 %v3111_v28  ;;  %v3166_v23 = vld [vmem:[%s4095_s1 + $0x2a8] sm:$0xff]   ;;  %v3168_v25 = vld [vmem:[%s4095_s1 + $0x220] sm:$0xff]   ;;  %v3171_v28 = vld [vmem:[%s4095_s1 + $0x258] sm:$0xff]  }
  0x1d   :  { %2765 = vmatpush3.bf16.msra.mxu1 %v3110_v27  ;;  %v3169_v26 = vld [vmem:[%s4095_s1 + $0x2e0] sm:$0xff]   ;;  %v3176_v33 = vld [vmem:[%s4095_s1 + $0x210] sm:$0xff]   ;;  %v3179_v36 = vld [vmem:[%s4095_s1 + $0x248] sm:$0xff]  }
  0x1e   :  { %2766 = vmatprep.subr.bf16.mxu1 %v3113_v30  ;;  %v3170_v27 = vld [vmem:[%s4095_s1 + $0x2a0] sm:$0xff]   ;;  %v3173_v30 = vld [vmem:[%s4095_s1 + $0x2d8] sm:$0xff]   ;;  %v3181_v38 = vld [vmem:[%s4095_s1 + $0x2c8] sm:$0xff]  }
  0x1f   :  { %2745 = vmatpush3.bf16.msra.mxu0 %v3112_v29  ;;  %v3172_v29 = vld [vmem:[%s4095_s1 + $0x218] sm:$0xff]   ;;  %v3215_v10 = vld [vmem:[%s4095_s1 + $0x348] sm:$0xff]  }
  0x20   :  { %2774 = vmatprep.subr.bf16.mxu0 %v3117_v35  ;;  %v3178_v35 = vld [vmem:[%s4095_s1 + $0x290] sm:$0xff]   ;;  %v3210_v5 = vld [vmem:[%s4095_s1 + $0x398] sm:$0xff]  }
  0x21   :  { %2767 = vmatpush3.bf16.msra.mxu1 %v3116_v34  ;;  %v3177_v34 = vld [vmem:[%s4095_s1 + $0x2d0] sm:$0xff]  }
  0x22   :  { %1768 = vmatmul.mubr.bf16.vlgmr.msra.gmra.mxu0 %v2487_v32  ;;  %2796 = vmatprep.subr.bf16.mxu1 %v3121_v40  ;;  %v3175_v32 = vld [vmem:[%s4095_s1 + $0x250] sm:$0xff]   ;;  %v3183_v40 = vld [vmem:[%s4095_s1 + $0x240] sm:$0xff]  }
  0x23   :  { %2775 = vmatpush3.bf16.msra.mxu0 %v3120_v39  ;;  %1847 = vmatprep.mubr.bf16.mxu0 %v2492_v7  ;;  %v3182_v39 = vld [vmem:[%s4095_s1 + $0x288] sm:$0xff]   ;;  %v3212_v7 = vld [vmem:[%s4095_s1 + $0x310] sm:$0xff]  }
  0x24   :  { %1808 = vmatmul.mubr.bf16.vlgmr.msra.gmra.mxu1 %v2489_v37  ;;  %2776 = vmatprep.subr.bf16.mxu0 %v3123_v42  ;;  %v3180_v37 = vld [vmem:[%s4095_s1 + $0x208] sm:$0xff]   ;;  %v3185_v42 = vld [vmem:[%s4095_s1 + $0x2c0] sm:$0xff]  }
  0x25   :  { %2797 = vmatpush3.bf16.msra.mxu1 %v3122_v41  ;;  %1887 = vmatprep.mubr.bf16.mxu1 %v2494_v12  ;;  %v3184_v41 = vld [vmem:[%s4095_s1 + $0x200] sm:$0xff]   ;;  %v3217_v12 = vld [vmem:[%s4095_s1 + $0x3c8] sm:$0xff]  }
  0x26   :  { %2798 = vmatprep.subr.bf16.mxu1 %v3125_v44 }
  0x27   :  { %2777 = vmatpush3.bf16.msra.mxu0 %v3124_v43  ;;  %v31_v43 = vld [vmem:[%s4096_s0 + $0x20] sm:$0xff] }
  0x28   :  { %2778 = vmatprep.subr.bf16.mxu0 %v3127_v46  ;;  %v2495_v44 = vcombine.low %v31_v43, %v31_v43  ;;  %v3188_v46 = vld [vmem:[%s4095_s1 + $0x280] sm:$0xff]  }
  0x29   :  { %2799 = vmatpush3.bf16.msra.mxu1 %v3126_v45  ;;  %v2496_v45 = vcombine.high %v31_v43, %v31_v43  ;;  %v3246_v43 = vld [vmem:[%s4095_s1 + $0x498] sm:$0xff]  }
  0x2a   :  { %2800 = vmatprep.subr.bf16.mxu1 %v3129_v48  ;;  %v32_v48 = vld [vmem:[%s4096_s0 + $0x28] sm:$0xff] }
  0x2b   :  { %2779 = vmatpush3.bf16.msra.mxu0 %v3128_v47  ;;  %v3189_v47 = vld [vmem:[%s4095_s1 + $0x378] sm:$0xff]  }
  0x2c   :  { %2780 = vmatprep.subr.bf16.mxu0 %v3131_v50  ;;  %v2498_v50 = vcombine.high %v32_v48, %v32_v48 }
  0x2d   :  { %2801 = vmatpush3.bf16.msra.mxu1 %v3130_v49  ;;  %v2497_v49 = vcombine.low %v32_v48, %v32_v48  ;;  %v3251_v48 = vld [vmem:[%s4095_s1 + $0x448] sm:$0xff]  }
  0x2e   :  { %2802 = vmatprep.subr.bf16.mxu1 %v3133_v52  ;;  %v3193_v52 = vld [vmem:[%s4095_s1 + $0x3f8] sm:$0xff]  }
  0x2f   :  { %2781 = vmatpush3.bf16.msra.mxu0 %v3132_v51  ;;  %v3192_v51 = vld [vmem:[%s4095_s1 + $0x338] sm:$0xff]  }
  0x30   :  { %2782 = vmatprep.subr.bf16.mxu0 %v3135_v54  ;;  %v3195_v54 = vld [vmem:[%s4095_s1 + $0x370] sm:$0xff]  }
  0x31   :  { %2803 = vmatpush3.bf16.msra.mxu1 %v3134_v53  ;;  %v3194_v53 = vld [vmem:[%s4095_s1 + $0x3b8] sm:$0xff]  }
  0x32   :  { %2804 = vmatprep.subr.bf16.mxu1 %v3137_v56  ;;  %v3197_v56 = vld [vmem:[%s4095_s1 + $0x3f0] sm:$0xff]  }
  0x33   :  { %2783 = vmatpush3.bf16.msra.mxu0 %v3136_v55  ;;  %v3196_v55 = vld [vmem:[%s4095_s1 + $0x330] sm:$0xff]  }
  0x34   :  { %2784 = vmatprep.subr.bf16.mxu0 %v3139_v58  ;;  %v3199_v58 = vld [vmem:[%s4095_s1 + $0x368] sm:$0xff]  }
  0x35   :  { %2805 = vmatpush3.bf16.msra.mxu1 %v3138_v57  ;;  %v3198_v57 = vld [vmem:[%s4095_s1 + $0x3b0] sm:$0xff]  }
  0x36   :  { %2806 = vmatprep.subr.bf16.mxu1 %v3141_v60  ;;  %v3201_v60 = vld [vmem:[%s4095_s1 + $0x3e8] sm:$0xff]  }
  0x37   :  { %2785 = vmatpush3.bf16.msra.mxu0 %v3140_v59  ;;  %v3200_v59 = vld [vmem:[%s4095_s1 + $0x328] sm:$0xff]  }
  0x38   :  { %2786 = vmatprep.subr.bf16.mxu0 %v3143_v62  ;;  %v3203_v62 = vld [vmem:[%s4095_s1 + $0x360] sm:$0xff]  }
  0x39   :  { %2807 = vmatpush3.bf16.msra.mxu1 %v3142_v61  ;;  %v3202_v61 = vld [vmem:[%s4095_s1 + $0x3a8] sm:$0xff]  }
  0x3a   :  { %2808 = vmatprep.subr.bf16.mxu1 %v3145_v0  ;;  %v3205_v0 = vld [vmem:[%s4095_s1 + $0x3e0] sm:$0xff]  }
  0x3b   :  { %2787 = vmatpush3.bf16.msra.mxu0 %v3144_v63  ;;  %v3204_v63 = vld [vmem:[%s4095_s1 + $0x320] sm:$0xff]  }
  0x3c   :  { %2788 = vmatprep.subr.bf16.mxu0 %v3147_v2  ;;  %v3207_v2 = vld [vmem:[%s4095_s1 + $0x358] sm:$0xff]  }
  0x3d   :  { %2809 = vmatpush3.bf16.msra.mxu1 %v3146_v1  ;;  %v3206_v1 = vld [vmem:[%s4095_s1 + $0x3a0] sm:$0xff]  }
  0x3e   :  { %2810 = vmatprep.subr.bf16.mxu1 %v3149_v4  ;;  %v3209_v4 = vld [vmem:[%s4095_s1 + $0x3d8] sm:$0xff]  }
  0x3f   :  { %2789 = vmatpush3.bf16.msra.mxu0 %v3148_v3  ;;  %v3208_v3 = vld [vmem:[%s4095_s1 + $0x318] sm:$0xff]  }
  0x40   :  { %2818 = vmatprep.subr.bf16.mxu0 %v3153_v9  ;;  %v3214_v9 = vld [vmem:[%s4095_s1 + $0x390] sm:$0xff]  }
  0x41   :  { %2811 = vmatpush3.bf16.msra.mxu1 %v3152_v8  ;;  %v3213_v8 = vld [vmem:[%s4095_s1 + $0x3d0] sm:$0xff]  }
  0x42   :  { %1848 = vmatmul.mubr.bf16.vlgmr.msra.gmra.mxu0 %v2491_v6  ;;  %2840 = vmatprep.subr.bf16.mxu1 %v3157_v14  ;;  %v3211_v6 = vld [vmem:[%s4095_s1 + $0x350] sm:$0xff]   ;;  %v3219_v14 = vld [vmem:[%s4095_s1 + $0x340] sm:$0xff]  }
  0x43   :  { %2819 = vmatpush3.bf16.msra.mxu0 %v3156_v13  ;;  %1927 = vmatprep.mubr.bf16.mxu0 %v2496_v45  ;;  %v3218_v13 = vld [vmem:[%s4095_s1 + $0x388] sm:$0xff]   ;;  %v3248_v45 = vld [vmem:[%s4095_s1 + $0x410] sm:$0xff]  }
  0x44   :  { %1888 = vmatmul.mubr.bf16.vlgmr.msra.gmra.mxu1 %v2493_v11  ;;  %2820 = vmatprep.subr.bf16.mxu0 %v3159_v16  ;;  %v3216_v11 = vld [vmem:[%s4095_s1 + $0x308] sm:$0xff]   ;;  %v3221_v16 = vld [vmem:[%s4095_s1 + $0x3c0] sm:$0xff]  }
  0x45   :  { %2841 = vmatpush3.bf16.msra.mxu1 %v3158_v15  ;;  %1967 = vmatprep.mubr.bf16.mxu1 %v2498_v50  ;;  %v3220_v15 = vld [vmem:[%s4095_s1 + $0x300] sm:$0xff]   ;;  %v3253_v50 = vld [vmem:[%s4095_s1 + $0x4c8] sm:$0xff]  }
  0x46   :  { %2842 = vmatprep.subr.bf16.mxu1 %v3161_v18 }
  0x47   :  { %2821 = vmatpush3.bf16.msra.mxu0 %v3160_v17  ;;  %v33_v17 = vld [vmem:[%s4096_s0 + $0x30] sm:$0xff] }
  0x48   :  { %2822 = vmatprep.subr.bf16.mxu0 %v3163_v20  ;;  %v2499_v18 = vcombine.low %v33_v17, %v33_v17  ;;  %v3224_v20 = vld [vmem:[%s4095_s1 + $0x380] sm:$0xff]  }
  0x49   :  { %2843 = vmatpush3.bf16.msra.mxu1 %v3162_v19  ;;  %v2500_v19 = vcombine.high %v33_v17, %v33_v17  ;;  %v3282_v17 = vld [vmem:[%s4095_s1 + $0x598] sm:$0xff]  }
  0x4a   :  { %2844 = vmatprep.subr.bf16.mxu1 %v3165_v22  ;;  %v34_v22 = vld [vmem:[%s4096_s0 + $0x38] sm:$0xff] }
  0x4b   :  { %2823 = vmatpush3.bf16.msra.mxu0 %v3164_v21  ;;  %v3225_v21 = vld [vmem:[%s4095_s1 + $0x478] sm:$0xff]  }
  0x4c   :  { %2824 = vmatprep.subr.bf16.mxu0 %v3167_v24  ;;  %v2502_v24 = vcombine.high %v34_v22, %v34_v22 }
  0x4d   :  { %2845 = vmatpush3.bf16.msra.mxu1 %v3166_v23  ;;  %v2501_v23 = vcombine.low %v34_v22, %v34_v22  ;;  %v3287_v22 = vld [vmem:[%s4095_s1 + $0x548] sm:$0xff]  }
  0x4e   :  { %2846 = vmatprep.subr.bf16.mxu1 %v3169_v26  ;;  %v3229_v26 = vld [vmem:[%s4095_s1 + $0x4f8] sm:$0xff]  }
  0x4f   :  { %2825 = vmatpush3.bf16.msra.mxu0 %v3168_v25  ;;  %v3228_v25 = vld [vmem:[%s4095_s1 + $0x438] sm:$0xff]  }
  0x50   :  { %2826 = vmatprep.subr.bf16.mxu0 %v3171_v28  ;;  %v3231_v28 = vld [vmem:[%s4095_s1 + $0x470] sm:$0xff]  }
  0x51   :  { %2847 = vmatpush3.bf16.msra.mxu1 %v3170_v27  ;;  %v3230_v27 = vld [vmem:[%s4095_s1 + $0x4b8] sm:$0xff]  }
  0x52   :  { %2848 = vmatprep.subr.bf16.mxu1 %v3173_v30  ;;  %v3233_v30 = vld [vmem:[%s4095_s1 + $0x4f0] sm:$0xff]  }
  0x53   :  { %2827 = vmatpush3.bf16.msra.mxu0 %v3172_v29  ;;  %v3232_v29 = vld [vmem:[%s4095_s1 + $0x430] sm:$0xff]  }
  0x54   :  { %2828 = vmatprep.subr.bf16.mxu0 %v3175_v32  ;;  %v3235_v32 = vld [vmem:[%s4095_s1 + $0x468] sm:$0xff]  }
  0x55   :  { %2849 = vmatpush3.bf16.msra.mxu1 %v3174_v31  ;;  %v3234_v31 = vld [vmem:[%s4095_s1 + $0x4b0] sm:$0xff]  }
  0x56   :  { %2850 = vmatprep.subr.bf16.mxu1 %v3177_v34  ;;  %v3237_v34 = vld [vmem:[%s4095_s1 + $0x4e8] sm:$0xff]  }
  0x57   :  { %2829 = vmatpush3.bf16.msra.mxu0 %v3176_v33  ;;  %v3236_v33 = vld [vmem:[%s4095_s1 + $0x428] sm:$0xff]  }
  0x58   :  { %2830 = vmatprep.subr.bf16.mxu0 %v3179_v36  ;;  %v3239_v36 = vld [vmem:[%s4095_s1 + $0x460] sm:$0xff]  }
  0x59   :  { %2851 = vmatpush3.bf16.msra.mxu1 %v3178_v35  ;;  %v3238_v35 = vld [vmem:[%s4095_s1 + $0x4a8] sm:$0xff]  }
  0x5a   :  { %2852 = vmatprep.subr.bf16.mxu1 %v3181_v38  ;;  %v3241_v38 = vld [vmem:[%s4095_s1 + $0x4e0] sm:$0xff]  }
  0x5b   :  { %2831 = vmatpush3.bf16.msra.mxu0 %v3180_v37  ;;  %v3240_v37 = vld [vmem:[%s4095_s1 + $0x420] sm:$0xff]  }
  0x5c   :  { %2832 = vmatprep.subr.bf16.mxu0 %v3183_v40  ;;  %v3243_v40 = vld [vmem:[%s4095_s1 + $0x458] sm:$0xff]  }
  0x5d   :  { %2853 = vmatpush3.bf16.msra.mxu1 %v3182_v39  ;;  %v3242_v39 = vld [vmem:[%s4095_s1 + $0x4a0] sm:$0xff]  }
  0x5e   :  { %2854 = vmatprep.subr.bf16.mxu1 %v3185_v42  ;;  %v3245_v42 = vld [vmem:[%s4095_s1 + $0x4d8] sm:$0xff]  }
  0x5f   :  { %2833 = vmatpush3.bf16.msra.mxu0 %v3184_v41  ;;  %v3244_v41 = vld [vmem:[%s4095_s1 + $0x418] sm:$0xff]  }
  0x60   :  { %2862 = vmatprep.subr.bf16.mxu0 %v3189_v47  ;;  %v3250_v47 = vld [vmem:[%s4095_s1 + $0x490] sm:$0xff]  }
  0x61   :  { %2855 = vmatpush3.bf16.msra.mxu1 %v3188_v46  ;;  %v3249_v46 = vld [vmem:[%s4095_s1 + $0x4d0] sm:$0xff]  }
  0x62   :  { %1928 = vmatmul.mubr.bf16.vlgmr.msra.gmra.mxu0 %v2495_v44  ;;  %2884 = vmatprep.subr.bf16.mxu1 %v3193_v52  ;;  %v3247_v44 = vld [vmem:[%s4095_s1 + $0x450] sm:$0xff]   ;;  %v3255_v52 = vld [vmem:[%s4095_s1 + $0x440] sm:$0xff]  }
  0x63   :  { %2863 = vmatpush3.bf16.msra.mxu0 %v3192_v51  ;;  %2007 = vmatprep.mubr.bf16.mxu0 %v2500_v19  ;;  %v3254_v51 = vld [vmem:[%s4095_s1 + $0x488] sm:$0xff]   ;;  %v3284_v19 = vld [vmem:[%s4095_s1 + $0x510] sm:$0xff]  }
  0x64   :  { %1968 = vmatmul.mubr.bf16.vlgmr.msra.gmra.mxu1 %v2497_v49  ;;  %2864 = vmatprep.subr.bf16.mxu0 %v3195_v54  ;;  %v3252_v49 = vld [vmem:[%s4095_s1 + $0x408] sm:$0xff]   ;;  %v3257_v54 = vld [vmem:[%s4095_s1 + $0x4c0] sm:$0xff]  }
  0x65   :  { %2885 = vmatpush3.bf16.msra.mxu1 %v3194_v53  ;;  %2047 = vmatprep.mubr.bf16.mxu1 %v2502_v24  ;;  %v3256_v53 = vld [vmem:[%s4095_s1 + $0x400] sm:$0xff]   ;;  %v3289_v24 = vld [vmem:[%s4095_s1 + $0x5c8] sm:$0xff]  }
  0x66   :  { %2886 = vmatprep.subr.bf16.mxu1 %v3197_v56 }
  0x67   :  { %2865 = vmatpush3.bf16.msra.mxu0 %v3196_v55  ;;  %v35_v55 = vld [vmem:[%s4096_s0 + $0x40] sm:$0xff] }
  0x68   :  { %2866 = vmatprep.subr.bf16.mxu0 %v3199_v58  ;;  %v2503_v56 = vcombine.low %v35_v55, %v35_v55  ;;  %v3260_v58 = vld [vmem:[%s4095_s1 + $0x480] sm:$0xff]  }
  0x69   :  { %2887 = vmatpush3.bf16.msra.mxu1 %v3198_v57  ;;  %v2504_v57 = vcombine.high %v35_v55, %v35_v55 }
  0x6a   :  { %2888 = vmatprep.subr.bf16.mxu1 %v3201_v60  ;;  %v36_v60 = vld [vmem:[%s4096_s0 + $0x48] sm:$0xff] }
  0x6b   :  { %2867 = vmatpush3.bf16.msra.mxu0 %v3200_v59  ;;  %v3261_v59 = vld [vmem:[%s4095_s1 + $0x578] sm:$0xff]  }
  0x6c   :  { %2868 = vmatprep.subr.bf16.mxu0 %v3203_v62  ;;  %v2506_v62 = vcombine.high %v36_v60, %v36_v60 }
  0x6d   :  { %2889 = vmatpush3.bf16.msra.mxu1 %v3202_v61  ;;  %v2505_v61 = vcombine.low %v36_v60, %v36_v60 }
  0x6e   :  { %2890 = vmatprep.subr.bf16.mxu1 %v3205_v0  ;;  %v3265_v0 = vld [vmem:[%s4095_s1 + $0x5f8] sm:$0xff]  }
  0x6f   :  { %2869 = vmatpush3.bf16.msra.mxu0 %v3204_v63  ;;  %v3264_v63 = vld [vmem:[%s4095_s1 + $0x538] sm:$0xff]  }
  0x70   :  { %2870 = vmatprep.subr.bf16.mxu0 %v3207_v2  ;;  %v3267_v2 = vld [vmem:[%s4095_s1 + $0x570] sm:$0xff]  }
  0x71   :  { %2891 = vmatpush3.bf16.msra.mxu1 %v3206_v1  ;;  %v3266_v1 = vld [vmem:[%s4095_s1 + $0x5b8] sm:$0xff]  }
  0x72   :  { %2892 = vmatprep.subr.bf16.mxu1 %v3209_v4  ;;  %v3269_v4 = vld [vmem:[%s4095_s1 + $0x5f0] sm:$0xff]  }
  0x73   :  { %2871 = vmatpush3.bf16.msra.mxu0 %v3208_v3  ;;  %v3268_v3 = vld [vmem:[%s4095_s1 + $0x530] sm:$0xff]  }
  0x74   :  { %2872 = vmatprep.subr.bf16.mxu0 %v3211_v6  ;;  %v3271_v6 = vld [vmem:[%s4095_s1 + $0x568] sm:$0xff]  }
  0x75   :  { %2893 = vmatpush3.bf16.msra.mxu1 %v3210_v5  ;;  %v3270_v5 = vld [vmem:[%s4095_s1 + $0x5b0] sm:$0xff]  }
  0x76   :  { %2894 = vmatprep.subr.bf16.mxu1 %v3213_v8  ;;  %v3273_v8 = vld [vmem:[%s4095_s1 + $0x5e8] sm:$0xff]  }
  0x77   :  { %2873 = vmatpush3.bf16.msra.mxu0 %v3212_v7  ;;  %v3272_v7 = vld [vmem:[%s4095_s1 + $0x528] sm:$0xff]  }
  0x78   :  { %2874 = vmatprep.subr.bf16.mxu0 %v3215_v10  ;;  %v3275_v10 = vld [vmem:[%s4095_s1 + $0x560] sm:$0xff]  }
  0x79   :  { %2895 = vmatpush3.bf16.msra.mxu1 %v3214_v9  ;;  %v3274_v9 = vld [vmem:[%s4095_s1 + $0x5a8] sm:$0xff]  }
  0x7a   :  { %2896 = vmatprep.subr.bf16.mxu1 %v3217_v12  ;;  %v3277_v12 = vld [vmem:[%s4095_s1 + $0x5e0] sm:$0xff]  }
  0x7b   :  { %2875 = vmatpush3.bf16.msra.mxu0 %v3216_v11  ;;  %v3276_v11 = vld [vmem:[%s4095_s1 + $0x520] sm:$0xff]  }
  0x7c   :  { %2876 = vmatprep.subr.bf16.mxu0 %v3219_v14  ;;  %v3279_v14 = vld [vmem:[%s4095_s1 + $0x558] sm:$0xff]  }
  0x7d   :  { %2897 = vmatpush3.bf16.msra.mxu1 %v3218_v13  ;;  %v3278_v13 = vld [vmem:[%s4095_s1 + $0x5a0] sm:$0xff]  }
  0x7e   :  { %2898 = vmatprep.subr.bf16.mxu1 %v3221_v16  ;;  %v3281_v16 = vld [vmem:[%s4095_s1 + $0x5d8] sm:$0xff]  }
  0x7f   :  { %2877 = vmatpush3.bf16.msra.mxu0 %v3220_v15  ;;  %v3280_v15 = vld [vmem:[%s4095_s1 + $0x518] sm:$0xff]  }
  0x80   :  { %2906 = vmatprep.subr.bf16.mxu0 %v3225_v21  ;;  %v3286_v21 = vld [vmem:[%s4095_s1 + $0x590] sm:$0xff]  }
  0x81   :  { %2899 = vmatpush3.bf16.msra.mxu1 %v3224_v20  ;;  %v3285_v20 = vld [vmem:[%s4095_s1 + $0x5d0] sm:$0xff]  }
  0x82   :  { %2008 = vmatmul.mubr.bf16.vlgmr.msra.gmra.mxu0 %v2499_v18  ;;  %2928 = vmatprep.subr.bf16.mxu1 %v3229_v26  ;;  %v3283_v18 = vld [vmem:[%s4095_s1 + $0x550] sm:$0xff]   ;;  %v3291_v26 = vld [vmem:[%s4095_s1 + $0x540] sm:$0xff]  }
  0x83   :  { %2907 = vmatpush3.bf16.msra.mxu0 %v3228_v25  ;;  %2087 = vmatprep.mubr.bf16.mxu0 %v2504_v57  ;;  %v3290_v25 = vld [vmem:[%s4095_s1 + $0x588] sm:$0xff]  }
  0x84   :  { %2048 = vmatmul.mubr.bf16.vlgmr.msra.gmra.mxu1 %v2501_v23  ;;  %2908 = vmatprep.subr.bf16.mxu0 %v3231_v28  ;;  %v3288_v23 = vld [vmem:[%s4095_s1 + $0x508] sm:$0xff]   ;;  %v3293_v28 = vld [vmem:[%s4095_s1 + $0x5c0] sm:$0xff]  }
  0x85   :  { %2929 = vmatpush3.bf16.msra.mxu1 %v3230_v27  ;;  %2127 = vmatprep.mubr.bf16.mxu1 %v2506_v62  ;;  %v3292_v27 = vld [vmem:[%s4095_s1 + $0x500] sm:$0xff]  }
  0x86   :  { %2930 = vmatprep.subr.bf16.mxu1 %v3233_v30 }
  0x87   :  { %2909 = vmatpush3.bf16.msra.mxu0 %v3232_v29  ;;  %v37_v29 = vld [vmem:[%s4096_s0 + $0x50] sm:$0xff] }
  0x88   :  { %2910 = vmatprep.subr.bf16.mxu0 %v3235_v32  ;;  %v2507_v30 = vcombine.low %v37_v29, %v37_v29  ;;  %v3296_v32 = vld [vmem:[%s4095_s1 + $0x580] sm:$0xff]  }
  0x89   :  { %2931 = vmatpush3.bf16.msra.mxu1 %v3234_v31  ;;  %v2508_v31 = vcombine.high %v37_v29, %v37_v29  ;;  %v3318_v29 = vld [vmem:[%s4099_s5 + $0x28] sm:$0xff]  }
  0x8a   :  { %2932 = vmatprep.subr.bf16.mxu1 %v3237_v34  ;;  %v3324_v34 = vmov 0.0  }
  0x8b   :  { %2911 = vmatpush3.bf16.msra.mxu0 %v3236_v33  ;;  %v38_v33 = vld [vmem:[%s4096_s0 + $0x58] sm:$0xff] }
  0x8c   :  { %2912 = vmatprep.subr.bf16.mxu0 %v3239_v36  ;;  %v2510_v36 = vcombine.high %v38_v33, %v38_v33 }
  0x8d   :  { %2933 = vmatpush3.bf16.msra.mxu1 %v3238_v35  ;;  %v2509_v35 = vcombine.low %v38_v33, %v38_v33 }
  0x8e   :  { %2934 = vmatprep.subr.bf16.mxu1 %v3241_v38  ;;  %v3300_v38 = vld [vmem:[%s4095_s1 + $0x630] sm:$0xff]  }
  0x8f   :  { %2913 = vmatpush3.bf16.msra.mxu0 %v3240_v37  ;;  %v3299_v37 = vld [vmem:[%s4095_s1 + $0x638] sm:$0xff]  }
  0x90   :  { %2914 = vmatprep.subr.bf16.mxu0 %v3243_v40  ;;  %v3302_v40 = vld [vmem:[%s4095_s1 + $0x620] sm:$0xff]  }
  0x91   :  { %2935 = vmatpush3.bf16.msra.mxu1 %v3242_v39  ;;  %v3301_v39 = vld [vmem:[%s4095_s1 + $0x628] sm:$0xff]  }
  0x92   :  { %2936 = vmatprep.subr.bf16.mxu1 %v3245_v42  ;;  %v3304_v42 = vld [vmem:[%s4095_s1 + $0x610] sm:$0xff]  }
  0x93   :  { %2915 = vmatpush3.bf16.msra.mxu0 %v3244_v41  ;;  %v3303_v41 = vld [vmem:[%s4095_s1 + $0x618] sm:$0xff]  }
  0x94   :  { %2916 = vmatprep.subr.bf16.mxu0 %v3247_v44  ;;  %v3306_v44 = vld [vmem:[%s4095_s1 + $0x600] sm:$0xff]  }
  0x95   :  { %2937 = vmatpush3.bf16.msra.mxu1 %v3246_v43  ;;  %v3305_v43 = vld [vmem:[%s4095_s1 + $0x608] sm:$0xff]  }
  0x96   :  { %2938 = vmatprep.subr.bf16.mxu1 %v3249_v46 }
  0x97   :  { %2917 = vmatpush3.bf16.msra.mxu0 %v3248_v45  ;;  %v3307_v45 = vld [vmem:[%s4096_s0 + $0x60] ss:$0 sps:$4 sm:$0xff]  }
  0x98   :  { %2918 = vmatprep.subr.bf16.mxu0 %v3251_v48 }
  0x99   :  { %2939 = vmatpush3.bf16.msra.mxu1 %v3250_v47  ;;  %v2486_v47 = vld [vmem:[%s4097_s2] ss:$0 sm:$0xff] }
  0x9a   :  { %2940 = vmatprep.subr.bf16.mxu1 %v3253_v50 }
  0x9b   :  { %2919 = vmatpush3.bf16.msra.mxu0 %v3252_v49 }
  0x9c   :  { %2920 = vmatprep.subr.bf16.mxu0 %v3255_v52 }
  0x9d   :  { %2941 = vmatpush3.bf16.msra.mxu1 %v3254_v51 }
  0x9e   :  { %2942 = vmatprep.subr.bf16.mxu1 %v3257_v54 }
  0x9f   :  { %2921 = vmatpush3.bf16.msra.mxu0 %v3256_v53 }
  0xa0   :  { %2950 = vmatprep.subr.bf16.mxu0 %v3261_v59 }
  0xa1   :  { %2943 = vmatpush3.bf16.msra.mxu1 %v3260_v58 }
  0xa2   :  { %2088 = vmatmul.mubr.bf16.vlgmr.msra.gmra.mxu0 %v2503_v56  ;;  %2972 = vmatprep.subr.bf16.mxu1 %v3265_v0 }
  0xa3   :  { %2951 = vmatpush3.bf16.msra.mxu0 %v3264_v63  ;;  %2167 = vmatprep.mubr.bf16.mxu0 %v2508_v31  ;;  %v3320_v31 = vld [vmem:[%s4099_s5 + $0x18] sm:$0xff]  }
  0xa4   :  { %2128 = vmatmul.mubr.bf16.vlgmr.msra.gmra.mxu1 %v2505_v61  ;;  %2952 = vmatprep.subr.bf16.mxu0 %v3267_v2 }
  0xa5   :  { %2973 = vmatpush3.bf16.msra.mxu1 %v3266_v1  ;;  %2207 = vmatprep.mubr.bf16.mxu1 %v2510_v36 }
  0xa6   :  { %2974 = vmatprep.subr.bf16.mxu1 %v3269_v4 }
  0xa7   :  { %2953 = vmatpush3.bf16.msra.mxu0 %v3268_v3 }
  0xa8   :  { %2954 = vmatprep.subr.bf16.mxu0 %v3271_v6 }
  0xa9   :  { %2975 = vmatpush3.bf16.msra.mxu1 %v3270_v5 }
  0xaa   :  { %2976 = vmatprep.subr.bf16.mxu1 %v3273_v8  ;;  %v3309_v8 = vld [vmem:[%s4098_s3 + $0x30] sm:$0xff]  }
  0xab   :  { %2955 = vmatpush3.bf16.msra.mxu0 %v3272_v7  ;;  %v3308_v7 = vld [vmem:[%s4098_s3 + $0x38] sm:$0xff]  }
  0xac   :  { %2956 = vmatprep.subr.bf16.mxu0 %v3275_v10  ;;  %v3311_v10 = vld [vmem:[%s4098_s3 + $0x20] sm:$0xff]  }
  0xad   :  { %2977 = vmatpush3.bf16.msra.mxu1 %v3274_v9  ;;  %v3310_v9 = vld [vmem:[%s4098_s3 + $0x28] sm:$0xff]  }
  0xae   :  { %2978 = vmatprep.subr.bf16.mxu1 %v3277_v12  ;;  %v3313_v12 = vld [vmem:[%s4098_s3 + $0x10] sm:$0xff]  }
  0xaf   :  { %2957 = vmatpush3.bf16.msra.mxu0 %v3276_v11  ;;  %v3312_v11 = vld [vmem:[%s4098_s3 + $0x18] sm:$0xff]  }
  0xb0   :  { %2958 = vmatprep.subr.bf16.mxu0 %v3279_v14  ;;  %v3314_v14 = vld [vmem:[%s4098_s3 + $0x8] sm:$0xff]  }
  0xb1   :  { %2979 = vmatpush3.bf16.msra.mxu1 %v3278_v13 }
  0xb2   :  { %2980 = vmatprep.subr.bf16.mxu1 %v3281_v16 }
  0xb3   :  { %2959 = vmatpush3.bf16.msra.mxu0 %v3280_v15 }
  0xb4   :  { %2960 = vmatprep.subr.bf16.mxu0 %v3283_v18 }
  0xb5   :  { %2981 = vmatpush3.bf16.msra.mxu1 %v3282_v17 }
  0xb6   :  { %2982 = vmatprep.subr.bf16.mxu1 %v3285_v20  ;;  %v3315_v20 = vld [vmem:[%s4098_s3] sm:$0xff]  }
  0xb7   :  { %2961 = vmatpush3.bf16.msra.mxu0 %v3284_v19 }
  0xb8   :  { %2962 = vmatprep.subr.bf16.mxu0 %v3287_v22 }
  0xb9   :  { %2983 = vmatpush3.bf16.msra.mxu1 %v3286_v21 }
  0xba   :  { %2984 = vmatprep.subr.bf16.mxu1 %v3289_v24 }
  0xbb   :  { %2963 = vmatpush3.bf16.msra.mxu0 %v3288_v23 }
  0xbc   :  { %2964 = vmatprep.subr.bf16.mxu0 %v3291_v26 }
  0xbd   :  { %2985 = vmatpush3.bf16.msra.mxu1 %v3290_v25 }
  0xbe   :  { %2986 = vmatprep.subr.bf16.mxu1 %v3293_v28  ;;  %v3317_v28 = vld [vmem:[%s4099_s5 + $0x30] sm:$0xff]  }
  0xbf   :  { %2965 = vmatpush3.bf16.msra.mxu0 %v3292_v27  ;;  %v3316_v27 = vld [vmem:[%s4099_s5 + $0x38] sm:$0xff]  }
  0xc0   :  { %3021 = vmatprep.subr.bf16.mxu0 %v3324_v34 }
  0xc1   :  { %2987 = vmatpush3.bf16.msra.mxu1 %v3296_v32  ;;  %v3321_v32 = vld [vmem:[%s4099_s5 + $0x10] sm:$0xff]  }
  0xc2   :  { %2168 = vmatmul.mubr.bf16.vlgmr.msra.gmra.mxu0 %v2507_v30  ;;  %3041 = vmatprep.subr.bf16.mxu1 %v3324_v34  ;;  %v3319_v30 = vld [vmem:[%s4099_s5 + $0x20] sm:$0xff]  }
  0xc3   :  { %3022 = vmatpush3.bf16.msra.mxu0 %v3299_v37  ;;  %3037 = vmatprep.mubr.msk.bf16.mxu0 %vm3325_vm0, %v3324_v34 }
  0xc4   :  { %2208 = vmatmul.mubr.bf16.vlgmr.msra.gmra.mxu1 %v2509_v35  ;;  %3023 = vmatprep.subr.bf16.mxu0 %v3324_v34 }
  0xc5   :  { %3057 = vmatprep.mubr.msk.bf16.mxu1 %vm3325_vm0, %v3324_v34  ;;  %3042 = vmatpush3.bf16.msra.mxu1 %v3308_v7 }
  0xc6   :  { %3043 = vmatprep.subr.bf16.mxu1 %v3324_v34 }
  0xc7   :  { %3024 = vmatpush3.bf16.msra.mxu0 %v3300_v38 }
  0xc8   :  { %3025 = vmatprep.subr.bf16.mxu0 %v3324_v34 }
  0xc9   :  { %3044 = vmatpush3.bf16.msra.mxu1 %v3309_v8 }
  0xca   :  { %3045 = vmatprep.subr.bf16.mxu1 %v3324_v34 }
  0xcb   :  { %3026 = vmatpush3.bf16.msra.mxu0 %v3301_v39 }
  0xcc   :  { %3027 = vmatprep.subr.bf16.mxu0 %v3324_v34 }
  0xcd   :  { %3046 = vmatpush3.bf16.msra.mxu1 %v3310_v9 }
  0xce   :  { %3047 = vmatprep.subr.bf16.mxu1 %v3324_v34 }
  0xcf   :  { %3028 = vmatpush3.bf16.msra.mxu0 %v3302_v40 }
  0xd0   :  { %3029 = vmatprep.subr.bf16.mxu0 %v3324_v34 }
  0xd1   :  { %3048 = vmatpush3.bf16.msra.mxu1 %v3311_v10 }
  0xd2   :  { %3049 = vmatprep.subr.bf16.mxu1 %v3324_v34 }
  0xd3   :  { %3030 = vmatpush3.bf16.msra.mxu0 %v3303_v41 }
  0xd4   :  { %3031 = vmatprep.subr.bf16.mxu0 %v3324_v34 }
  0xd5   :  { %3050 = vmatpush3.bf16.msra.mxu1 %v3312_v11 }
  0xd6   :  { %3051 = vmatprep.subr.bf16.mxu1 %v3324_v34 }
  0xd7   :  { %3032 = vmatpush3.bf16.msra.mxu0 %v3304_v42 }
  0xd8   :  { %3033 = vmatprep.subr.bf16.mxu0 %v3324_v34 }
  0xd9   :  { %3052 = vmatpush3.bf16.msra.mxu1 %v3313_v12 }
  0xda   :  { %3053 = vmatprep.subr.bf16.mxu1 %v3324_v34 }
  0xdb   :  { %3034 = vmatpush3.bf16.msra.mxu0 %v3305_v43 }
  0xdc   :  { %3035 = vmatprep.subr.bf16.mxu0 %v3324_v34 }
  0xdd   :  { %3054 = vmatpush3.bf16.msra.mxu1 %v3314_v14  ;;  %v3323_v14 = vld [vmem:[%s4099_s5] sm:$0xff]  }
  0xde   :  { %3055 = vmatprep.subr.bf16.mxu1 %v3324_v34 }
  0xdf   :  { %3036 = vmatpush3.bf16.msra.mxu0 %v3306_v44 }
  0xe0   :  { %3061 = vmatprep.subr.bf16.mxu0 %v3324_v34 }
  0xe1   :  { %3056 = vmatpush3.bf16.msra.mxu1 %v3315_v20 }
  0xe2   :  { %v2746_v46 = vpop.f32.mrf.mxu0  ;;  %3038 = vmatmul.mubr.bf16.vlgmr.msra.gmra.mxu0 %v3307_v45 }
  0xe3   :  { %3077 = vmatprep.mubr.msk.bf16.mxu0 %vm3325_vm0, %v3324_v34  ;;  %3062 = vmatpush3.bf16.msra.mxu0 %v3316_v27 }
  0xe4   :  { %v2747_v48 = vpop.f32.mrf.mxu0  ;;  %v2768_v49 = vpop.f32.mrf.mxu1  ;;  %3063 = vmatprep.subr.bf16.mxu0 %v3324_v34 }
  0xe5   :  { %v2748_v50 = vadd.f32 %v2747_v48, %v2746_v46 }
  0xe6   :  { %v2749_v51 = vpop.f32.mrf.mxu0  ;;  %v2769_v52 = vpop.f32.mrf.mxu1 }
  0xe7   :  { %v1770_v53 = vadd.f32 %v2748_v50, %v2486_v47  ;;  %v2770_v54 = vadd.f32 %v2769_v52, %v2768_v49  ;;  %3064 = vmatpush3.bf16.msra.mxu0 %v3317_v28 }
  0xe8   :  { %v2750_v55 = vpop.f32.mrf.mxu0  ;;  %v2771_v56 = vpop.f32.mrf.mxu1  ;;  %3065 = vmatprep.subr.bf16.mxu0 %v3324_v34 }
  0xe9   :  { %v1810_v57 = vadd.f32 %v2770_v54, %v1770_v53 }
  0xea   :  { %v2772_v58 = vpop.f32.mrf.mxu1 }
  0xeb   :  { %3066 = vmatpush3.bf16.msra.mxu0 %v3318_v29 }
  0xec   :  { %3067 = vmatprep.subr.bf16.mxu0 %v3324_v34 }
  0xef   :  { %3068 = vmatpush3.bf16.msra.mxu0 %v3319_v30 }
  0xf0   :  { %3069 = vmatprep.subr.bf16.mxu0 %v3324_v34 }
  0xf3   :  { %3070 = vmatpush3.bf16.msra.mxu0 %v3320_v31 }
  0xf4   :  { %3071 = vmatprep.subr.bf16.mxu0 %v3324_v34 }
  0xf7   :  { %3072 = vmatpush3.bf16.msra.mxu0 %v3321_v32 }
  0xf8   :  { %3073 = vmatprep.subr.bf16.mxu0 %v3324_v34 }
 0x102   :  { %v2790_v59 = vpop.f32.mrf.mxu0 }
 0x104   :  { %v2791_v60 = vpop.f32.mrf.mxu0  ;;  %v2812_v62 = vpop.f32.mrf.mxu1 }
 0x105   :  { %v2792_v61 = vadd.f32 %v2791_v60, %v2790_v59 }
 0x106   :  { %v2793_v63 = vpop.f32.mrf.mxu0  ;;  %v2813_v1 = vpop.f32.mrf.mxu1 }
 0x107   :  { %v1850_v0 = vadd.f32 %v2792_v61, %v1810_v57  ;;  %v2814_v2 = vadd.f32 %v2813_v1, %v2812_v62 }
 0x108   :  { %v2794_v3 = vpop.f32.mrf.mxu0  ;;  %v2815_v4 = vpop.f32.mrf.mxu1 }
 0x109   :  { %v1890_v5 = vadd.f32 %v2814_v2, %v1850_v0 }
 0x10a   :  { %v2816_v6 = vpop.f32.mrf.mxu1 }
 0x122   :  { %v2834_v13 = vpop.f32.mrf.mxu0 }
 0x124   :  { %v2835_v15 = vpop.f32.mrf.mxu0  ;;  %v2856_v16 = vpop.f32.mrf.mxu1 }
 0x125   :  { %v2836_v17 = vadd.f32 %v2835_v15, %v2834_v13  ;;  %v3322_v13 = vld [vmem:[%s4099_s5 + $0x8] sm:$0xff]   ;;  %v2712_v15 = vld [vmem:[%s4100_s4] ss:$0 sm:$0xff] }
 0x126   :  { %v2837_v18 = vpop.f32.mrf.mxu0  ;;  %v2857_v19 = vpop.f32.mrf.mxu1  ;;  %3074 = vmatpush3.bf16.msra.mxu0 %v3322_v13 }
 0x127   :  { %v1930_v21 = vadd.f32 %v2836_v17, %v1890_v5  ;;  %v2858_v22 = vadd.f32 %v2857_v19, %v2856_v16  ;;  %3075 = vmatprep.subr.bf16.mxu0 %v3324_v34  ;;  %v2721_v34 = vld [vmem:[%s4101_s6] ss:$0 sm:$0xff] }
 0x128   :  { %v2838_v23 = vpop.f32.mrf.mxu0  ;;  %v2859_v24 = vpop.f32.mrf.mxu1 }
 0x129   :  { %v1970_v25 = vadd.f32 %v2858_v22, %v1930_v21 }
 0x12a   :  { %v2860_v26 = vpop.f32.mrf.mxu1  ;;  %3076 = vmatpush3.bf16.msra.mxu0 %v3323_v14 }
 0x142   :  { %v2878_v33 = vpop.f32.mrf.mxu0 }
 0x144   :  { %v2879_v35 = vpop.f32.mrf.mxu0  ;;  %v2900_v36 = vpop.f32.mrf.mxu1 }
 0x145   :  { %v2880_v37 = vadd.f32 %v2879_v35, %v2878_v33 }
 0x146   :  { %v2881_v38 = vpop.f32.mrf.mxu0  ;;  %v2901_v39 = vpop.f32.mrf.mxu1 }
 0x147   :  { %v2010_v40 = vadd.f32 %v2880_v37, %v1970_v25  ;;  %v2902_v41 = vadd.f32 %v2901_v39, %v2900_v36 }
 0x148   :  { %v2882_v42 = vpop.f32.mrf.mxu0  ;;  %v2903_v43 = vpop.f32.mrf.mxu1 }
 0x149   :  { %v2050_v44 = vadd.f32 %v2902_v41, %v2010_v40 }
 0x14a   :  { %v2904_v45 = vpop.f32.mrf.mxu1 }
 0x162   :  { %v2922_v46 = vpop.f32.mrf.mxu0 }
 0x164   :  { %v2923_v47 = vpop.f32.mrf.mxu0  ;;  %v2944_v48 = vpop.f32.mrf.mxu1 }
 0x165   :  { %v2924_v62 = vadd.f32 %v2923_v47, %v2922_v46 }
 0x166   :  { %v2925_v49 = vpop.f32.mrf.mxu0  ;;  %v2945_v50 = vpop.f32.mrf.mxu1 }
 0x167   :  { %v2090_v63 = vadd.f32 %v2924_v62, %v2050_v44  ;;  %v2946_v0 = vadd.f32 %v2945_v50, %v2944_v48 }
 0x168   :  { %v2926_v51 = vpop.f32.mrf.mxu0  ;;  %v2947_v52 = vpop.f32.mrf.mxu1 }
 0x169   :  { %v2130_v2 = vadd.f32 %v2946_v0, %v2090_v63 }
 0x16a   :  { %v2948_v53 = vpop.f32.mrf.mxu1 }
 0x182   :  { %v2966_v54 = vpop.f32.mrf.mxu0 }
 0x184   :  { %v2967_v55 = vpop.f32.mrf.mxu0  ;;  %v2988_v56 = vpop.f32.mrf.mxu1 }
 0x185   :  { %v2968_v1 = vadd.f32 %v2967_v55, %v2966_v54 }
 0x186   :  { %v2969_v57 = vpop.f32.mrf.mxu0  ;;  %v2989_v58 = vpop.f32.mrf.mxu1 }
 0x187   :  { %v2170_v3 = vadd.f32 %v2968_v1, %v2130_v2  ;;  %v2990_v4 = vadd.f32 %v2989_v58, %v2988_v56 }
 0x188   :  { %v2970_v59 = vpop.f32.mrf.mxu0  ;;  %v2991_v60 = vpop.f32.mrf.mxu1 }
 0x189   :  { %v2210_v5 = vadd.f32 %v2990_v4, %v2170_v3 }
 0x18a   :  { %v2992_v61 = vpop.f32.mrf.mxu1 }
 0x1a2   :  { %v2249_v6 = vpop.f32.mrf.mxu0 }
 0x1a3   :  { %v2250_v7 = vadd.f32 %v2249_v6, %v2210_v5 }
 0x1a4   :  { %v3039_v8 = vpop.f32.mrf.mxu0 }
 0x1a5   :  { %v2255_v9 = vmax.f32 %v2250_v7, 0.0 }
 0x1a6   :  { %v2252_v10 = vpop.f32.mrf.mxu0 }
 0x1a7   :  { %v2256_v11 = vpack.c.bf16 %v2255_v9, %v2255_v9 }
 0x1a8   :  { %v3040_v12 = vpop.f32.mrf.mxu0 }
 0x1a9   :  { %3058 = vmatmul.mubr.bf16.vlgmr.msra.gmra.mxu1 %v2256_v11 }
 0x269   :  { %v2362_v16 = vpop.f32.mrf.mxu1 }
 0x26a   :  { %v2363_v17 = vadd.f32 %v2712_v15, %v2362_v16 }
 0x26b   :  { %v3059_v18 = vpop.f32.mrf.mxu1 }
 0x26c   :  { %v2368_v19 = vmax.f32 %v2363_v17, 0.0 }
 0x26d   :  { %v2365_v20 = vpop.f32.mrf.mxu1 }
 0x26e   :  { %v2369_v21 = vpack.c.bf16 %v2368_v19, %v2368_v19 }
 0x26f   :  { %v3060_v22 = vpop.f32.mrf.mxu1 }
 0x270   :  { %3078 = vmatmul.mubr.bf16.vlgmr.msra.gmra.mxu0 %v2369_v21 }
 0x330   :  { %v2475_v23 = vpop.f32.mrf.mxu0 }
 0x331   :  { %v2476_v24 = vadd.f32 %v2721_v34, %v2475_v23 }
 0x332   :  { %v3079_v25 = vpop.f32.mrf.mxu0 }
 0x333   :  { %2481 = vst [vmem:[%s4102_s7] sm:$0xff] %v2476_v24 }
 0x334   :  { %v2478_v26 = vpop.f32.mrf.mxu0 }
 0x336   :  { %v3080_v27 = vpop.f32.mrf.mxu0 }

</bundles_post_ra>
